<compile_context>
chip_gen: v5e
topology: v5e:2x2
jax: 0.10.0
libtpu: 0.0.40
codegen_flags: <defaults>
</compile_context>

<pallas_src>
import numpy as np

import jax
import jax.numpy as jnp
from jax.experimental import pallas as pl
from jax.experimental.pallas import tpu as pltpu


# -----------------------------------------------------------------------------
# Fused decoder-network kernel:
#   out = sigmoid(relu(relu(z@W1+b1)@W2+b2)@W3+b3)
# W2 / W3 are the dense-matrix forms of ConvTranspose2d(k=2, s=2) layers, so the
# whole conv decoder is three MXU matmuls + VPU/EUP elementwise work.
# Weights are bf16; accumulation and all elementwise math are f32.
# -----------------------------------------------------------------------------
def _decoder_kernel(z_ref, w1_ref, b1_ref, w2_ref, b2_ref, w3_ref, b3_ref, o_ref):
    h1 = jnp.dot(z_ref[...].astype(jnp.bfloat16), w1_ref[...],
                 preferred_element_type=jnp.float32)
    h1 = jnp.maximum(h1 + b1_ref[...], 0.0)

    h2 = jnp.dot(h1.astype(jnp.bfloat16), w2_ref[...],
                 preferred_element_type=jnp.float32)
    h2 = jnp.maximum(h2 + b2_ref[...], 0.0)

    logits = jnp.dot(h2.astype(jnp.bfloat16), w3_ref[...],
                     preferred_element_type=jnp.float32)
    logits = logits + b3_ref[...]

    # Bernoulli decoder head: sigmoid with the divide on the EUP (approx recip).
    denom = 1.0 + jnp.exp(-logits)
    o_ref[...] = (pl.reciprocal(denom, approx=True)).astype(o_ref.dtype)


def _choose_block_n(N):
    """Row-tile size: amortize per-step overhead, keep VMEM modest, and guarantee
    >= 2 grid steps for large N so v7x's second TensorCore gets work."""
    if N <= 256:
        return N
    half = -(-N // 2)              # cdiv(N, 2): at least 2 grid steps
    half = ((half + 7) // 8) * 8   # round up to sublane multiple
    return int(max(256, min(1024, half)))


def decoder_forward_pallas(z2d, params):
    """Apply the fused decoder network to z2d: (N, latent) -> (N, dim_x**2)."""
    w1, b1, w2, b2, w3, b3 = params
    N, L = z2d.shape
    D1 = w1.shape[1]
    D2 = w2.shape[1]
    D3 = w3.shape[1]

    block_n = _choose_block_n(N)
    grid = (pl.cdiv(N, block_n),)

    flops = 2 * N * (L * D1 + D1 * D2 + D2 * D3)
    bytes_accessed = (4 * (N * L + D1 + D2 + D3 + N * D3)          # f32 acts/biases
                      + 2 * (L * D1 + D1 * D2 + D2 * D3))          # bf16 weights
    cost = pl.CostEstimate(
        flops=flops, transcendentals=N * D3, bytes_accessed=bytes_accessed
    )

    resident = pl.Buffered(1)  # constant index_map -> single-buffer the weights

    return pl.pallas_call(
        _decoder_kernel,
        out_shape=jax.ShapeDtypeStruct((N, D3), z2d.dtype),
        grid_spec=pltpu.PrefetchScalarGridSpec(
            num_scalar_prefetch=0,
            grid=grid,
            in_specs=[
                pl.BlockSpec((block_n, L), lambda i: (i, 0)),       # z rows (tiled)
                pl.BlockSpec((L, D1), lambda i: (0, 0), pipeline_mode=resident),
                pl.BlockSpec((1, D1), lambda i: (0, 0), pipeline_mode=resident),
                pl.BlockSpec((D1, D2), lambda i: (0, 0), pipeline_mode=resident),
                pl.BlockSpec((1, D2), lambda i: (0, 0), pipeline_mode=resident),
                pl.BlockSpec((D2, D3), lambda i: (0, 0), pipeline_mode=resident),
                pl.BlockSpec((1, D3), lambda i: (0, 0), pipeline_mode=resident),
            ],
            out_specs=pl.BlockSpec((block_n, D3), lambda i: (i, 0)),  # lane-dense 256
        ),
        compiler_params=pltpu.CompilerParams(
            dimension_semantics=("parallel",),
            vmem_limit_bytes=32 * 1024 * 1024,
        ),
        cost_estimate=cost,
    )(z2d, w1, b1, w2, b2, w3, b3)


# -----------------------------------------------------------------------------
# ConvTranspose2d(Ci, Co, kernel_size=2, stride=2) as a dense matrix.
# stride == kernel, so every output pixel gets exactly one contribution:
#   out[co, 2i+di, 2j+dj] = sum_ci in[ci, i, j] * w[ci, co, di, dj] + b[co]
# Feature maps are flattened row-major (C, H, W), matching torch .view/.reshape.
# -----------------------------------------------------------------------------
def conv_transpose2x2_as_dense(w, b, H, W):
    Ci, Co, KH, KW = w.shape
    OH, OW = 2 * H, 2 * W
    M = np.zeros((Ci * H * W, Co * OH * OW), dtype=np.float32)
    for ci in range(Ci):
        for i in range(H):
            for j in range(W):
                row = (ci * H + i) * W + j
                for co in range(Co):
                    for di in range(KH):
                        for dj in range(KW):
                            col = (co * OH + (2 * i + di)) * OW + (2 * j + dj)
                            M[row, col] = w[ci, co, di, dj]
    bias_vec = np.repeat(np.asarray(b, dtype=np.float32), OH * OW)
    return M, bias_vec


def make_conv_decoder_network(key, latent_dim=32, dim_x=16, c0=32, c1=16):
    """Build a representative conv decoder network (params + callable)."""
    h0 = w0 = dim_x // 4
    D1 = c0 * h0 * w0

    k1, k2, k3, k4 = jax.random.split(key, 4)
    w1 = (jax.random.normal(k1, (latent_dim, D1), dtype=jnp.float32)
          / np.sqrt(latent_dim))
    b1 = 0.1 * jax.random.normal(k4, (1, D1), dtype=jnp.float32)

    convT1_w = jax.random.normal(k2, (c0, c1, 2, 2), dtype=jnp.float32) / np.sqrt(c0)
    convT1_b = 0.1 * jnp.ones((c1,), dtype=jnp.float32)
    convT2_w = jax.random.normal(k3, (c1, 1, 2, 2), dtype=jnp.float32) / np.sqrt(c1)
    convT2_b = 0.1 * jnp.ones((1,), dtype=jnp.float32)

    w2_np, b2_np = conv_transpose2x2_as_dense(
        np.asarray(convT1_w), np.asarray(convT1_b), h0, w0)
    w3_np, b3_np = conv_transpose2x2_as_dense(
        np.asarray(convT2_w), np.asarray(convT2_b), 2 * h0, 2 * w0)

    # Weights stored in bf16 (MXU operands); biases stay f32 (f32 VPU epilogue).
    params = (
        w1.astype(jnp.bfloat16), b1,
        jnp.asarray(w2_np, dtype=jnp.bfloat16),
        jnp.asarray(b2_np, dtype=jnp.float32).reshape(1, -1),
        jnp.asarray(w3_np, dtype=jnp.bfloat16),
        jnp.asarray(b3_np, dtype=jnp.float32).reshape(1, -1),
    )

    def network(z):
        # z: (batch, samples, latent_dim) -> (batch*samples, dim_x**2)
        B, S, L = z.shape
        z2d = jnp.reshape(z, (B * S, L))          # metadata-only
        return decoder_forward_pallas(z2d, params)

    return network, params


class ConvDecoder:
    """JAX/Pallas port of the PyTorch ConvDecoder wrapper."""

    def __init__(self, network):
        self.network = network

    def __call__(self, z):
        batch_size, samples = z.shape[:2]
        theta_x = self.network(z)
        # torch .reshape on a contiguous tensor == metadata-only jnp.reshape;
        # no copy kernel needed (fused into the decoder kernel's output layout).
        return jnp.reshape(theta_x, (batch_size, samples, theta_x.shape[-1]))


def _reference_decoder(z2d, params):
    """Pure-JAX reference mirroring the kernel's bf16-operand / f32-accum matmuls."""
    w1, b1, w2, b2, w3, b3 = params

    def mm(x, w):
        return jnp.dot(x.astype(jnp.bfloat16), w, preferred_element_type=jnp.float32)

    h1 = jnp.maximum(mm(z2d, w1) + b1, 0.0)
    h2 = jnp.maximum(mm(h1, w2) + b2, 0.0)
    logits = mm(h2, w3) + b3
    return jax.nn.sigmoid(logits)


if __name__ == "__main__":
    key = jax.random.PRNGKey(0)
    k_params, k_z = jax.random.split(key)

    batch_size, samples, latent_dim, dim_x = 2, 4, 32, 16

    network, params = make_conv_decoder_network(
        k_params, latent_dim=latent_dim, dim_x=dim_x)
    decoder = ConvDecoder(network)

    z = jax.random.normal(k_z, (batch_size, samples, latent_dim), dtype=jnp.float32)

    y = decoder(z)
    y = jax.block_until_ready(y)

    # Correctness: shape + numerics vs a matched-precision pure-JAX reference
    # (tolerance covers the approx-EUP reciprocal in the sigmoid; ~1e-3 level).
    assert y.shape == (batch_size, samples, dim_x * dim_x), y.shape
    assert y.dtype == jnp.float32

    ref2d = _reference_decoder(jnp.reshape(z, (batch_size * samples, latent_dim)),
                               params)
    ref = jnp.reshape(ref2d, (batch_size, samples, dim_x * dim_x))
    max_err = float(jnp.max(jnp.abs(y - ref)))
    assert jnp.allclose(y, ref, atol=5e-3, rtol=5e-3), max_err

    print("KERNEL_OK")
</pallas_src>

<mosaic_0001>
module attributes {stable_mosaic.version = 11 : i64} {
  func.func @_decoder_kernel(%arg0: i32, %arg1: memref<8x32xf32, #tpu.memory_space<vmem>>, %arg2: memref<32x512xbf16, #tpu.memory_space<vmem>>, %arg3: memref<1x512xf32, #tpu.memory_space<vmem>>, %arg4: memref<512x1024xbf16, #tpu.memory_space<vmem>>, %arg5: memref<1x1024xf32, #tpu.memory_space<vmem>>, %arg6: memref<1024x256xbf16, #tpu.memory_space<vmem>>, %arg7: memref<1x256xf32, #tpu.memory_space<vmem>>, %arg8: memref<8x256xf32, #tpu.memory_space<vmem>>) attributes {dimension_semantics = [#tpu.dimension_semantics<parallel>], iteration_bounds = array<i64: 1>, scalar_prefetch = 0 : i64, scratch_operands = 0 : i64, tpu.core_type = #tpu.core_type<tc>, window_params = [{transform_indices = @transform_0, window_bounds = array<i64: 8, 32>}, {pipeline_mode = #tpu.pipeline_mode<synchronous>, transform_indices = @transform_1, window_bounds = array<i64: 32, 512>}, {pipeline_mode = #tpu.pipeline_mode<synchronous>, transform_indices = @transform_2, window_bounds = array<i64: 1, 512>}, {pipeline_mode = #tpu.pipeline_mode<synchronous>, transform_indices = @transform_3, window_bounds = array<i64: 512, 1024>}, {pipeline_mode = #tpu.pipeline_mode<synchronous>, transform_indices = @transform_4, window_bounds = array<i64: 1, 1024>}, {pipeline_mode = #tpu.pipeline_mode<synchronous>, transform_indices = @transform_5, window_bounds = array<i64: 1024, 256>}, {pipeline_mode = #tpu.pipeline_mode<synchronous>, transform_indices = @transform_6, window_bounds = array<i64: 1, 256>}, {transform_indices = @transform_7, window_bounds = array<i64: 8, 256>}]} {
    %c0 = arith.constant 0 : index
    %c0_0 = arith.constant 0 : index
    %0 = vector.load %arg1[%c0, %c0_0] : memref<8x32xf32, #tpu.memory_space<vmem>>, vector<8x32xf32>
    %1 = arith.truncf %0 : vector<8x32xf32> to vector<8x32xbf16>
    %c0_1 = arith.constant 0 : index
    %c0_2 = arith.constant 0 : index
    %2 = vector.load %arg2[%c0_1, %c0_2] : memref<32x512xbf16, #tpu.memory_space<vmem>>, vector<32x512xbf16>
    %cst = arith.constant dense<0.000000e+00> : vector<8x512xf32>
    %3 = tpu.matmul %1, %2, %cst {dimension_numbers = #tpu.dot_dimension_numbers<[1], [0], [0], [1], [0, 0, 1, 1], [], []>} : vector<8x32xbf16>, vector<32x512xbf16>, vector<8x512xf32> -> vector<8x512xf32>
    %c0_3 = arith.constant 0 : index
    %c0_4 = arith.constant 0 : index
    %4 = vector.load %arg3[%c0_3, %c0_4] : memref<1x512xf32, #tpu.memory_space<vmem>>, vector<1x512xf32>
    %5 = vector.broadcast %4 : vector<1x512xf32> to vector<8x512xf32>
    %6 = arith.addf %3, %5 : vector<8x512xf32>
    %cst_5 = arith.constant 0.000000e+00 : f32
    %7 = vector.broadcast %cst_5 : f32 to vector<8x512xf32>
    %8 = arith.maximumf %6, %7 : vector<8x512xf32>
    %9 = arith.truncf %8 : vector<8x512xf32> to vector<8x512xbf16>
    %c0_6 = arith.constant 0 : index
    %c0_7 = arith.constant 0 : index
    %10 = vector.load %arg4[%c0_6, %c0_7] : memref<512x1024xbf16, #tpu.memory_space<vmem>>, vector<512x1024xbf16>
    %cst_8 = arith.constant dense<0.000000e+00> : vector<8x1024xf32>
    %11 = tpu.matmul %9, %10, %cst_8 {dimension_numbers = #tpu.dot_dimension_numbers<[1], [0], [0], [1], [0, 0, 1, 1], [], []>} : vector<8x512xbf16>, vector<512x1024xbf16>, vector<8x1024xf32> -> vector<8x1024xf32>
    %c0_9 = arith.constant 0 : index
    %c0_10 = arith.constant 0 : index
    %12 = vector.load %arg5[%c0_9, %c0_10] : memref<1x1024xf32, #tpu.memory_space<vmem>>, vector<1x1024xf32>
    %13 = vector.broadcast %12 : vector<1x1024xf32> to vector<8x1024xf32>
    %14 = arith.addf %11, %13 : vector<8x1024xf32>
    %cst_11 = arith.constant 0.000000e+00 : f32
    %15 = vector.broadcast %cst_11 : f32 to vector<8x1024xf32>
    %16 = arith.maximumf %14, %15 : vector<8x1024xf32>
    %17 = arith.truncf %16 : vector<8x1024xf32> to vector<8x1024xbf16>
    %c0_12 = arith.constant 0 : index
    %c0_13 = arith.constant 0 : index
    %18 = vector.load %arg6[%c0_12, %c0_13] : memref<1024x256xbf16, #tpu.memory_space<vmem>>, vector<1024x256xbf16>
    %cst_14 = arith.constant dense<0.000000e+00> : vector<8x256xf32>
    %19 = tpu.matmul %17, %18, %cst_14 {dimension_numbers = #tpu.dot_dimension_numbers<[1], [0], [0], [1], [0, 0, 1, 1], [], []>} : vector<8x1024xbf16>, vector<1024x256xbf16>, vector<8x256xf32> -> vector<8x256xf32>
    %c0_15 = arith.constant 0 : index
    %c0_16 = arith.constant 0 : index
    %20 = vector.load %arg7[%c0_15, %c0_16] : memref<1x256xf32, #tpu.memory_space<vmem>>, vector<1x256xf32>
    %21 = vector.broadcast %20 : vector<1x256xf32> to vector<8x256xf32>
    %22 = arith.addf %19, %21 : vector<8x256xf32>
    %cst_17 = arith.constant 0.000000e+00 : f32
    %23 = vector.broadcast %cst_17 : f32 to vector<8x256xf32>
    %24 = arith.subf %23, %22 : vector<8x256xf32>
    %25 = math.exp %24 : vector<8x256xf32>
    %cst_18 = arith.constant 1.000000e+00 : f32
    %26 = vector.broadcast %cst_18 : f32 to vector<8x256xf32>
    %27 = arith.addf %26, %25 : vector<8x256xf32>
    %28 = tpu.reciprocal %27 {approx = true} : vector<8x256xf32> -> vector<8x256xf32>
    %c0_19 = arith.constant 0 : index
    %c0_20 = arith.constant 0 : index
    %29 = vector.load %arg8[%c0_19, %c0_20] : memref<8x256xf32, #tpu.memory_space<vmem>>, vector<8x256xf32>
    tpu.vector_store %arg8[%c0_19, %c0_20], %28 {strides = array<i32>} : memref<8x256xf32, #tpu.memory_space<vmem>>, vector<8x256xf32>,
    return
  }
  func.func @transform_0(%arg0: i32) -> (i32, i32) {
    %c0_i32 = arith.constant 0 : i32
    %c0_i32_0 = arith.constant 0 : i32
    return %arg0, %c0_i32 : i32, i32
  }
  func.func @transform_1(%arg0: i32) -> (i32, i32) {
    %c0_i32 = arith.constant 0 : i32
    %c0_i32_0 = arith.constant 0 : i32
    %c0_i32_1 = arith.constant 0 : i32
    return %c0_i32, %c0_i32_0 : i32, i32
  }
  func.func @transform_2(%arg0: i32) -> (i32, i32) {
    %c0_i32 = arith.constant 0 : i32
    %c0_i32_0 = arith.constant 0 : i32
    %c0_i32_1 = arith.constant 0 : i32
    return %c0_i32, %c0_i32_0 : i32, i32
  }
  func.func @transform_3(%arg0: i32) -> (i32, i32) {
    %c0_i32 = arith.constant 0 : i32
    %c0_i32_0 = arith.constant 0 : i32
    %c0_i32_1 = arith.constant 0 : i32
    return %c0_i32, %c0_i32_0 : i32, i32
  }
  func.func @transform_4(%arg0: i32) -> (i32, i32) {
    %c0_i32 = arith.constant 0 : i32
    %c0_i32_0 = arith.constant 0 : i32
    %c0_i32_1 = arith.constant 0 : i32
    return %c0_i32, %c0_i32_0 : i32, i32
  }
  func.func @transform_5(%arg0: i32) -> (i32, i32) {
    %c0_i32 = arith.constant 0 : i32
    %c0_i32_0 = arith.constant 0 : i32
    %c0_i32_1 = arith.constant 0 : i32
    return %c0_i32, %c0_i32_0 : i32, i32
  }
  func.func @transform_6(%arg0: i32) -> (i32, i32) {
    %c0_i32 = arith.constant 0 : i32
    %c0_i32_0 = arith.constant 0 : i32
    %c0_i32_1 = arith.constant 0 : i32
    return %c0_i32, %c0_i32_0 : i32, i32
  }
  func.func @transform_7(%arg0: i32) -> (i32, i32) {
    %c0_i32 = arith.constant 0 : i32
    %c0_i32_0 = arith.constant 0 : i32
    return %arg0, %c0_i32 : i32, i32
  }
}

</mosaic_0001>

<bundles_post_ra>
// kernel: tpu_custom_call.1
= control target key start
LH: loop header
LB: loop body
LE: loop exit
PB: predicated region body
PF: predicated region fallthrough
CT: control target
= control target key end

     0   :  { %12 = vsyncpa [#allocation3], 0  ;;  %s5598_s0 = inlined_call_operand.hbm [shape: f32[8,32], index: 0, kind: input, shape index: {}]   ;;  %s5599_s1 = inlined_call_operand.hbm [shape: bf16[32,512], index: 1, kind: input, shape index: {}]   ;;  %s5600_s2 = inlined_call_operand.hbm [shape: f32[1,512], index: 2, kind: input, shape index: {}]   ;;  %s5601_s3 = inlined_call_operand.hbm [shape: bf16[512,1024], index: 3, kind: input, shape index: {}]   ;;  %s5602_s4 = inlined_call_operand.hbm [shape: f32[1,1024], index: 4, kind: input, shape index: {}]   ;;  %s5603_s5 = inlined_call_operand.hbm [shape: bf16[1024,256], index: 5, kind: input, shape index: {}]   ;;  %s5604_s6 = inlined_call_operand.vmem [shape: f32[1,256], index: 6, kind: input, shape index: {}]   ;;  %s5605_s7 = inlined_call_operand.hbm [shape: f32[8,256], index: 7, kind: output, shape index: {}]  }
   0x1   :  { %13 = vsyncpa [#allocation6], 0 }
   0x2   :  { %14 = vsyncpa [#allocation9], 0 }
   0x3   :  { %15 = vsyncpa [#allocation12], 0  ;;  %s32_s26 = sshll.u32 %s5599_s1, 4  ;;  %s33_s26 = int_to_ptr.hbm [resolvable:$true] %s32_s26 }
   0x4   :  { %16 = vsyncpa [#allocation4], 0  ;;  %s5404_s27 = smov [#allocation5]   ;;  %s56_s8 = sshll.u32 %s5601_s3, 4  ;;  %s57_s8 = int_to_ptr.hbm [resolvable:$true] %s56_s8 }
   0x5   :  { %s34_s28 = sshll.u32 %s5404_s27, 4  ;;  %s5405_s9 = smov 256   ;;  %s35_s28 = int_to_ptr.vmem [resolvable:$true] %s34_s28 }
   0x6   :  { %s5406_s10 = smov 16   ;;  %s5407_s11 = smov [#allocation8]  }
   0x7   :  { %40 = dma.hbm_to_vmem [thread:$0]  %s33_s26, 1024, %s35_s28, [#allocation6], %s5405_s9, %s5405_s9, %s5406_s10  }
   0x8   :  { %s58_s12 = sshll.u32 %s5407_s11, 4  ;;  %s5408_s13 = smov 512   ;;  %s59_s12 = int_to_ptr.vmem [resolvable:$true] %s58_s12 }
   0x9   :  { %s5409_s14 = smov 32   ;;  %s22_s16 = sshll.u32 %s5598_s0, 4  ;;  %s23_s16 = int_to_ptr.hbm [resolvable:$true] %s22_s16 }
   0xa   :  { %64 = dma.hbm_to_vmem [thread:$0]  %s57_s8, 32768, %s59_s12, [#allocation9], %s5408_s13, %s5408_s13, %s5409_s14  }
   0xb   :  { %s5410_s17 = smov [#allocation2]   ;;  %s46_s20 = sshll.u32 %s5600_s2, 4  ;;  %s47_s20 = int_to_ptr.hbm [resolvable:$true] %s46_s20 }
   0xc   :  { %s24_s18 = sshll.u32 %s5410_s17, 4  ;;  %s5411_s21 = smov [#allocation7]   ;;  %s25_s18 = int_to_ptr.vmem [resolvable:$true] %s24_s18 }
   0xd   :  { %27 = dma.hbm_to_vmem [thread:$0]  %s23_s16, 128, %s25_s18, [#allocation3]  }
   0xe   :  { %s48_s22 = sshll.u32 %s5411_s21, 4  ;;  %s70_s25 = sshll.u32 %s5602_s4, 4  ;;  %s49_s22 = int_to_ptr.vmem [resolvable:$true] %s48_s22  ;;  %s71_s25 = int_to_ptr.hbm [resolvable:$true] %s70_s25 }
   0xf   :  { %51 = dma.hbm_to_vmem [thread:$0]  %s47_s20, 64, %s49_s22, [#allocation6]  }
  0x10   :  { %s80_s27 = sshll.u32 %s5603_s5, 4  ;;  %s5412_s28 = smov [#allocation10]   ;;  %s81_s27 = int_to_ptr.hbm [resolvable:$true] %s80_s27 }
  0x11   :  { %s72_s29 = sshll.u32 %s5412_s28, 4  ;;  %s5413_s2 = smov [#allocation11]   ;;  %s73_s29 = int_to_ptr.vmem [resolvable:$true] %s72_s29 }
  0x12   :  { %75 = dma.hbm_to_vmem [thread:$0]  %s71_s25, 128, %s73_s29, [#allocation9]  }
  0x13   :  { %s82_s30 = sshll.u32 %s5413_s2, 4  ;;  %s5414_s8 = smov 128   ;;  %s83_s30 = int_to_ptr.vmem [resolvable:$true] %s82_s30 }
  0x14   :  { %s5415_s9 = smov 8  }
  0x15   :  { %88 = dma.hbm_to_vmem [thread:$0]  %s81_s27, 16384, %s83_s30, [#allocation12], %s5414_s8, %s5414_s8, %s5415_s9  }
  0x16   :  { %5394 = dma.done.wait [#allocation3], 128  }
  0x17   :  { %5395 = vsyncadd [#allocation3], 4294967168 }
  0x18   :  { %5396 = dma.done.wait [#allocation6], 1088  }
  0x19   :  { %5397 = vsyncadd [#allocation6], 4294966208 }
  0x1a   :  { %5398 = dma.done.wait [#allocation9], 32896  }
  0x1b   :  { %5399 = vsyncadd [#allocation9], 4294934400 }
  0x1c   :  { %5400 = dma.done.wait [#allocation12], 16384  }
  0x1d   :  { %5401 = vsyncadd [#allocation12], 4294950912  ;;  %v3258_v0 = vld [vmem:[#allocation5 + $0x20] sm:$0xf]  ;;  %v4818_v1 = vld [vmem:[#allocation5 + $0x2c] sm:$0xf0] }
  0x1e   :  { %v4816_v2 = vld [vmem:[#allocation5 + $0x24] sm:$0xf]  ;;  %v3259_v3 = vor.u32 %v4818_v1, %v3258_v0  ;;  %v3260_v4 = vld [vmem:[#allocation5 + $0x30] sm:$0xf0]  ;;  %v3266_v5 = vld [vmem:[#allocation5 + $0x28] sm:$0xf] }
  0x1f   :  { %v4819_v6 = vld [vmem:[#allocation5 + $0x34] sm:$0xf0]  ;;  %v3263_v7 = vor.u32 %v4816_v2, %v3260_v4  ;;  %v4817_v9 = vld [vmem:[#allocation5 + $0x2c] sm:$0xf]  ;;  %v3268_v10 = vld [vmem:[#allocation5 + $0x38] sm:$0xf0] }
  0x20   :  { %v3267_v8 = vor.u32 %v4819_v6, %v3266_v5  ;;  %v3242_v11 = vld [vmem:[#allocation5] sm:$0xf]  ;;  %186 = vmatpush.bf16.msra.mxu0 %v3259_v3  ;;  %v3271_v12 = vor.u32 %v4817_v9, %v3268_v10  ;;  %v4814_v13 = vld [vmem:[#allocation5 + $0xc] sm:$0xf0]  ;;  %v4812_v14 = vld [vmem:[#allocation5 + $0x4] sm:$0xf] }
  0x21   :  { %v3244_v15 = vld [vmem:[#allocation5 + $0x10] sm:$0xf0]  ;;  %199 = vmatpush.bf16.msra.mxu1 %v3263_v7  ;;  %v3243_v16 = vor.u32 %v4814_v13, %v3242_v11  ;;  %v3250_v18 = vld [vmem:[#allocation5 + $0x8] sm:$0xf]  ;;  %v4815_v19 = vld [vmem:[#allocation5 + $0x14] sm:$0xf0] }
  0x22   :  { %212 = vmatpush.bf16.msra.mxu2 %v3267_v8  ;;  %v3247_v17 = vor.u32 %v4812_v14, %v3244_v15  ;;  %v4813_v20 = vld [vmem:[#allocation5 + $0xc] sm:$0xf]  ;;  %225 = vmatpush.bf16.msra.mxu3 %v3271_v12  ;;  %v3251_v21 = vor.u32 %v4815_v19, %v3250_v18  ;;  %v3252_v22 = vld [vmem:[#allocation5 + $0x18] sm:$0xf0]  ;;  %vm176_vm0 = vcmask 261120   ;;  %s3227_s13 = sshll.u32 %s5605_s7, 4  ;;  %s3228_s13 = int_to_ptr.hbm [resolvable:$true] %s3227_s13 }
  0x23   :  { %v116_v23 = vld [vmem:[#allocation2] sm:$0xff]  ;;  %v3502_v24 = vld [vmem:[#allocation8 + $0x1c0] sm:$0xf]  ;;  %v3255_v25 = vor.u32 %v4813_v20, %v3252_v22 }
  0x24   :  { %v117_v26 = vpack.c.bf16 %v116_v23, %v116_v23  ;;  %v4880_v27 = vld [vmem:[#allocation8 + $0x1dc] sm:$0xf0]  ;;  %187 = vmatpush.bf16.msra.mxu0 %v3243_v16 }
  0x25   :  { %v3758_v28 = vld [vmem:[#allocation8 + $0x3c0] sm:$0xf]  ;;  %v3503_v30 = vor.u32 %v4880_v27, %v3502_v24  ;;  %200 = vmatpush.bf16.msra.mxu1 %v3247_v17 }
  0x26   :  { %v4944_v29 = vld [vmem:[#allocation8 + $0x3dc] sm:$0xf0]  ;;  %213 = vmatpush.bf16.msra.mxu2 %v3251_v21  ;;  %226 = vmatpush.bf16.msra.mxu3 %v3255_v25 }
  0x27   :  { %v3759_v31 = vor.u32 %v4944_v29, %v3758_v28  ;;  %v3470_v32 = vld [vmem:[#allocation8 + $0x180] sm:$0xf]  ;;  %3272 = vmatmul.msk.bf16.vlgmr.msra.gmra.mxu0 %vm176_vm0, %v117_v26 }
  0x28   :  { %v4872_v33 = vld [vmem:[#allocation8 + $0x19c] sm:$0xf0]  ;;  %1794 = vmatpush.bf16.msrb.mxu0 %v3503_v30  ;;  %3273 = vmatmul.msk.bf16.vlgmr.msra.gmra.mxu1 %vm176_vm0, %v117_v26 }
  0x29   :  { %v3726_v34 = vld [vmem:[#allocation8 + $0x380] sm:$0xf]  ;;  %v3471_v38 = vor.u32 %v4872_v33, %v3470_v32  ;;  %1807 = vmatpush.bf16.msrb.mxu1 %v3759_v31  ;;  %3274 = vmatmul.msk.bf16.vlgmr.msra.gmra.mxu2 %vm176_vm0, %v117_v26 }
  0x2a   :  { %v4936_v35 = vld [vmem:[#allocation8 + $0x39c] sm:$0xf0]  ;;  %3275 = vmatmul.msk.bf16.vlgmr.msra.gmra.mxu3 %vm176_vm0, %v117_v26 }
  0x2b   :  { %v4014_v36 = vld [vmem:[#allocation8 + $0x5c0] sm:$0xf]  ;;  %v3727_v43 = vor.u32 %v4936_v35, %v3726_v34 }
  0x2c   :  { %v5008_v37 = vld [vmem:[#allocation8 + $0x5dc] sm:$0xf0]  ;;  %1795 = vmatpush.bf16.msrb.mxu0 %v3471_v38 }
  0x2d   :  { %v4015_v39 = vor.u32 %v5008_v37, %v4014_v36  ;;  %v4270_v40 = vld [vmem:[#allocation8 + $0x7c0] sm:$0xf]  ;;  %1808 = vmatpush.bf16.msrb.mxu1 %v3727_v43 }
  0x2e   :  { %v5072_v41 = vld [vmem:[#allocation8 + $0x7dc] sm:$0xf0] }
  0x2f   :  { %v3438_v42 = vld [vmem:[#allocation8 + $0x140] sm:$0xf]  ;;  %v4271_v44 = vor.u32 %v5072_v41, %v4270_v40  ;;  %1820 = vmatpush.bf16.msrb.mxu2 %v4015_v39 }
  0x30   :  { %v4864_v45 = vld [vmem:[#allocation8 + $0x15c] sm:$0xf0] }
  0x31   :  { %v3694_v46 = vld [vmem:[#allocation8 + $0x340] sm:$0xf]  ;;  %1833 = vmatpush.bf16.msrb.mxu3 %v4271_v44  ;;  %v3439_v53 = vor.u32 %v4864_v45, %v3438_v42 }
  0x32   :  { %v4928_v47 = vld [vmem:[#allocation8 + $0x35c] sm:$0xf0] }
  0x33   :  { %v3982_v48 = vld [vmem:[#allocation8 + $0x580] sm:$0xf]  ;;  %v3695_v58 = vor.u32 %v4928_v47, %v3694_v46  ;;  %1796 = vmatpush.bf16.msrb.mxu0 %v3439_v53 }
  0x34   :  { %v5000_v49 = vld [vmem:[#allocation8 + $0x59c] sm:$0xf0] }
  0x35   :  { %v4238_v50 = vld [vmem:[#allocation8 + $0x780] sm:$0xf]  ;;  %v3983_v51 = vor.u32 %v5000_v49, %v3982_v48  ;;  %1809 = vmatpush.bf16.msrb.mxu1 %v3695_v58  ;;  %v4876_v48 = vld [vmem:[#allocation8 + $0x1c4] sm:$0xf] }
  0x36   :  { %v5064_v52 = vld [vmem:[#allocation8 + $0x79c] sm:$0xf0]  ;;  %v3504_v49 = vld [vmem:[#allocation8 + $0x1e0] sm:$0xf0] }
  0x37   :  { %v4239_v54 = vor.u32 %v5064_v52, %v4238_v50  ;;  %v3406_v55 = vld [vmem:[#allocation8 + $0x100] sm:$0xf]  ;;  %1821 = vmatpush.bf16.msrb.mxu2 %v3983_v51  ;;  %v4940_v50 = vld [vmem:[#allocation8 + $0x3c4] sm:$0xf] }
  0x38   :  { %v4856_v56 = vld [vmem:[#allocation8 + $0x11c] sm:$0xf0]  ;;  %v3760_v51 = vld [vmem:[#allocation8 + $0x3e0] sm:$0xf0] }
  0x39   :  { %v3950_v57 = vld [vmem:[#allocation8 + $0x540] sm:$0xf]  ;;  %1834 = vmatpush.bf16.msrb.mxu3 %v4239_v54  ;;  %v3407_v1 = vor.u32 %v4856_v56, %v3406_v55  ;;  %v4868_v55 = vld [vmem:[#allocation8 + $0x184] sm:$0xf] }
  0x3a   :  { %v4992_v59 = vld [vmem:[#allocation8 + $0x55c] sm:$0xf0] }
  0x3b   :  { %v4206_v60 = vld [vmem:[#allocation8 + $0x740] sm:$0xf]  ;;  %v3951_v0 = vor.u32 %v4992_v59, %v3950_v57  ;;  %1797 = vmatpush.bf16.msrb.mxu0 %v3407_v1  ;;  %v3472_v1 = vld [vmem:[#allocation8 + $0x1a0] sm:$0xf0] }
  0x3c   :  { %v5056_v61 = vld [vmem:[#allocation8 + $0x75c] sm:$0xf0] }
  0x3d   :  { %v3662_v62 = vld [vmem:[#allocation8 + $0x300] sm:$0xf]  ;;  %v4207_v2 = vor.u32 %v5056_v61, %v4206_v60  ;;  %1822 = vmatpush.bf16.msrb.mxu2 %v3951_v0  ;;  %v3507_v60 = vor.u32 %v4876_v48, %v3504_v49  ;;  %v3763_v0 = vor.u32 %v4940_v50, %v3760_v51  ;;  %v4836_v48 = vld [vmem:[#allocation8 + $0x84] sm:$0xf] }
  0x3e   :  { %v4920_v63 = vld [vmem:[#allocation8 + $0x31c] sm:$0xf0]  ;;  %v3344_v49 = vld [vmem:[#allocation8 + $0xa0] sm:$0xf0] }
  0x3f   :  { %v3374_v3 = vld [vmem:[#allocation8 + $0xc0] sm:$0xf]  ;;  %v3663_v6 = vor.u32 %v4920_v63, %v3662_v62  ;;  %1835 = vmatpush.bf16.msrb.mxu3 %v4207_v2  ;;  %v5004_v62 = vld [vmem:[#allocation8 + $0x5c4] sm:$0xf] }
  0x40   :  { %v3918_v4 = vld [vmem:[#allocation8 + $0x500] sm:$0xf]  ;;  %v4016_v63 = vld [vmem:[#allocation8 + $0x5e0] sm:$0xf0] }
  0x41   :  { %v4984_v5 = vld [vmem:[#allocation8 + $0x51c] sm:$0xf0]  ;;  %1810 = vmatpush.bf16.msrb.mxu1 %v3663_v6  ;;  %v5068_v2 = vld [vmem:[#allocation8 + $0x7c4] sm:$0xf] }
  0x42   :  { %v4848_v7 = vld [vmem:[#allocation8 + $0xdc] sm:$0xf0]  ;;  %v3919_v12 = vor.u32 %v4984_v5, %v3918_v4  ;;  %v4932_v4 = vld [vmem:[#allocation8 + $0x384] sm:$0xf] }
  0x43   :  { %v4174_v8 = vld [vmem:[#allocation8 + $0x700] sm:$0xf]  ;;  %v3375_v13 = vor.u32 %v4848_v7, %v3374_v3  ;;  %v4272_v3 = vld [vmem:[#allocation8 + $0x7e0] sm:$0xf0] }
  0x44   :  { %v5048_v9 = vld [vmem:[#allocation8 + $0x71c] sm:$0xf0]  ;;  %1823 = vmatpush.bf16.msrb.mxu2 %v3919_v12  ;;  %v3728_v5 = vld [vmem:[#allocation8 + $0x3a0] sm:$0xf0] }
  0x45   :  { %v3630_v10 = vld [vmem:[#allocation8 + $0x2c0] sm:$0xf]  ;;  %v4175_v14 = vor.u32 %v5048_v9, %v4174_v8  ;;  %1798 = vmatpush.bf16.msrb.mxu0 %v3375_v13  ;;  %v4019_v8 = vor.u32 %v5004_v62, %v4016_v63  ;;  %v3475_v9 = vor.u32 %v4868_v55, %v3472_v1  ;;  %v4996_v12 = vld [vmem:[#allocation8 + $0x584] sm:$0xf] }
  0x46   :  { %v4912_v11 = vld [vmem:[#allocation8 + $0x2dc] sm:$0xf0]  ;;  %v3984_v13 = vld [vmem:[#allocation8 + $0x5a0] sm:$0xf0] }
  0x47   :  { %v3342_v15 = vld [vmem:[#allocation8 + $0x80] sm:$0xf]  ;;  %v3631_v18 = vor.u32 %v4912_v11, %v3630_v10  ;;  %1836 = vmatpush.bf16.msrb.mxu3 %v4175_v14  ;;  %v4275_v10 = vor.u32 %v5068_v2, %v4272_v3  ;;  %v4860_v11 = vld [vmem:[#allocation8 + $0x144] sm:$0xf]  ;;  %v3731_v14 = vor.u32 %v4932_v4, %v3728_v5 }
  0x48   :  { %v3886_v16 = vld [vmem:[#allocation8 + $0x4c0] sm:$0xf]  ;;  %v4900_v50 = vld [vmem:[#allocation8 + $0x284] sm:$0xf] }
  0x49   :  { %v4976_v17 = vld [vmem:[#allocation8 + $0x4dc] sm:$0xf0]  ;;  %1811 = vmatpush.bf16.msrb.mxu1 %v3631_v18  ;;  %v4924_v18 = vld [vmem:[#allocation8 + $0x344] sm:$0xf] }
  0x4a   :  { %v4840_v19 = vld [vmem:[#allocation8 + $0x9c] sm:$0xf0]  ;;  %v3887_v24 = vor.u32 %v4976_v17, %v3886_v16  ;;  %v5060_v16 = vld [vmem:[#allocation8 + $0x784] sm:$0xf] }
  0x4b   :  { %v4142_v20 = vld [vmem:[#allocation8 + $0x6c0] sm:$0xf]  ;;  %v3343_v25 = vor.u32 %v4840_v19, %v3342_v15  ;;  %v3440_v15 = vld [vmem:[#allocation8 + $0x160] sm:$0xf0] }
  0x4c   :  { %v5040_v21 = vld [vmem:[#allocation8 + $0x6dc] sm:$0xf0]  ;;  %1824 = vmatpush.bf16.msrb.mxu2 %v3887_v24  ;;  %v4240_v17 = vld [vmem:[#allocation8 + $0x7a0] sm:$0xf0] }
  0x4d   :  { %v3598_v22 = vld [vmem:[#allocation8 + $0x280] sm:$0xf]  ;;  %v4143_v26 = vor.u32 %v5040_v21, %v4142_v20  ;;  %1799 = vmatpush.bf16.msrb.mxu0 %v3343_v25  ;;  %v3696_v19 = vld [vmem:[#allocation8 + $0x360] sm:$0xf0]  ;;  %v3987_v20 = vor.u32 %v4996_v12, %v3984_v13  ;;  %v3443_v21 = vor.u32 %v4860_v11, %v3440_v15 }
  0x4e   :  { %v4904_v23 = vld [vmem:[#allocation8 + $0x29c] sm:$0xf0]  ;;  %v4988_v24 = vld [vmem:[#allocation8 + $0x544] sm:$0xf] }
  0x4f   :  { %v3310_v27 = vld [vmem:[#allocation8 + $0x40] sm:$0xf]  ;;  %v3599_v30 = vor.u32 %v4904_v23, %v3598_v22  ;;  %1837 = vmatpush.bf16.msrb.mxu3 %v4143_v26  ;;  %v4243_v22 = vor.u32 %v5060_v16, %v4240_v17  ;;  %v4852_v23 = vld [vmem:[#allocation8 + $0x104] sm:$0xf]  ;;  %v3699_v26 = vor.u32 %v4924_v18, %v3696_v19 }
  0x50   :  { %v3854_v28 = vld [vmem:[#allocation8 + $0x480] sm:$0xf]  ;;  %v3952_v25 = vld [vmem:[#allocation8 + $0x560] sm:$0xf0] }
  0x51   :  { %v4968_v29 = vld [vmem:[#allocation8 + $0x49c] sm:$0xf0]  ;;  %1812 = vmatpush.bf16.msrb.mxu1 %v3599_v30  ;;  %v4916_v30 = vld [vmem:[#allocation8 + $0x304] sm:$0xf] }
  0x52   :  { %v4832_v31 = vld [vmem:[#allocation8 + $0x5c] sm:$0xf0]  ;;  %v3855_v36 = vor.u32 %v4968_v29, %v3854_v28  ;;  %v5052_v28 = vld [vmem:[#allocation8 + $0x744] sm:$0xf] }
  0x53   :  { %v4110_v32 = vld [vmem:[#allocation8 + $0x680] sm:$0xf]  ;;  %v3311_v38 = vor.u32 %v4832_v31, %v3310_v27  ;;  %v3408_v27 = vld [vmem:[#allocation8 + $0x120] sm:$0xf0] }
  0x54   :  { %v5032_v33 = vld [vmem:[#allocation8 + $0x69c] sm:$0xf0]  ;;  %1825 = vmatpush.bf16.msrb.mxu2 %v3855_v36  ;;  %v4208_v29 = vld [vmem:[#allocation8 + $0x760] sm:$0xf0] }
  0x55   :  { %v3566_v34 = vld [vmem:[#allocation8 + $0x240] sm:$0xf]  ;;  %v4111_v39 = vor.u32 %v5032_v33, %v4110_v32  ;;  %1800 = vmatpush.bf16.msrb.mxu0 %v3311_v38  ;;  %v3664_v31 = vld [vmem:[#allocation8 + $0x320] sm:$0xf0]  ;;  %v3955_v32 = vor.u32 %v4988_v24, %v3952_v25  ;;  %v3411_v33 = vor.u32 %v4852_v23, %v3408_v27 }
  0x56   :  { %v4896_v35 = vld [vmem:[#allocation8 + $0x25c] sm:$0xf0]  ;;  %v4980_v36 = vld [vmem:[#allocation8 + $0x504] sm:$0xf]  ;;  %v3667_v38 = vor.u32 %v4916_v30, %v3664_v31 }
  0x57   :  { %v3278_v37 = vld [vmem:[#allocation8] sm:$0xf]  ;;  %v3567_v43 = vor.u32 %v4896_v35, %v3566_v34  ;;  %1838 = vmatpush.bf16.msrb.mxu3 %v4111_v39  ;;  %v4211_v34 = vor.u32 %v5052_v28, %v4208_v29  ;;  %v4844_v35 = vld [vmem:[#allocation8 + $0xc4] sm:$0xf] }
  0x58   :  { %v4824_v40 = vld [vmem:[#allocation8 + $0x1c] sm:$0xf0]  ;;  %v3376_v39 = vld [vmem:[#allocation8 + $0xe0] sm:$0xf0] }
  0x59   :  { %v3822_v41 = vld [vmem:[#allocation8 + $0x440] sm:$0xf]  ;;  %v3279_v53 = vor.u32 %v4824_v40, %v3278_v37  ;;  %1813 = vmatpush.bf16.msrb.mxu1 %v3567_v43  ;;  %v3920_v37 = vld [vmem:[#allocation8 + $0x520] sm:$0xf0] }
  0x5a   :  { %v4960_v42 = vld [vmem:[#allocation8 + $0x45c] sm:$0xf0]  ;;  %v5044_v40 = vld [vmem:[#allocation8 + $0x704] sm:$0xf] }
  0x5b   :  { %v3534_v44 = vld [vmem:[#allocation8 + $0x200] sm:$0xf]  ;;  %v3823_v52 = vor.u32 %v4960_v42, %v3822_v41  ;;  %1801 = vmatpush.bf16.msrb.mxu0 %v3279_v53  ;;  %v4176_v41 = vld [vmem:[#allocation8 + $0x720] sm:$0xf0] }
  0x5c   :  { %v4078_v45 = vld [vmem:[#allocation8 + $0x640] sm:$0xf]  ;;  %v4908_v42 = vld [vmem:[#allocation8 + $0x2c4] sm:$0xf] }
  0x5d   :  { %v5024_v46 = vld [vmem:[#allocation8 + $0x65c] sm:$0xf0]  ;;  %1826 = vmatpush.bf16.msrb.mxu2 %v3823_v52  ;;  %v3632_v43 = vld [vmem:[#allocation8 + $0x2e0] sm:$0xf0]  ;;  %v3347_v52 = vor.u32 %v4836_v48, %v3344_v49  ;;  %v4937_v48 = vld [vmem:[#allocation8 + $0x3a4] sm:$0xf0] }
  0x5e   :  { %v4888_v47 = vld [vmem:[#allocation8 + $0x21c] sm:$0xf0]  ;;  %v4079_v54 = vor.u32 %v5024_v46, %v4078_v45  ;;  %v3379_v45 = vor.u32 %v4844_v35, %v3376_v39  ;;  %v4179_v46 = vor.u32 %v5044_v40, %v4176_v41  ;;  %v3600_v51 = vld [vmem:[#allocation8 + $0x2a0] sm:$0xf0]  ;;  %v3766_v35 = vld [vmem:[#allocation8 + $0x3c8] sm:$0xf] }
  0x5f   :  { %v3790_v56 = vld [vmem:[#allocation8 + $0x400] sm:$0xf]  ;;  %v3535_v59 = vor.u32 %v4888_v47, %v3534_v44  ;;  %1846 = vmatpush.bf16.msra.mxu0 %v3507_v60  ;;  %v3923_v44 = vor.u32 %v4980_v36, %v3920_v37  ;;  %v3635_v47 = vor.u32 %v4908_v42, %v3632_v43  ;;  %v3603_v53 = vor.u32 %v4900_v50, %v3600_v51  ;;  %v3888_v55 = vld [vmem:[#allocation8 + $0x4e0] sm:$0xf0]  ;;  %v4945_v36 = vld [vmem:[#allocation8 + $0x3e4] sm:$0xf0] }
  0x60   :  { %v4952_v57 = vld [vmem:[#allocation8 + $0x41c] sm:$0xf0]  ;;  %1839 = vmatpush.bf16.msrb.mxu3 %v4079_v54  ;;  %v4972_v54 = vld [vmem:[#allocation8 + $0x4c4] sm:$0xf]  ;;  %v3767_v43 = vor.u32 %v4945_v36, %v3766_v35 }
  0x61   :  { %v4046_v58 = vld [vmem:[#allocation8 + $0x600] sm:$0xf]  ;;  %v3791_v6 = vor.u32 %v4952_v57, %v3790_v56  ;;  %1814 = vmatpush.bf16.msrb.mxu1 %v3535_v59  ;;  %v5036_v56 = vld [vmem:[#allocation8 + $0x6c4] sm:$0xf]  ;;  %v3891_v57 = vor.u32 %v4972_v54, %v3888_v55  ;;  %v4022_v54 = vld [vmem:[#allocation8 + $0x5c8] sm:$0xf] }
  0x62   :  { %v5016_v61 = vld [vmem:[#allocation8 + $0x61c] sm:$0xf0]  ;;  %v4828_v60 = vld [vmem:[#allocation8 + $0x44] sm:$0xf]  ;;  %v5009_v55 = vld [vmem:[#allocation8 + $0x5e4] sm:$0xf0] }
  0x63   :  { %v4047_v7 = vor.u32 %v5016_v61, %v4046_v58  ;;  %1827 = vmatpush.bf16.msrb.mxu2 %v3791_v6  ;;  %1847 = vmatpush.bf16.msra.mxu0 %v3475_v9  ;;  %v4144_v58 = vld [vmem:[#allocation8 + $0x6e0] sm:$0xf0] }
  0x64   :  { %v4147_v59 = vor.u32 %v5036_v56, %v4144_v58  ;;  %v3312_v61 = vld [vmem:[#allocation8 + $0x60] sm:$0xf0]  ;;  %v4278_v56 = vld [vmem:[#allocation8 + $0x7c8] sm:$0xf] }
  0x65   :  { %1859 = vmatpush.bf16.msra.mxu1 %v3763_v0  ;;  %1840 = vmatpush.bf16.msrb.mxu3 %v4047_v7  ;;  %v3315_v62 = vor.u32 %v4828_v60, %v3312_v61  ;;  %v4892_v63 = vld [vmem:[#allocation8 + $0x244] sm:$0xf]  ;;  %v5073_v60 = vld [vmem:[#allocation8 + $0x7e4] sm:$0xf0] }
  0x66   :  { %v3568_v0 = vld [vmem:[#allocation8 + $0x260] sm:$0xf0]  ;;  %v3446_v61 = vld [vmem:[#allocation8 + $0x148] sm:$0xf] }
  0x67   :  { %1872 = vmatpush.bf16.msra.mxu2 %v4019_v8  ;;  %1848 = vmatpush.bf16.msra.mxu0 %v3443_v21  ;;  %v3571_v1 = vor.u32 %v4892_v63, %v3568_v0  ;;  %v4964_v2 = vld [vmem:[#allocation8 + $0x484] sm:$0xf]  ;;  %v3702_v0 = vld [vmem:[#allocation8 + $0x348] sm:$0xf] }
  0x68   :  { %v3856_v3 = vld [vmem:[#allocation8 + $0x4a0] sm:$0xf0] }
  0x69   :  { %1885 = vmatpush.bf16.msra.mxu3 %v4275_v10  ;;  %1860 = vmatpush.bf16.msra.mxu1 %v3731_v14  ;;  %v5028_v4 = vld [vmem:[#allocation8 + $0x684] sm:$0xf]  ;;  %v3859_v5 = vor.u32 %v4964_v2, %v3856_v3  ;;  %v4023_v3 = vor.u32 %v5009_v55, %v4022_v54  ;;  %v4833_v54 = vld [vmem:[#allocation8 + $0x64] sm:$0xf0] }
  0x6a   :  { %v4112_v6 = vld [vmem:[#allocation8 + $0x6a0] sm:$0xf0]  ;;  %v3574_v55 = vld [vmem:[#allocation8 + $0x248] sm:$0xf] }
  0x6b   :  { %1873 = vmatpush.bf16.msra.mxu2 %v3987_v20  ;;  %1849 = vmatpush.bf16.msra.mxu0 %v3411_v33  ;;  %v4115_v7 = vor.u32 %v5028_v4, %v4112_v6  ;;  %v4820_v8 = vld [vmem:[#allocation8 + $0x4] sm:$0xf]  ;;  %v4881_v33 = vld [vmem:[#allocation8 + $0x1e4] sm:$0xf0] }
  0x6c   :  { %v3280_v9 = vld [vmem:[#allocation8 + $0x20] sm:$0xf0] }
  0x6d   :  { %1886 = vmatpush.bf16.msra.mxu3 %v4243_v22  ;;  %1861 = vmatpush.bf16.msra.mxu1 %v3699_v26  ;;  %v4884_v10 = vld [vmem:[#allocation8 + $0x204] sm:$0xf]  ;;  %v3283_v11 = vor.u32 %v4820_v8, %v3280_v9  ;;  %v126_v26 = vld [vmem:[#allocation7] sm:$0xf]  ;;  %v5001_v8 = vld [vmem:[#allocation8 + $0x5a4] sm:$0xf0] }
  0x6e   :  { %v3536_v12 = vld [vmem:[#allocation8 + $0x220] sm:$0xf0]  ;;  %v128_v27 = vperm.slane %v126_v26, 0  ;;  %v129_v28 = vperm.slane %v126_v26, 1  ;;  %v130_v39 = vperm.slane %v126_v26, 2  ;;  %v131_v42 = vperm.slane %v126_v26, 3 }
  0x6f   :  { %1874 = vmatpush.bf16.msra.mxu2 %v3955_v32  ;;  %1850 = vmatpush.bf16.msra.mxu0 %v3379_v45  ;;  %v3539_v13 = vor.u32 %v4884_v10, %v3536_v12  ;;  %v4956_v14 = vld [vmem:[#allocation8 + $0x444] sm:$0xf]  ;;  %v3510_v32 = vld [vmem:[#allocation8 + $0x1c8] sm:$0xf] }
  0x70   :  { %v3824_v15 = vld [vmem:[#allocation8 + $0x460] sm:$0xf0]  ;;  %v3511_v40 = vor.u32 %v4881_v33, %v3510_v32  ;;  %v4873_v45 = vld [vmem:[#allocation8 + $0x1a4] sm:$0xf0] }
  0x71   :  { %1887 = vmatpush.bf16.msra.mxu3 %v4211_v34  ;;  %1862 = vmatpush.bf16.msra.mxu1 %v3667_v38  ;;  %v3827_v16 = vor.u32 %v4956_v14, %v3824_v15  ;;  %v5020_v17 = vld [vmem:[#allocation8 + $0x644] sm:$0xf]  ;;  %v4246_v9 = vld [vmem:[#allocation8 + $0x788] sm:$0xf] }
  0x72   :  { %v4080_v18 = vld [vmem:[#allocation8 + $0x660] sm:$0xf0]  ;;  %v5065_v12 = vld [vmem:[#allocation8 + $0x7a4] sm:$0xf0] }
  0x73   :  { %1875 = vmatpush.bf16.msra.mxu2 %v3923_v44  ;;  %1851 = vmatpush.bf16.msra.mxu0 %v3347_v52  ;;  %v4083_v19 = vor.u32 %v5020_v17, %v4080_v18  ;;  %v4948_v20 = vld [vmem:[#allocation8 + $0x404] sm:$0xf]  ;;  %v3478_v44 = vld [vmem:[#allocation8 + $0x188] sm:$0xf] }
  0x74   :  { %v3792_v21 = vld [vmem:[#allocation8 + $0x420] sm:$0xf0]  ;;  %v4857_v14 = vld [vmem:[#allocation8 + $0x124] sm:$0xf0] }
  0x75   :  { %1888 = vmatpush.bf16.msra.mxu3 %v4179_v46  ;;  %1863 = vmatpush.bf16.msra.mxu1 %v3635_v47  ;;  %v3795_v22 = vor.u32 %v4948_v20, %v3792_v21  ;;  %v5012_v23 = vld [vmem:[#allocation8 + $0x604] sm:$0xf]  ;;  %v3734_v47 = vld [vmem:[#allocation8 + $0x388] sm:$0xf]  ;;  %v4247_v20 = vor.u32 %v5065_v12, %v4246_v9  ;;  %v4941_v9 = vld [vmem:[#allocation8 + $0x3cc] sm:$0xf] }
  0x76   :  { %v4048_v24 = vld [vmem:[#allocation8 + $0x620] sm:$0xf0]  ;;  %v3670_v15 = vld [vmem:[#allocation8 + $0x308] sm:$0xf] }
  0x77   :  { %1876 = vmatpush.bf16.msra.mxu2 %v3891_v57  ;;  %1852 = vmatpush.bf16.msra.mxu0 %v3315_v62  ;;  %v4051_v25 = vor.u32 %v5012_v23, %v4048_v24  ;;  %v4865_v62 = vld [vmem:[#allocation8 + $0x164] sm:$0xf0] }
  0x78   :  { %v3447_v6 = vor.u32 %v4865_v62, %v3446_v61  ;;  %v4993_v23 = vld [vmem:[#allocation8 + $0x564] sm:$0xf0] }
  0x79   :  { %1864 = vmatpush.bf16.msra.mxu1 %v3603_v53  ;;  %1889 = vmatpush.bf16.msra.mxu3 %v4147_v59  ;;  %v3479_v53 = vor.u32 %v4873_v45, %v3478_v44  ;;  %v3735_v59 = vor.u32 %v4937_v48, %v3734_v47  ;;  %v5057_v26 = vld [vmem:[#allocation8 + $0x764] sm:$0xf0] }
  0x7a   :  { %v3926_v33 = vld [vmem:[#allocation8 + $0x508] sm:$0xf] }
  0x7b   :  { %1877 = vmatpush.bf16.msra.mxu2 %v3859_v5  ;;  %1853 = vmatpush.bf16.msra.mxu0 %v3283_v11  ;;  %v4279_v5 = vor.u32 %v5073_v60, %v4278_v56  ;;  %v3894_v47 = vld [vmem:[#allocation8 + $0x4c8] sm:$0xf] }
  0x7c   :  { %v4977_v48 = vld [vmem:[#allocation8 + $0x4e4] sm:$0xf0] }
  0x7d   :  { %1865 = vmatpush.bf16.msra.mxu1 %v3571_v1  ;;  %1890 = vmatpush.bf16.msra.mxu3 %v4115_v7  ;;  %v4929_v1 = vld [vmem:[#allocation8 + $0x364] sm:$0xf0] }
  0x7e   :  { %v3990_v7 = vld [vmem:[#allocation8 + $0x588] sm:$0xf]  ;;  %v3703_v11 = vor.u32 %v4929_v1, %v3702_v0 }
  0x7f   :  { %1878 = vmatpush.bf16.msra.mxu2 %v3827_v16  ;;  %v4921_v16 = vld [vmem:[#allocation8 + $0x324] sm:$0xf0]  ;;  %v3991_v18 = vor.u32 %v5001_v8, %v3990_v7  ;;  %v3512_v8 = vld [vmem:[#allocation8 + $0x1e8] sm:$0xf0] }
  0x80   :  { %v3671_v24 = vor.u32 %v4921_v16, %v3670_v15  ;;  %v4897_v56 = vld [vmem:[#allocation8 + $0x264] sm:$0xf0] }
  0x81   :  { %1866 = vmatpush.bf16.msra.mxu1 %v3539_v13  ;;  %1891 = vmatpush.bf16.msra.mxu3 %v4083_v19  ;;  %v3414_v13 = vld [vmem:[#allocation8 + $0x108] sm:$0xf] }
  0x82   :  { %v3415_v21 = vor.u32 %v4857_v14, %v3414_v13  ;;  %v4969_v60 = vld [vmem:[#allocation8 + $0x4a4] sm:$0xf0] }
  0x83   :  { %1879 = vmatpush.bf16.msra.mxu2 %v3795_v22  ;;  %v3958_v22 = vld [vmem:[#allocation8 + $0x548] sm:$0xf] }
  0x84   :  { %v4118_v61 = vld [vmem:[#allocation8 + $0x688] sm:$0xf] }
  0x85   :  { %1892 = vmatpush.bf16.msra.mxu3 %v4051_v25  ;;  %v4214_v25 = vld [vmem:[#allocation8 + $0x748] sm:$0xf] }
  0x86   :  { %v4215_v32 = vor.u32 %v5057_v26, %v4214_v25  ;;  %v5033_v0 = vld [vmem:[#allocation8 + $0x6a4] sm:$0xf0]  ;;  %v3736_v25 = vld [vmem:[#allocation8 + $0x3a8] sm:$0xf0] }
  0x87   :  { %v3286_v1 = vld [vmem:[#allocation8 + $0x8] sm:$0xf]  ;;  %v4119_v12 = vor.u32 %v5033_v0, %v4118_v61  ;;  %v4216_v0 = vld [vmem:[#allocation8 + $0x768] sm:$0xf0] }
  0x88   :  { %v3830_v13 = vld [vmem:[#allocation8 + $0x448] sm:$0xf] }
  0x89   :  { %v4961_v14 = vld [vmem:[#allocation8 + $0x464] sm:$0xf0] }
  0xa4   :  { %v189_v29 = vpop.f32.mrf.mxu0 }
  0xa5   :  { %v190_v30 = vadd.f32 %v189_v29, %v128_v27  ;;  %v202_v31 = vpop.f32.mrf.mxu1  ;;  %v3382_v27 = vld [vmem:[#allocation8 + $0xc8] sm:$0xf] }
  0xa6   :  { %v203_v34 = vadd.f32 %v202_v31, %v129_v28  ;;  %v4849_v28 = vld [vmem:[#allocation8 + $0xe4] sm:$0xf0]  ;;  %v3959_v31 = vor.u32 %v4993_v23, %v3958_v22  ;;  %v3831_v22 = vor.u32 %v4961_v14, %v3830_v13  ;;  %v3480_v23 = vld [vmem:[#allocation8 + $0x1a8] sm:$0xf0] }
  0xa7   :  { %v232_v37 = vmax.f32 %v190_v30, 0.0  ;;  %v3638_v29 = vld [vmem:[#allocation8 + $0x2c8] sm:$0xf]  ;;  %v3383_v35 = vor.u32 %v4849_v28, %v3382_v27  ;;  %v5045_v13 = vld [vmem:[#allocation8 + $0x70c] sm:$0xf] }
  0xa8   :  { %v233_v38 = vmax.f32 %v203_v34, 0.0  ;;  %v4913_v30 = vld [vmem:[#allocation8 + $0x2e4] sm:$0xf0]  ;;  %v4184_v14 = vld [vmem:[#allocation8 + $0x728] sm:$0xf0] }
  0xa9   :  { %v5479_v41 = vpack.c.bf16 %v232_v37, %v232_v37  ;;  %v4985_v34 = vld [vmem:[#allocation8 + $0x524] sm:$0xf0]  ;;  %v3639_v36 = vor.u32 %v4913_v30, %v3638_v29 }
  0xaa   :  { %v5481_v46 = vpack.c.bf16 %v233_v38, %v233_v38  ;;  %v4182_v37 = vld [vmem:[#allocation8 + $0x708] sm:$0xf]  ;;  %v3927_v44 = vor.u32 %v4985_v34, %v3926_v33 }
  0xab   :  { %1802 = vmatmul.bf16.vlgmr.msrb.gmra.mxu0 %v5479_v41  ;;  %v5049_v38 = vld [vmem:[#allocation8 + $0x724] sm:$0xf0] }
  0xac   :  { %v215_v49 = vpop.f32.mrf.mxu2  ;;  %1815 = vmatmul.bf16.vlgmr.msrb.gmra.mxu1 %v5481_v46  ;;  %1898 = vmatpush.bf16.msrb.mxu0 %v3511_v40  ;;  %v191_v52 = vpop.f32.mrf.mxu0  ;;  %v4841_v40 = vld [vmem:[#allocation8 + $0xa4] sm:$0xf0]  ;;  %v4183_v45 = vor.u32 %v5049_v38, %v4182_v37  ;;  %v4861_v37 = vld [vmem:[#allocation8 + $0x14c] sm:$0xf] }
  0xad   :  { %v216_v50 = vadd.f32 %v215_v49, %v130_v39  ;;  %v228_v51 = vpop.f32.mrf.mxu3  ;;  %1911 = vmatpush.bf16.msrb.mxu1 %v3767_v43  ;;  %v204_v58 = vpop.f32.mrf.mxu1  ;;  %v3350_v39 = vld [vmem:[#allocation8 + $0x88] sm:$0xf] }
  0xae   :  { %v229_v57 = vadd.f32 %v228_v51, %v131_v42  ;;  %v3606_v42 = vld [vmem:[#allocation8 + $0x288] sm:$0xf]  ;;  %v3351_v49 = vor.u32 %v4841_v40, %v3350_v39  ;;  %v3448_v39 = vld [vmem:[#allocation8 + $0x168] sm:$0xf0] }
  0xaf   :  { %v234_v63 = vmax.f32 %v216_v50, 0.0  ;;  %v4905_v43 = vld [vmem:[#allocation8 + $0x2a4] sm:$0xf0]  ;;  %v4925_v40 = vld [vmem:[#allocation8 + $0x34c] sm:$0xf] }
  0xb0   :  { %v235_v2 = vmax.f32 %v229_v57, 0.0  ;;  %1899 = vmatpush.bf16.msrb.mxu0 %v3479_v53  ;;  %v3607_v50 = vor.u32 %v4905_v43, %v3606_v42  ;;  %v4150_v51 = vld [vmem:[#allocation8 + $0x6c8] sm:$0xf]  ;;  %v3895_v57 = vor.u32 %v4977_v48, %v3894_v47  ;;  %v3704_v42 = vld [vmem:[#allocation8 + $0x368] sm:$0xf0] }
  0xb1   :  { %v5485_v4 = vpack.c.bf16 %v234_v63, %v234_v63  ;;  %1912 = vmatpush.bf16.msrb.mxu1 %v3735_v59  ;;  %v5041_v52 = vld [vmem:[#allocation8 + $0x6e4] sm:$0xf0]  ;;  %v3575_v63 = vor.u32 %v4897_v56, %v3574_v55  ;;  %v4997_v47 = vld [vmem:[#allocation8 + $0x58c] sm:$0xf] }
  0xb2   :  { %v5487_v10 = vpack.c.bf16 %v235_v2, %v235_v2  ;;  %v3318_v53 = vld [vmem:[#allocation8 + $0x48] sm:$0xf]  ;;  %v4151_v58 = vor.u32 %v5041_v52, %v4150_v51  ;;  %v3992_v48 = vld [vmem:[#allocation8 + $0x5a8] sm:$0xf0] }
  0xb3   :  { %1828 = vmatmul.bf16.vlgmr.msrb.gmra.mxu2 %v5485_v4  ;;  %v3862_v59 = vld [vmem:[#allocation8 + $0x488] sm:$0xf]  ;;  %v3319_v62 = vor.u32 %v4833_v54, %v3318_v53  ;;  %v5061_v51 = vld [vmem:[#allocation8 + $0x78c] sm:$0xf] }
  0xb4   :  { %1841 = vmatmul.bf16.vlgmr.msrb.gmra.mxu3 %v5487_v10  ;;  %1924 = vmatpush.bf16.msrb.mxu2 %v4023_v3  ;;  %v217_v17 = vpop.f32.mrf.mxu2  ;;  %v4825_v2 = vld [vmem:[#allocation8 + $0x24] sm:$0xf0]  ;;  %v3863_v7 = vor.u32 %v4969_v60, %v3862_v59  ;;  %v4248_v52 = vld [vmem:[#allocation8 + $0x7a8] sm:$0xf0] }
  0xb5   :  { %1937 = vmatpush.bf16.msrb.mxu3 %v4279_v5  ;;  %v230_v19 = vpop.f32.mrf.mxu3  ;;  %1900 = vmatpush.bf16.msrb.mxu0 %v3447_v6  ;;  %v3542_v3 = vld [vmem:[#allocation8 + $0x208] sm:$0xf]  ;;  %v4877_v6 = vld [vmem:[#allocation8 + $0x1cc] sm:$0xf]  ;;  %v3287_v15 = vor.u32 %v4825_v2, %v3286_v1 }
  0xb6   :  { %1913 = vmatpush.bf16.msrb.mxu1 %v3703_v11  ;;  %v4889_v5 = vld [vmem:[#allocation8 + $0x224] sm:$0xf0]  ;;  %v3768_v11 = vld [vmem:[#allocation8 + $0x3e8] sm:$0xf0]  ;;  %v3515_v19 = vor.u32 %v4877_v6, %v3512_v8 }
  0xb7   :  { %v3543_v16 = vor.u32 %v4889_v5, %v3542_v3  ;;  %v4086_v17 = vld [vmem:[#allocation8 + $0x648] sm:$0xf]  ;;  %v4853_v53 = vld [vmem:[#allocation8 + $0x10c] sm:$0xf] }
  0xb8   :  { %1925 = vmatpush.bf16.msrb.mxu2 %v3991_v18  ;;  %v5025_v18 = vld [vmem:[#allocation8 + $0x664] sm:$0xf0]  ;;  %v3416_v54 = vld [vmem:[#allocation8 + $0x128] sm:$0xf0] }
  0xb9   :  { %1938 = vmatpush.bf16.msrb.mxu3 %v4247_v20  ;;  %1901 = vmatpush.bf16.msrb.mxu0 %v3415_v21  ;;  %v3771_v20 = vor.u32 %v4941_v9, %v3768_v11  ;;  %v4869_v21 = vld [vmem:[#allocation8 + $0x18c] sm:$0xf]  ;;  %v4087_v26 = vor.u32 %v5025_v18, %v4086_v17  ;;  %v3798_v27 = vld [vmem:[#allocation8 + $0x408] sm:$0xf]  ;;  %v3419_v61 = vor.u32 %v4853_v53, %v3416_v54 }
  0xba   :  { %1914 = vmatpush.bf16.msrb.mxu1 %v3671_v24  ;;  %v4933_v24 = vld [vmem:[#allocation8 + $0x38c] sm:$0xf]  ;;  %v4953_v28 = vld [vmem:[#allocation8 + $0x424] sm:$0xf0]  ;;  %v3483_v33 = vor.u32 %v4869_v21, %v3480_v23 }
  0xbb   :  { %1854 = vmatmul.bf16.vlgmr.msra.gmra.mxu0 %v5479_v41  ;;  %v4054_v29 = vld [vmem:[#allocation8 + $0x608] sm:$0xf]  ;;  %v3739_v34 = vor.u32 %v4933_v24, %v3736_v25  ;;  %v3799_v38 = vor.u32 %v4953_v28, %v3798_v27  ;;  %v4917_v55 = vld [vmem:[#allocation8 + $0x30c] sm:$0xf] }
  0xbc   :  { %1926 = vmatpush.bf16.msrb.mxu2 %v3959_v31  ;;  %1867 = vmatmul.bf16.vlgmr.msra.gmra.mxu1 %v5481_v46  ;;  %v5017_v30 = vld [vmem:[#allocation8 + $0x624] sm:$0xf0]  ;;  %v5005_v31 = vld [vmem:[#allocation8 + $0x5cc] sm:$0xf] }
  0xbd   :  { %1939 = vmatpush.bf16.msrb.mxu3 %v4215_v32  ;;  %1902 = vmatpush.bf16.msrb.mxu0 %v3383_v35  ;;  %v4024_v32 = vld [vmem:[#allocation8 + $0x5e8] sm:$0xf0]  ;;  %v4055_v43 = vor.u32 %v5017_v30, %v4054_v29 }
  0xbe   :  { %1915 = vmatpush.bf16.msrb.mxu1 %v3639_v36  ;;  %v5069_v35 = vld [vmem:[#allocation8 + $0x7cc] sm:$0xf] }
  0xbf   :  { %v4280_v36 = vld [vmem:[#allocation8 + $0x7e8] sm:$0xf0] }
  0xc0   :  { %1927 = vmatpush.bf16.msrb.mxu2 %v3927_v44  ;;  %v4027_v44 = vor.u32 %v5005_v31, %v4024_v32  ;;  %v3672_v56 = vld [vmem:[#allocation8 + $0x328] sm:$0xf0] }
  0xc1   :  { %1940 = vmatpush.bf16.msrb.mxu3 %v4183_v45  ;;  %1903 = vmatpush.bf16.msrb.mxu0 %v3351_v49  ;;  %v4283_v45 = vor.u32 %v5069_v35, %v4280_v36  ;;  %v3451_v49 = vor.u32 %v4861_v37, %v3448_v39  ;;  %v4989_v59 = vld [vmem:[#allocation8 + $0x54c] sm:$0xf] }
  0xc2   :  { %1916 = vmatpush.bf16.msrb.mxu1 %v3607_v50  ;;  %v3707_v50 = vor.u32 %v4925_v40, %v3704_v42  ;;  %v3960_v60 = vld [vmem:[#allocation8 + $0x568] sm:$0xf0] }
  0xc3   :  { %1880 = vmatmul.bf16.vlgmr.msra.gmra.mxu2 %v5485_v4  ;;  %v4845_v1 = vld [vmem:[#allocation8 + $0xcc] sm:$0xf]  ;;  %v3963_v6 = vor.u32 %v4989_v59, %v3960_v60  ;;  %v3486_v59 = vld [vmem:[#allocation8 + $0x190] sm:$0xf] }
  0xc4   :  { %1893 = vmatmul.bf16.vlgmr.msra.gmra.mxu3 %v5487_v10  ;;  %1928 = vmatpush.bf16.msrb.mxu2 %v3895_v57  ;;  %v3995_v57 = vor.u32 %v4997_v47, %v3992_v48  ;;  %v3384_v2 = vld [vmem:[#allocation8 + $0xe8] sm:$0xf0]  ;;  %v4882_v47 = vld [vmem:[#allocation8 + $0x1ec] sm:$0xf0] }
  0xc5   :  { %1941 = vmatpush.bf16.msrb.mxu3 %v4151_v58  ;;  %1904 = vmatpush.bf16.msrb.mxu0 %v3319_v62  ;;  %v4251_v58 = vor.u32 %v5061_v51, %v4248_v52  ;;  %v3675_v62 = vor.u32 %v4917_v55, %v3672_v56  ;;  %v4909_v3 = vld [vmem:[#allocation8 + $0x2cc] sm:$0xf]  ;;  %v3387_v11 = vor.u32 %v4845_v1, %v3384_v2  ;;  %v3774_v48 = vld [vmem:[#allocation8 + $0x3d0] sm:$0xf] }
  0xc6   :  { %1917 = vmatpush.bf16.msrb.mxu1 %v3575_v63  ;;  %v5053_v63 = vld [vmem:[#allocation8 + $0x74c] sm:$0xf] }
  0xc7   :  { %v3640_v5 = vld [vmem:[#allocation8 + $0x2e8] sm:$0xf0] }
  0xc8   :  { %1929 = vmatpush.bf16.msrb.mxu2 %v3863_v7  ;;  %v4219_v7 = vor.u32 %v5053_v63, %v4216_v0  ;;  %v4981_v8 = vld [vmem:[#allocation8 + $0x50c] sm:$0xf]  ;;  %v4938_v63 = vld [vmem:[#allocation8 + $0x3ac] sm:$0xf0] }
  0xc9   :  { %1942 = vmatpush.bf16.msrb.mxu3 %v4119_v12  ;;  %1905 = vmatpush.bf16.msrb.mxu0 %v3287_v15  ;;  %v3928_v9 = vld [vmem:[#allocation8 + $0x528] sm:$0xf0]  ;;  %v3643_v12 = vor.u32 %v4909_v3, %v3640_v5 }
  0xca   :  { %1918 = vmatpush.bf16.msrb.mxu1 %v3543_v16  ;;  %v4837_v15 = vld [vmem:[#allocation8 + $0x8c] sm:$0xf] }
  0xcb   :  { %v3352_v16 = vld [vmem:[#allocation8 + $0xa8] sm:$0xf0] }
  0xcc   :  { %1930 = vmatpush.bf16.msrb.mxu2 %v3831_v22  ;;  %1906 = vmatmul.bf16.vlgmr.msrb.gmra.mxu0 %v5479_v41  ;;  %v4901_v17 = vld [vmem:[#allocation8 + $0x28c] sm:$0xf]  ;;  %v3355_v23 = vor.u32 %v4837_v15, %v3352_v16  ;;  %v4866_v15 = vld [vmem:[#allocation8 + $0x16c] sm:$0xf0] }
  0xcd   :  { %1950 = vmatpush.bf16.msra.mxu0 %v3515_v19  ;;  %1943 = vmatpush.bf16.msrb.mxu3 %v4087_v26  ;;  %v3608_v18 = vld [vmem:[#allocation8 + $0x2a8] sm:$0xf0]  ;;  %v3931_v19 = vor.u32 %v4981_v8, %v3928_v9 }
  0xce   :  { %1963 = vmatpush.bf16.msra.mxu1 %v3771_v20  ;;  %v4187_v20 = vor.u32 %v5045_v13, %v4184_v14  ;;  %v4973_v21 = vld [vmem:[#allocation8 + $0x4cc] sm:$0xf]  ;;  %v3611_v24 = vor.u32 %v4901_v17, %v3608_v18  ;;  %v3454_v14 = vld [vmem:[#allocation8 + $0x150] sm:$0xf] }
  0xcf   :  { %1919 = vmatmul.bf16.vlgmr.msrb.gmra.mxu1 %v5481_v46  ;;  %v3896_v22 = vld [vmem:[#allocation8 + $0x4e8] sm:$0xf0]  ;;  %v3710_v18 = vld [vmem:[#allocation8 + $0x350] sm:$0xf] }
  0xd0   :  { %1931 = vmatpush.bf16.msrb.mxu2 %v3799_v38  ;;  %v5037_v25 = vld [vmem:[#allocation8 + $0x6cc] sm:$0xf]  ;;  %v3899_v31 = vor.u32 %v4973_v21, %v3896_v22  ;;  %v3998_v21 = vld [vmem:[#allocation8 + $0x590] sm:$0xf] }
  0xd1   :  { %1951 = vmatpush.bf16.msra.mxu0 %v3483_v33  ;;  %1944 = vmatpush.bf16.msrb.mxu3 %v4055_v43  ;;  %v4152_v26 = vld [vmem:[#allocation8 + $0x6e8] sm:$0xf0]  ;;  %v5002_v22 = vld [vmem:[#allocation8 + $0x5ac] sm:$0xf0] }
  0xd2   :  { %1964 = vmatpush.bf16.msra.mxu1 %v3739_v34  ;;  %v4829_v27 = vld [vmem:[#allocation8 + $0x4c] sm:$0xf]  ;;  %v4155_v32 = vor.u32 %v5037_v25, %v4152_v26  ;;  %v5066_v25 = vld [vmem:[#allocation8 + $0x7ac] sm:$0xf0] }
  0xd3   :  { %1932 = vmatmul.bf16.vlgmr.msrb.gmra.mxu2 %v5485_v4  ;;  %v3320_v28 = vld [vmem:[#allocation8 + $0x68] sm:$0xf0] }
  0xd4   :  { %1976 = vmatpush.bf16.msra.mxu2 %v4027_v44  ;;  %1945 = vmatmul.bf16.vlgmr.msrb.gmra.mxu3 %v5487_v10  ;;  %v4893_v29 = vld [vmem:[#allocation8 + $0x24c] sm:$0xf]  ;;  %v3323_v36 = vor.u32 %v4829_v27, %v3320_v28  ;;  %v3518_v44 = vld [vmem:[#allocation8 + $0x1d0] sm:$0xf] }
  0xd5   :  { %1989 = vmatpush.bf16.msra.mxu3 %v4283_v45  ;;  %1952 = vmatpush.bf16.msra.mxu0 %v3451_v49  ;;  %v3576_v30 = vld [vmem:[#allocation8 + $0x268] sm:$0xf0]  ;;  %v4946_v49 = vld [vmem:[#allocation8 + $0x3ec] sm:$0xf0] }
  0xd6   :  { %1965 = vmatpush.bf16.msra.mxu1 %v3707_v50  ;;  %v4965_v33 = vld [vmem:[#allocation8 + $0x48c] sm:$0xf]  ;;  %v3579_v37 = vor.u32 %v4893_v29, %v3576_v30  ;;  %v3422_v27 = vld [vmem:[#allocation8 + $0x110] sm:$0xf]  ;;  %v3999_v29 = vor.u32 %v5002_v22, %v3998_v21  ;;  %v3520_v21 = vld [vmem:[#allocation8 + $0x1f0] sm:$0xf0] }
  0xd7   :  { %v3864_v34 = vld [vmem:[#allocation8 + $0x4a8] sm:$0xf0]  ;;  %v4858_v28 = vld [vmem:[#allocation8 + $0x12c] sm:$0xf0]  ;;  %v4942_v22 = vld [vmem:[#allocation8 + $0x3d4] sm:$0xf] }
  0xd8   :  { %1977 = vmatpush.bf16.msra.mxu2 %v3995_v57  ;;  %v5029_v35 = vld [vmem:[#allocation8 + $0x68c] sm:$0xf]  ;;  %v3867_v45 = vor.u32 %v4965_v33, %v3864_v34  ;;  %v3519_v57 = vor.u32 %v4882_v47, %v3518_v44  ;;  %v3678_v30 = vld [vmem:[#allocation8 + $0x310] sm:$0xf] }
  0xd9   :  { %1990 = vmatpush.bf16.msra.mxu3 %v4251_v58  ;;  %1953 = vmatpush.bf16.msra.mxu0 %v3419_v61  ;;  %v4120_v38 = vld [vmem:[#allocation8 + $0x6a8] sm:$0xf0]  ;;  %v3775_v58 = vor.u32 %v4946_v49, %v3774_v48  ;;  %v4874_v61 = vld [vmem:[#allocation8 + $0x1ac] sm:$0xf0] }
  0xda   :  { %1966 = vmatpush.bf16.msra.mxu1 %v3675_v62  ;;  %v4821_v39 = vld [vmem:[#allocation8 + $0xc] sm:$0xf]  ;;  %v4123_v50 = vor.u32 %v5029_v35, %v4120_v38  ;;  %v3742_v62 = vld [vmem:[#allocation8 + $0x390] sm:$0xf]  ;;  %v3487_v8 = vor.u32 %v4874_v61, %v3486_v59  ;;  %v3423_v35 = vor.u32 %v4858_v28, %v3422_v27 }
  0xdb   :  { %v3288_v40 = vld [vmem:[#allocation8 + $0x28] sm:$0xf0]  ;;  %v3743_v9 = vor.u32 %v4938_v63, %v3742_v62  ;;  %v3966_v33 = vld [vmem:[#allocation8 + $0x550] sm:$0xf] }
  0xdc   :  { %1978 = vmatpush.bf16.msra.mxu2 %v3963_v6  ;;  %v4885_v42 = vld [vmem:[#allocation8 + $0x20c] sm:$0xf]  ;;  %v3291_v53 = vor.u32 %v4821_v39, %v3288_v40  ;;  %v4030_v6 = vld [vmem:[#allocation8 + $0x5d0] sm:$0xf] }
  0xdd   :  { %1991 = vmatpush.bf16.msra.mxu3 %v4219_v7  ;;  %1954 = vmatpush.bf16.msra.mxu0 %v3387_v11  ;;  %v3544_v43 = vld [vmem:[#allocation8 + $0x228] sm:$0xf0]  ;;  %v5010_v7 = vld [vmem:[#allocation8 + $0x5ec] sm:$0xf0] }
  0xde   :  { %1967 = vmatpush.bf16.msra.mxu1 %v3643_v12  ;;  %v4957_v51 = vld [vmem:[#allocation8 + $0x44c] sm:$0xf]  ;;  %v3547_v54 = vor.u32 %v4885_v42, %v3544_v43  ;;  %v4286_v11 = vld [vmem:[#allocation8 + $0x7d0] sm:$0xf]  ;;  %v4031_v17 = vor.u32 %v5010_v7, %v4030_v6 }
  0xdf   :  { %v3832_v52 = vld [vmem:[#allocation8 + $0x468] sm:$0xf0]  ;;  %v5074_v12 = vld [vmem:[#allocation8 + $0x7ec] sm:$0xf0] }
  0xe0   :  { %1979 = vmatpush.bf16.msra.mxu2 %v3931_v19  ;;  %v5021_v55 = vld [vmem:[#allocation8 + $0x64c] sm:$0xf]  ;;  %v3835_v60 = vor.u32 %v4957_v51, %v3832_v52  ;;  %v4930_v19 = vld [vmem:[#allocation8 + $0x36c] sm:$0xf0] }
  0xe1   :  { %1992 = vmatpush.bf16.msra.mxu3 %v4187_v20  ;;  %1955 = vmatpush.bf16.msra.mxu0 %v3355_v23  ;;  %v4088_v56 = vld [vmem:[#allocation8 + $0x668] sm:$0xf0]  ;;  %v4287_v20 = vor.u32 %v5074_v12, %v4286_v11  ;;  %v3455_v23 = vor.u32 %v4866_v15, %v3454_v14  ;;  %v3711_v26 = vor.u32 %v4930_v19, %v3710_v18  ;;  %v4994_v34 = vld [vmem:[#allocation8 + $0x56c] sm:$0xf0] }
  0xe2   :  { %1968 = vmatpush.bf16.msra.mxu1 %v3611_v24  ;;  %v4091_v0 = vor.u32 %v5021_v55, %v4088_v56  ;;  %v4949_v1 = vld [vmem:[#allocation8 + $0x40c] sm:$0xf]  ;;  %v4254_v24 = vld [vmem:[#allocation8 + $0x790] sm:$0xf]  ;;  %v3967_v42 = vor.u32 %v4994_v34, %v3966_v33 }
  0xe3   :  { %v3800_v2 = vld [vmem:[#allocation8 + $0x428] sm:$0xf0]  ;;  %v3390_v39 = vld [vmem:[#allocation8 + $0xd0] sm:$0xf] }
  0xe4   :  { %1980 = vmatpush.bf16.msra.mxu2 %v3899_v31  ;;  %v5013_v3 = vld [vmem:[#allocation8 + $0x60c] sm:$0xf]  ;;  %v3803_v13 = vor.u32 %v4949_v1, %v3800_v2  ;;  %v4922_v31 = vld [vmem:[#allocation8 + $0x32c] sm:$0xf0] }
  0xe5   :  { %1993 = vmatpush.bf16.msra.mxu3 %v4155_v32  ;;  %1956 = vmatpush.bf16.msra.mxu0 %v3323_v36  ;;  %v4056_v5 = vld [vmem:[#allocation8 + $0x628] sm:$0xf0]  ;;  %v4255_v32 = vor.u32 %v5066_v25, %v4254_v24  ;;  %v4222_v36 = vld [vmem:[#allocation8 + $0x750] sm:$0xf]  ;;  %v3679_v38 = vor.u32 %v4922_v31, %v3678_v30  ;;  %v3776_v24 = vld [vmem:[#allocation8 + $0x3f0] sm:$0xf0] }
  0xe6   :  { %1969 = vmatpush.bf16.msra.mxu1 %v3579_v37  ;;  %v4059_v16 = vor.u32 %v5013_v3, %v4056_v5  ;;  %v5058_v37 = vld [vmem:[#allocation8 + $0x76c] sm:$0xf0]  ;;  %v3779_v33 = vor.u32 %v4942_v22, %v3776_v24  ;;  %v3936_v22 = vld [vmem:[#allocation8 + $0x530] sm:$0xf0] }
  0xe7   :  { %v4850_v40 = vld [vmem:[#allocation8 + $0xec] sm:$0xf0]  ;;  %v5046_v24 = vld [vmem:[#allocation8 + $0x714] sm:$0xf] }
  0xe8   :  { %1981 = vmatpush.bf16.msra.mxu2 %v3867_v45  ;;  %v3646_v43 = vld [vmem:[#allocation8 + $0x2d0] sm:$0xf]  ;;  %v4223_v45 = vor.u32 %v5058_v37, %v4222_v36  ;;  %v3391_v49 = vor.u32 %v4850_v40, %v3390_v39  ;;  %v4934_v36 = vld [vmem:[#allocation8 + $0x394] sm:$0xf] }
  0xe9   :  { %1994 = vmatpush.bf16.msra.mxu3 %v4123_v50  ;;  %1957 = vmatpush.bf16.msra.mxu0 %v3291_v53  ;;  %v4914_v44 = vld [vmem:[#allocation8 + $0x2ec] sm:$0xf0]  ;;  %v3744_v37 = vld [vmem:[#allocation8 + $0x3b0] sm:$0xf0] }
  0xea   :  { %1970 = vmatpush.bf16.msra.mxu1 %v3547_v54  ;;  %v3934_v47 = vld [vmem:[#allocation8 + $0x510] sm:$0xf]  ;;  %v3647_v52 = vor.u32 %v4914_v44, %v3646_v43  ;;  %v5006_v44 = vld [vmem:[#allocation8 + $0x5d4] sm:$0xf] }
  0xeb   :  { %v4986_v48 = vld [vmem:[#allocation8 + $0x52c] sm:$0xf0] }
  0xec   :  { %1982 = vmatpush.bf16.msra.mxu2 %v3835_v60  ;;  %1958 = vmatmul.bf16.vlgmr.msra.gmra.mxu0 %v5479_v41  ;;  %v4190_v50 = vld [vmem:[#allocation8 + $0x710] sm:$0xf]  ;;  %v3935_v55 = vor.u32 %v4986_v48, %v3934_v47  ;;  %v5070_v48 = vld [vmem:[#allocation8 + $0x7d4] sm:$0xf] }
  0xed   :  { %2002 = vmatpush.bf16.msrb.mxu0 %v3519_v57  ;;  %1995 = vmatpush.bf16.msra.mxu3 %v4091_v0  ;;  %v5050_v51 = vld [vmem:[#allocation8 + $0x72c] sm:$0xf0] }
  0xee   :  { %2015 = vmatpush.bf16.msrb.mxu1 %v3775_v58  ;;  %v3358_v53 = vld [vmem:[#allocation8 + $0x90] sm:$0xf]  ;;  %v4191_v58 = vor.u32 %v5050_v51, %v4190_v50  ;;  %v3747_v50 = vor.u32 %v4934_v36, %v3744_v37  ;;  %v5038_v36 = vld [vmem:[#allocation8 + $0x6d4] sm:$0xf] }
  0xef   :  { %1971 = vmatmul.bf16.vlgmr.msra.gmra.mxu1 %v5481_v46  ;;  %v4842_v54 = vld [vmem:[#allocation8 + $0xac] sm:$0xf0]  ;;  %v4160_v37 = vld [vmem:[#allocation8 + $0x6f0] sm:$0xf0] }
  0xf0   :  { %1983 = vmatpush.bf16.msra.mxu2 %v3803_v13  ;;  %v3614_v56 = vld [vmem:[#allocation8 + $0x290] sm:$0xf]  ;;  %v3359_v61 = vor.u32 %v4842_v54, %v3358_v53  ;;  %v3456_v53 = vld [vmem:[#allocation8 + $0x170] sm:$0xf0] }
  0xf1   :  { %2003 = vmatpush.bf16.msrb.mxu0 %v3487_v8  ;;  %1996 = vmatpush.bf16.msra.mxu3 %v4059_v16  ;;  %v4906_v57 = vld [vmem:[#allocation8 + $0x2ac] sm:$0xf0] }
  0xf2   :  { %2016 = vmatpush.bf16.msrb.mxu1 %v3743_v9  ;;  %v3902_v59 = vld [vmem:[#allocation8 + $0x4d0] sm:$0xf]  ;;  %v3615_v0 = vor.u32 %v4906_v57, %v3614_v56  ;;  %v4926_v56 = vld [vmem:[#allocation8 + $0x354] sm:$0xf] }
  0xf3   :  { %1984 = vmatmul.bf16.vlgmr.msra.gmra.mxu2 %v5485_v4  ;;  %v4978_v60 = vld [vmem:[#allocation8 + $0x4ec] sm:$0xf0]  ;;  %v3712_v57 = vld [vmem:[#allocation8 + $0x370] sm:$0xf0] }
  0xf4   :  { %2028 = vmatpush.bf16.msrb.mxu2 %v4031_v17  ;;  %1997 = vmatmul.bf16.vlgmr.msra.gmra.mxu3 %v5487_v10  ;;  %v4158_v62 = vld [vmem:[#allocation8 + $0x6d0] sm:$0xf]  ;;  %v3903_v3 = vor.u32 %v4978_v60, %v3902_v59  ;;  %v4998_v59 = vld [vmem:[#allocation8 + $0x594] sm:$0xf] }
  0xf5   :  { %2041 = vmatpush.bf16.msrb.mxu3 %v4287_v20  ;;  %2004 = vmatpush.bf16.msrb.mxu0 %v3455_v23  ;;  %v5042_v63 = vld [vmem:[#allocation8 + $0x6ec] sm:$0xf0]  ;;  %v4878_v20 = vld [vmem:[#allocation8 + $0x1d4] sm:$0xf] }
  0xf6   :  { %2017 = vmatpush.bf16.msrb.mxu1 %v3711_v26  ;;  %v3326_v1 = vld [vmem:[#allocation8 + $0x50] sm:$0xf]  ;;  %v4159_v7 = vor.u32 %v5042_v63, %v4158_v62  ;;  %v3523_v31 = vor.u32 %v4878_v20, %v3520_v21  ;;  %v4000_v60 = vld [vmem:[#allocation8 + $0x5b0] sm:$0xf0] }
  0xf7   :  { %v4834_v2 = vld [vmem:[#allocation8 + $0x6c] sm:$0xf0]  ;;  %v5062_v62 = vld [vmem:[#allocation8 + $0x794] sm:$0xf] }
  0xf8   :  { %2029 = vmatpush.bf16.msrb.mxu2 %v3999_v29  ;;  %v3582_v5 = vld [vmem:[#allocation8 + $0x250] sm:$0xf]  ;;  %v3327_v11 = vor.u32 %v4834_v2, %v3326_v1  ;;  %v4256_v63 = vld [vmem:[#allocation8 + $0x7b0] sm:$0xf0] }
  0xf9   :  { %2042 = vmatpush.bf16.msrb.mxu3 %v4255_v32  ;;  %2005 = vmatpush.bf16.msrb.mxu0 %v3423_v35  ;;  %v4898_v6 = vld [vmem:[#allocation8 + $0x26c] sm:$0xf0]  ;;  %v4870_v32 = vld [vmem:[#allocation8 + $0x194] sm:$0xf] }
  0xfa   :  { %2018 = vmatpush.bf16.msrb.mxu1 %v3679_v38  ;;  %v3870_v8 = vld [vmem:[#allocation8 + $0x490] sm:$0xf]  ;;  %v3583_v15 = vor.u32 %v4898_v6, %v3582_v5  ;;  %v3488_v35 = vld [vmem:[#allocation8 + $0x1b0] sm:$0xf0] }
  0xfb   :  { %v4970_v9 = vld [vmem:[#allocation8 + $0x4ac] sm:$0xf0]  ;;  %v3491_v47 = vor.u32 %v4870_v32, %v3488_v35  ;;  %v4854_v1 = vld [vmem:[#allocation8 + $0x114] sm:$0xf] }
  0xfc   :  { %2030 = vmatpush.bf16.msrb.mxu2 %v3967_v42  ;;  %v4126_v12 = vld [vmem:[#allocation8 + $0x690] sm:$0xf]  ;;  %v3871_v19 = vor.u32 %v4970_v9, %v3870_v8  ;;  %v3424_v2 = vld [vmem:[#allocation8 + $0x130] sm:$0xf0] }
  0xfd   :  { %2043 = vmatpush.bf16.msrb.mxu3 %v4223_v45  ;;  %2006 = vmatpush.bf16.msrb.mxu0 %v3391_v49  ;;  %v5034_v13 = vld [vmem:[#allocation8 + $0x6ac] sm:$0xf0]  ;;  %v4032_v45 = vld [vmem:[#allocation8 + $0x5f0] sm:$0xf0] }
  0xfe   :  { %2019 = vmatpush.bf16.msrb.mxu1 %v3647_v52  ;;  %v3294_v14 = vld [vmem:[#allocation8 + $0x10] sm:$0xf]  ;;  %v4127_v23 = vor.u32 %v5034_v13, %v4126_v12  ;;  %v4288_v49 = vld [vmem:[#allocation8 + $0x7f0] sm:$0xf0] }
  0xff   :  { %v4826_v16 = vld [vmem:[#allocation8 + $0x2c] sm:$0xf0]  ;;  %v4862_v52 = vld [vmem:[#allocation8 + $0x154] sm:$0xf] }
 0x100   :  { %2031 = vmatpush.bf16.msrb.mxu2 %v3935_v55  ;;  %v3550_v17 = vld [vmem:[#allocation8 + $0x210] sm:$0xf]  ;;  %v3295_v27 = vor.u32 %v4826_v16, %v3294_v14  ;;  %v4035_v55 = vor.u32 %v5006_v44, %v4032_v45  ;;  %v4918_v5 = vld [vmem:[#allocation8 + $0x314] sm:$0xf]  ;;  %v4163_v45 = vor.u32 %v5038_v36, %v4160_v37 }
 0x101   :  { %2044 = vmatpush.bf16.msrb.mxu3 %v4191_v58  ;;  %2007 = vmatpush.bf16.msrb.mxu0 %v3359_v61  ;;  %v4890_v18 = vld [vmem:[#allocation8 + $0x22c] sm:$0xf0]  ;;  %v4291_v58 = vor.u32 %v5070_v48, %v4288_v49  ;;  %v3459_v61 = vor.u32 %v4862_v52, %v3456_v53  ;;  %v3680_v6 = vld [vmem:[#allocation8 + $0x330] sm:$0xf0] }
 0x102   :  { %2020 = vmatpush.bf16.msrb.mxu1 %v3615_v0  ;;  %v3838_v25 = vld [vmem:[#allocation8 + $0x450] sm:$0xf]  ;;  %v3551_v30 = vor.u32 %v4890_v18, %v3550_v17  ;;  %v3715_v0 = vor.u32 %v4926_v56, %v3712_v57  ;;  %v4990_v8 = vld [vmem:[#allocation8 + $0x554] sm:$0xf]  ;;  %v3683_v14 = vor.u32 %v4918_v5, %v3680_v6 }
 0x103   :  { %v4962_v26 = vld [vmem:[#allocation8 + $0x46c] sm:$0xf0]  ;;  %v3968_v9 = vld [vmem:[#allocation8 + $0x570] sm:$0xf0] }
 0x104   :  { %2032 = vmatpush.bf16.msrb.mxu2 %v3903_v3  ;;  %v4094_v28 = vld [vmem:[#allocation8 + $0x650] sm:$0xf]  ;;  %v3839_v34 = vor.u32 %v4962_v26, %v3838_v25  ;;  %v4003_v3 = vor.u32 %v4998_v59, %v4000_v60  ;;  %v5054_v12 = vld [vmem:[#allocation8 + $0x754] sm:$0xf]  ;;  %v3971_v17 = vor.u32 %v4990_v8, %v3968_v9  ;;  %v4883_v59 = vld [vmem:[#allocation8 + $0x1f4] sm:$0xf0] }
 0x105   :  { %2045 = vmatpush.bf16.msrb.mxu3 %v4159_v7  ;;  %2008 = vmatpush.bf16.msrb.mxu0 %v3327_v11  ;;  %v5026_v29 = vld [vmem:[#allocation8 + $0x66c] sm:$0xf0]  ;;  %v4259_v7 = vor.u32 %v5062_v62, %v4256_v63  ;;  %v3427_v11 = vor.u32 %v4854_v1, %v3424_v2  ;;  %v4224_v13 = vld [vmem:[#allocation8 + $0x770] sm:$0xf0]  ;;  %v3782_v60 = vld [vmem:[#allocation8 + $0x3d8] sm:$0xf] }
 0x106   :  { %2021 = vmatpush.bf16.msrb.mxu1 %v3583_v15  ;;  %v4095_v38 = vor.u32 %v5026_v29, %v4094_v28  ;;  %v3806_v39 = vld [vmem:[#allocation8 + $0x410] sm:$0xf]  ;;  %v4846_v15 = vld [vmem:[#allocation8 + $0xd4] sm:$0xf]  ;;  %v4227_v20 = vor.u32 %v5054_v12, %v4224_v13  ;;  %v4947_v62 = vld [vmem:[#allocation8 + $0x3f4] sm:$0xf0] }
 0x107   :  { %v4954_v40 = vld [vmem:[#allocation8 + $0x42c] sm:$0xf0]  ;;  %v3392_v16 = vld [vmem:[#allocation8 + $0xf0] sm:$0xf0]  ;;  %v3783_v8 = vor.u32 %v4947_v62, %v3782_v60  ;;  %v3750_v12 = vld [vmem:[#allocation8 + $0x398] sm:$0xf] }
 0x108   :  { %2033 = vmatpush.bf16.msrb.mxu2 %v3871_v19  ;;  %v4062_v42 = vld [vmem:[#allocation8 + $0x610] sm:$0xf]  ;;  %v3807_v51 = vor.u32 %v4954_v40, %v3806_v39  ;;  %v4910_v18 = vld [vmem:[#allocation8 + $0x2d4] sm:$0xf]  ;;  %v4939_v13 = vld [vmem:[#allocation8 + $0x3b4] sm:$0xf0] }
 0x109   :  { %2046 = vmatpush.bf16.msrb.mxu3 %v4127_v23  ;;  %2009 = vmatpush.bf16.msrb.mxu0 %v3295_v27  ;;  %v5018_v43 = vld [vmem:[#allocation8 + $0x62c] sm:$0xf0]  ;;  %v3648_v19 = vld [vmem:[#allocation8 + $0x2f0] sm:$0xf0]  ;;  %v3395_v23 = vor.u32 %v4846_v15, %v3392_v16  ;;  %v3654_v62 = vld [vmem:[#allocation8 + $0x2d8] sm:$0xf] }
 0x10a   :  { %2022 = vmatpush.bf16.msrb.mxu1 %v3551_v30  ;;  %v4063_v54 = vor.u32 %v5018_v43, %v4062_v42  ;;  %v4982_v21 = vld [vmem:[#allocation8 + $0x514] sm:$0xf]  ;;  %v3651_v26 = vor.u32 %v4910_v18, %v3648_v19  ;;  %v4038_v19 = vld [vmem:[#allocation8 + $0x5d8] sm:$0xf] }
 0x10b   :  { %v4192_v25 = vld [vmem:[#allocation8 + $0x730] sm:$0xf0]  ;;  %v3939_v29 = vor.u32 %v4982_v21, %v3936_v22  ;;  %v4294_v22 = vld [vmem:[#allocation8 + $0x7d8] sm:$0xf] }
 0x10c   :  { %2034 = vmatpush.bf16.msrb.mxu2 %v3839_v34  ;;  %2010 = vmatmul.bf16.vlgmr.msrb.gmra.mxu0 %v5479_v41  ;;  %v4838_v27 = vld [vmem:[#allocation8 + $0x94] sm:$0xf]  ;;  %v4195_v32 = vor.u32 %v5046_v24, %v4192_v25  ;;  %v3751_v24 = vor.u32 %v4939_v13, %v3750_v12  ;;  %v3622_v12 = vld [vmem:[#allocation8 + $0x298] sm:$0xf] }
 0x10d   :  { %2054 = vmatpush.bf16.msra.mxu0 %v3523_v31  ;;  %2047 = vmatpush.bf16.msrb.mxu3 %v4095_v38  ;;  %v3360_v28 = vld [vmem:[#allocation8 + $0xb0] sm:$0xf0]  ;;  %v4907_v13 = vld [vmem:[#allocation8 + $0x2b4] sm:$0xf0] }
 0x10e   :  { %2067 = vmatpush.bf16.msra.mxu1 %v3779_v33  ;;  %v4902_v30 = vld [vmem:[#allocation8 + $0x294] sm:$0xf]  ;;  %v3363_v35 = vor.u32 %v4838_v27, %v3360_v28  ;;  %v4867_v27 = vld [vmem:[#allocation8 + $0x174] sm:$0xf0]  ;;  %v5507_v28 = vld [vmem:[#allocation10] sm:$0xff] }
 0x10f   :  { %2023 = vmatmul.bf16.vlgmr.msrb.gmra.mxu1 %v5481_v46  ;;  %v3616_v31 = vld [vmem:[#allocation8 + $0x2b0] sm:$0xf0]  ;;  %v498_v37 = vperm.slane %v5507_v28, 0 }
 0x110   :  { %2035 = vmatpush.bf16.msrb.mxu2 %v3807_v51  ;;  %v4974_v33 = vld [vmem:[#allocation8 + $0x4d4] sm:$0xf]  ;;  %v3619_v38 = vor.u32 %v4902_v30, %v3616_v31  ;;  %v3718_v31 = vld [vmem:[#allocation8 + $0x358] sm:$0xf] }
 0x111   :  { %2055 = vmatpush.bf16.msra.mxu0 %v3491_v47  ;;  %2048 = vmatpush.bf16.msrb.mxu3 %v4063_v54  ;;  %v3904_v34 = vld [vmem:[#allocation8 + $0x4f0] sm:$0xf0] }
 0x112   :  { %2068 = vmatpush.bf16.msra.mxu1 %v3747_v50  ;;  %v4830_v39 = vld [vmem:[#allocation8 + $0x54] sm:$0xf]  ;;  %v3907_v42 = vor.u32 %v4974_v33, %v3904_v34  ;;  %v4006_v34 = vld [vmem:[#allocation8 + $0x598] sm:$0xf] }
 0x113   :  { %2036 = vmatmul.bf16.vlgmr.msrb.gmra.mxu2 %v5485_v4  ;;  %v3328_v40 = vld [vmem:[#allocation8 + $0x70] sm:$0xf0] }
 0x114   :  { %2080 = vmatpush.bf16.msra.mxu2 %v4035_v55  ;;  %2049 = vmatmul.bf16.vlgmr.msrb.gmra.mxu3 %v5487_v10  ;;  %v4894_v43 = vld [vmem:[#allocation8 + $0x254] sm:$0xf]  ;;  %v3331_v49 = vor.u32 %v4830_v39, %v3328_v40  ;;  %v5067_v39 = vld [vmem:[#allocation8 + $0x7b4] sm:$0xf0] }
 0x115   :  { %2093 = vmatpush.bf16.msra.mxu3 %v4291_v58  ;;  %2056 = vmatpush.bf16.msra.mxu0 %v3459_v61  ;;  %v3584_v44 = vld [vmem:[#allocation8 + $0x270] sm:$0xf0]  ;;  %v3526_v58 = vld [vmem:[#allocation8 + $0x1d8] sm:$0xf] }
 0x116   :  { %2069 = vmatpush.bf16.msra.mxu1 %v3715_v0  ;;  %v4966_v47 = vld [vmem:[#allocation8 + $0x494] sm:$0xf]  ;;  %v3587_v53 = vor.u32 %v4894_v43, %v3584_v44  ;;  %v3527_v6 = vor.u32 %v4883_v59, %v3526_v58  ;;  %v4859_v43 = vld [vmem:[#allocation8 + $0x134] sm:$0xf0] }
 0x117   :  { %v3872_v48 = vld [vmem:[#allocation8 + $0x4b0] sm:$0xf0]  ;;  %v3398_v58 = vld [vmem:[#allocation8 + $0xd8] sm:$0xf] }
 0x118   :  { %2081 = vmatpush.bf16.msra.mxu2 %v4003_v3  ;;  %v5030_v50 = vld [vmem:[#allocation8 + $0x694] sm:$0xf]  ;;  %v3875_v57 = vor.u32 %v4966_v47, %v3872_v48  ;;  %v4923_v47 = vld [vmem:[#allocation8 + $0x334] sm:$0xf0] }
 0x119   :  { %2094 = vmatpush.bf16.msra.mxu3 %v4259_v7  ;;  %2057 = vmatpush.bf16.msra.mxu0 %v3427_v11  ;;  %v4128_v51 = vld [vmem:[#allocation8 + $0x6b0] sm:$0xf0]  ;;  %v3494_v7 = vld [vmem:[#allocation8 + $0x198] sm:$0xf] }
 0x11a   :  { %2070 = vmatpush.bf16.msra.mxu1 %v3683_v14  ;;  %v4822_v52 = vld [vmem:[#allocation8 + $0x14] sm:$0xf]  ;;  %v4131_v61 = vor.u32 %v5030_v50, %v4128_v51  ;;  %v4875_v11 = vld [vmem:[#allocation8 + $0x1b4] sm:$0xf0] }
 0x11b   :  { %v3296_v54 = vld [vmem:[#allocation8 + $0x30] sm:$0xf0]  ;;  %v3495_v21 = vor.u32 %v4875_v11, %v3494_v7  ;;  %v3974_v50 = vld [vmem:[#allocation8 + $0x558] sm:$0xf] }
 0x11c   :  { %2082 = vmatpush.bf16.msra.mxu2 %v3971_v17  ;;  %v4886_v55 = vld [vmem:[#allocation8 + $0x214] sm:$0xf]  ;;  %v3299_v1 = vor.u32 %v4822_v52, %v3296_v54  ;;  %v4995_v51 = vld [vmem:[#allocation8 + $0x574] sm:$0xf0] }
 0x11d   :  { %2095 = vmatpush.bf16.msra.mxu3 %v4227_v20  ;;  %2058 = vmatpush.bf16.msra.mxu0 %v3395_v23  ;;  %v3552_v56 = vld [vmem:[#allocation8 + $0x230] sm:$0xf0]  ;;  %v5011_v20 = vld [vmem:[#allocation8 + $0x5f4] sm:$0xf0] }
 0x11e   :  { %2071 = vmatpush.bf16.msra.mxu1 %v3651_v26  ;;  %v4958_v63 = vld [vmem:[#allocation8 + $0x454] sm:$0xf]  ;;  %v3555_v5 = vor.u32 %v4886_v55, %v3552_v56  ;;  %v5075_v23 = vld [vmem:[#allocation8 + $0x7f4] sm:$0xf0]  ;;  %v4039_v30 = vor.u32 %v5011_v20, %v4038_v19 }
 0x11f   :  { %v3840_v0 = vld [vmem:[#allocation8 + $0x470] sm:$0xf0]  ;;  %v3462_v26 = vld [vmem:[#allocation8 + $0x158] sm:$0xf]  ;;  %v4295_v33 = vor.u32 %v5075_v23, %v4294_v22  ;;  %v3623_v22 = vor.u32 %v4907_v13, %v3622_v12 }
 0x120   :  { %2083 = vmatpush.bf16.msra.mxu2 %v3939_v29  ;;  %v5022_v2 = vld [vmem:[#allocation8 + $0x654] sm:$0xf]  ;;  %v3843_v9 = vor.u32 %v4958_v63, %v3840_v0  ;;  %v3463_v36 = vor.u32 %v4867_v27, %v3462_v26  ;;  %v4230_v55 = vld [vmem:[#allocation8 + $0x758] sm:$0xf] }
 0x121   :  { %2096 = vmatpush.bf16.msra.mxu3 %v4195_v32  ;;  %2059 = vmatpush.bf16.msra.mxu0 %v3363_v35  ;;  %v4096_v3 = vld [vmem:[#allocation8 + $0x670] sm:$0xf0]  ;;  %v4931_v32 = vld [vmem:[#allocation8 + $0x374] sm:$0xf0] }
 0x122   :  { %2072 = vmatpush.bf16.msra.mxu1 %v3619_v38  ;;  %v4099_v14 = vor.u32 %v5022_v2, %v4096_v3  ;;  %v4950_v15 = vld [vmem:[#allocation8 + $0x414] sm:$0xf]  ;;  %v5003_v35 = vld [vmem:[#allocation8 + $0x5b4] sm:$0xf0]  ;;  %v3719_v40 = vor.u32 %v4931_v32, %v3718_v31 }
 0x123   :  { %v3808_v16 = vld [vmem:[#allocation8 + $0x430] sm:$0xf0]  ;;  %v4262_v38 = vld [vmem:[#allocation8 + $0x798] sm:$0xf]  ;;  %v4007_v44 = vor.u32 %v5003_v35, %v4006_v34 }
 0x124   :  { %2084 = vmatpush.bf16.msra.mxu2 %v3907_v42  ;;  %v5014_v17 = vld [vmem:[#allocation8 + $0x614] sm:$0xf]  ;;  %v3811_v25 = vor.u32 %v4950_v15, %v3808_v16  ;;  %v3430_v42 = vld [vmem:[#allocation8 + $0x118] sm:$0xf] }
 0x125   :  { %2097 = vmatpush.bf16.msra.mxu3 %v4163_v45  ;;  %2060 = vmatpush.bf16.msra.mxu0 %v3331_v49  ;;  %v4064_v18 = vld [vmem:[#allocation8 + $0x630] sm:$0xf0]  ;;  %v3686_v45 = vld [vmem:[#allocation8 + $0x318] sm:$0xf]  ;;  %v4263_v49 = vor.u32 %v5067_v39, %v4262_v38  ;;  %v3431_v54 = vor.u32 %v4859_v43, %v3430_v42 }
 0x126   :  { %2073 = vmatpush.bf16.msra.mxu1 %v3587_v53  ;;  %v4067_v29 = vor.u32 %v5014_v17, %v4064_v18  ;;  %v5059_v56 = vld [vmem:[#allocation8 + $0x774] sm:$0xf0] }
 0x127   :  { %v4851_v59 = vld [vmem:[#allocation8 + $0xf4] sm:$0xf0]  ;;  %v4231_v0 = vor.u32 %v5059_v56, %v4230_v55 }
 0x128   :  { %2085 = vmatpush.bf16.msra.mxu2 %v3875_v57  ;;  %v1803_v48 = vpop.f32.mrf.mxu0  ;;  %v3687_v57 = vor.u32 %v4923_v47, %v3686_v45  ;;  %v4915_v63 = vld [vmem:[#allocation8 + $0x2f4] sm:$0xf0]  ;;  %v3399_v3 = vor.u32 %v4851_v59, %v3398_v58  ;;  %v3528_v45 = vld [vmem:[#allocation8 + $0x1f8] sm:$0xf0] }
 0x129   :  { %2098 = vmatpush.bf16.msra.mxu3 %v4131_v61  ;;  %2061 = vmatpush.bf16.msra.mxu0 %v3299_v1  ;;  %v1804_v52 = vadd.f32 %v1803_v48, %v498_v37  ;;  %v1816_v53 = vpop.f32.mrf.mxu1  ;;  %v3975_v61 = vor.u32 %v4995_v51, %v3974_v50  ;;  %v3942_v1 = vld [vmem:[#allocation8 + $0x518] sm:$0xf]  ;;  %v3655_v7 = vor.u32 %v4915_v63, %v3654_v62  ;;  %v4943_v47 = vld [vmem:[#allocation8 + $0x3dc] sm:$0xf] }
 0x12a   :  { %2074 = vmatpush.bf16.msra.mxu1 %v3555_v5  ;;  %v4987_v2 = vld [vmem:[#allocation8 + $0x534] sm:$0xf0]  ;;  %v3784_v50 = vld [vmem:[#allocation8 + $0x3f8] sm:$0xf0] }
 0x12b   :  { %v5514_v60 = vadd.f32 %v1816_v53, %v1804_v52  ;;  %v4198_v5 = vld [vmem:[#allocation8 + $0x718] sm:$0xf]  ;;  %v3943_v11 = vor.u32 %v4987_v2, %v3942_v1  ;;  %v4871_v59 = vld [vmem:[#allocation8 + $0x19c] sm:$0xf] }
 0x12c   :  { %2086 = vmatpush.bf16.msra.mxu2 %v3843_v9  ;;  %2062 = vmatmul.bf16.vlgmr.msra.gmra.mxu0 %v5479_v41  ;;  %v4843_v9 = vld [vmem:[#allocation8 + $0xb4] sm:$0xf0]  ;;  %v3496_v63 = vld [vmem:[#allocation8 + $0x1b8] sm:$0xf0] }
 0x12d   :  { %2106 = vmatpush.bf16.msrb.mxu0 %v3527_v6  ;;  %2099 = vmatpush.bf16.msra.mxu3 %v4099_v14  ;;  %v5051_v6 = vld [vmem:[#allocation8 + $0x734] sm:$0xf0]  ;;  %v3752_v1 = vld [vmem:[#allocation8 + $0x3b8] sm:$0xf0]  ;;  %v3499_v13 = vor.u32 %v4871_v59, %v3496_v63 }
 0x12e   :  { %2119 = vmatpush.bf16.msrb.mxu1 %v3783_v8  ;;  %v3366_v8 = vld [vmem:[#allocation8 + $0x98] sm:$0xf]  ;;  %v4199_v15 = vor.u32 %v5051_v6, %v4198_v5  ;;  %v3944_v63 = vld [vmem:[#allocation8 + $0x538] sm:$0xf0] }
 0x12f   :  { %2075 = vmatmul.bf16.vlgmr.msra.gmra.mxu1 %v5481_v46  ;;  %v3910_v16 = vld [vmem:[#allocation8 + $0x4d8] sm:$0xf]  ;;  %v3367_v19 = vor.u32 %v4843_v9, %v3366_v8  ;;  %v5007_v9 = vld [vmem:[#allocation8 + $0x5dc] sm:$0xf] }
 0x130   :  { %2087 = vmatpush.bf16.msra.mxu2 %v3811_v25  ;;  %v1805_v14 = vpop.f32.mrf.mxu0  ;;  %v4979_v17 = vld [vmem:[#allocation8 + $0x4f4] sm:$0xf0] }
 0x131   :  { %2107 = vmatpush.bf16.msrb.mxu0 %v3495_v21  ;;  %2100 = vmatpush.bf16.msra.mxu3 %v4067_v29  ;;  %v1818_v18 = vpop.f32.mrf.mxu1  ;;  %v4166_v20 = vld [vmem:[#allocation8 + $0x6d8] sm:$0xf]  ;;  %v3911_v25 = vor.u32 %v4979_v17, %v3910_v16  ;;  %v5071_v14 = vld [vmem:[#allocation8 + $0x7dc] sm:$0xf] }
 0x132   :  { %2120 = vmatpush.bf16.msrb.mxu1 %v3751_v24  ;;  %v5043_v21 = vld [vmem:[#allocation8 + $0x6f4] sm:$0xf0]  ;;  %v4863_v18 = vld [vmem:[#allocation8 + $0x15c] sm:$0xf] }
 0x133   :  { %2088 = vmatmul.bf16.vlgmr.msra.gmra.mxu2 %v5485_v4  ;;  %v3334_v23 = vld [vmem:[#allocation8 + $0x58] sm:$0xf]  ;;  %v4167_v29 = vor.u32 %v5043_v21, %v4166_v20 }
 0x134   :  { %2132 = vmatpush.bf16.msrb.mxu2 %v4039_v30  ;;  %2101 = vmatmul.bf16.vlgmr.msra.gmra.mxu3 %v5487_v10  ;;  %v4835_v24 = vld [vmem:[#allocation8 + $0x74] sm:$0xf0] }
 0x135   :  { %2145 = vmatpush.bf16.msrb.mxu3 %v4295_v33  ;;  %2108 = vmatpush.bf16.msrb.mxu0 %v3463_v36  ;;  %v3590_v26 = vld [vmem:[#allocation8 + $0x258] sm:$0xf]  ;;  %v3335_v33 = vor.u32 %v4835_v24, %v3334_v23  ;;  %v4927_v23 = vld [vmem:[#allocation8 + $0x35c] sm:$0xf] }
 0x136   :  { %2121 = vmatpush.bf16.msrb.mxu1 %v3719_v40  ;;  %v4899_v27 = vld [vmem:[#allocation8 + $0x274] sm:$0xf0]  ;;  %v5516_v32 = vpop.f32.mrf.mxu2  ;;  %v3720_v24 = vld [vmem:[#allocation8 + $0x378] sm:$0xf0] }
 0x137   :  { %v3878_v30 = vld [vmem:[#allocation8 + $0x498] sm:$0xf]  ;;  %v5518_v37 = vpop.f32.mrf.mxu3  ;;  %v3591_v38 = vor.u32 %v4899_v27, %v3590_v26  ;;  %v4999_v27 = vld [vmem:[#allocation8 + $0x59c] sm:$0xf] }
 0x138   :  { %2133 = vmatpush.bf16.msrb.mxu2 %v4007_v44  ;;  %v4971_v31 = vld [vmem:[#allocation8 + $0x4b4] sm:$0xf0]  ;;  %v4879_v44 = vld [vmem:[#allocation8 + $0x1dc] sm:$0xf]  ;;  %v5520_v48 = vpop.f32.mrf.mxu0 }
 0x139   :  { %2146 = vmatpush.bf16.msrb.mxu3 %v4263_v49  ;;  %2109 = vmatpush.bf16.msrb.mxu0 %v3431_v54  ;;  %v4134_v34 = vld [vmem:[#allocation8 + $0x698] sm:$0xf]  ;;  %v3879_v43 = vor.u32 %v4971_v31, %v3878_v30  ;;  %v5522_v53 = vpop.f32.mrf.mxu1  ;;  %v3531_v58 = vor.u32 %v4879_v44, %v3528_v45  ;;  %v5063_v31 = vld [vmem:[#allocation8 + $0x79c] sm:$0xf] }
 0x13a   :  { %2122 = vmatpush.bf16.msrb.mxu1 %v3687_v57  ;;  %v5035_v35 = vld [vmem:[#allocation8 + $0x6b4] sm:$0xf0]  ;;  %v4991_v44 = vld [vmem:[#allocation8 + $0x55c] sm:$0xf] }
 0x13b   :  { %v3302_v36 = vld [vmem:[#allocation8 + $0x18] sm:$0xf]  ;;  %v4135_v49 = vor.u32 %v5035_v35, %v4134_v34  ;;  %v3723_v34 = vor.u32 %v4927_v23, %v3720_v24  ;;  %v4855_v35 = vld [vmem:[#allocation8 + $0x11c] sm:$0xf] }
 0x13c   :  { %2134 = vmatpush.bf16.msrb.mxu2 %v3975_v61  ;;  %v4827_v39 = vld [vmem:[#allocation8 + $0x34] sm:$0xf0]  ;;  %v3787_v61 = vor.u32 %v4943_v47, %v3784_v50  ;;  %v3976_v45 = vld [vmem:[#allocation8 + $0x578] sm:$0xf0] }
 0x13d   :  { %2147 = vmatpush.bf16.msrb.mxu3 %v4231_v0  ;;  %2110 = vmatpush.bf16.msrb.mxu0 %v3399_v3  ;;  %v3558_v40 = vld [vmem:[#allocation8 + $0x218] sm:$0xf]  ;;  %v3303_v54 = vor.u32 %v4827_v39, %v3302_v36  ;;  %v4935_v0 = vld [vmem:[#allocation8 + $0x39c] sm:$0xf] }
 0x13e   :  { %2123 = vmatpush.bf16.msrb.mxu1 %v3655_v7  ;;  %v4891_v42 = vld [vmem:[#allocation8 + $0x234] sm:$0xf0]  ;;  %v1831_v7 = vpop.f32.mrf.mxu2  ;;  %v3755_v16 = vor.u32 %v4935_v0, %v3752_v1  ;;  %v3432_v36 = vld [vmem:[#allocation8 + $0x138] sm:$0xf0] }
 0x13f   :  { %v3846_v51 = vld [vmem:[#allocation8 + $0x458] sm:$0xf]  ;;  %v3559_v57 = vor.u32 %v4891_v42, %v3558_v40  ;;  %v1844_v12 = vpop.f32.mrf.mxu3  ;;  %v4919_v39 = vld [vmem:[#allocation8 + $0x31c] sm:$0xf] }
 0x140   :  { %2135 = vmatpush.bf16.msrb.mxu2 %v3943_v11  ;;  %v4963_v52 = vld [vmem:[#allocation8 + $0x474] sm:$0xf0]  ;;  %v4040_v11 = vld [vmem:[#allocation8 + $0x5f8] sm:$0xf0]  ;;  %v1857_v20 = vpop.f32.mrf.mxu0 }
 0x141   :  { %2148 = vmatpush.bf16.msrb.mxu3 %v4199_v15  ;;  %2111 = vmatpush.bf16.msrb.mxu0 %v3367_v19  ;;  %v4102_v55 = vld [vmem:[#allocation8 + $0x658] sm:$0xf]  ;;  %v3847_v62 = vor.u32 %v4963_v52, %v3846_v51  ;;  %v4296_v15 = vld [vmem:[#allocation8 + $0x7f8] sm:$0xf0] }
 0x142   :  { %2124 = vmatpush.bf16.msrb.mxu1 %v3623_v22  ;;  %v5027_v56 = vld [vmem:[#allocation8 + $0x674] sm:$0xf0]  ;;  %v3464_v19 = vld [vmem:[#allocation8 + $0x178] sm:$0xf0]  ;;  %v4043_v22 = vor.u32 %v5007_v9, %v4040_v11  ;;  %v4299_v26 = vor.u32 %v5071_v14, %v4296_v15 }
 0x143   :  { %v4103_v2 = vor.u32 %v5027_v56, %v4102_v55  ;;  %v3814_v3 = vld [vmem:[#allocation8 + $0x418] sm:$0xf]  ;;  %v3467_v30 = vor.u32 %v4863_v18, %v3464_v19  ;;  %v3688_v40 = vld [vmem:[#allocation8 + $0x338] sm:$0xf0]  ;;  %v3979_v56 = vor.u32 %v4991_v44, %v3976_v45 }
 0x144   :  { %2136 = vmatpush.bf16.msrb.mxu2 %v3911_v25  ;;  %v4955_v5 = vld [vmem:[#allocation8 + $0x434] sm:$0xf0]  ;;  %v1870_v25 = vpop.f32.mrf.mxu1  ;;  %v5055_v50 = vld [vmem:[#allocation8 + $0x75c] sm:$0xf]  ;;  %v3691_v52 = vor.u32 %v4919_v39, %v3688_v40 }
 0x145   :  { %2149 = vmatpush.bf16.msrb.mxu3 %v4167_v29  ;;  %2112 = vmatpush.bf16.msrb.mxu0 %v3335_v33  ;;  %v4070_v6 = vld [vmem:[#allocation8 + $0x618] sm:$0xf]  ;;  %v3815_v17 = vor.u32 %v4955_v5, %v3814_v3  ;;  %v4008_v29 = vld [vmem:[#allocation8 + $0x5b8] sm:$0xf0] }
 0x146   :  { %2125 = vmatpush.bf16.msrb.mxu1 %v3591_v38  ;;  %v5019_v8 = vld [vmem:[#allocation8 + $0x634] sm:$0xf0]  ;;  %v4264_v33 = vld [vmem:[#allocation8 + $0x7b8] sm:$0xf0]  ;;  %v4011_v38 = vor.u32 %v4999_v27, %v4008_v29  ;;  %v5526_v42 = vpop.f32.mrf.mxu2 }
 0x147   :  { %v4071_v21 = vor.u32 %v5019_v8, %v4070_v6  ;;  %v5528_v47 = vpop.f32.mrf.mxu3  ;;  %v4232_v51 = vld [vmem:[#allocation8 + $0x778] sm:$0xf0]  ;;  %v4358_v45 = vld [vmem:[#allocation11 + $0x70] sm:$0xf] }
 0x148   :  { %2137 = vmatpush.bf16.msrb.mxu2 %v3879_v43  ;;  %v4267_v43 = vor.u32 %v5063_v31, %v4264_v33  ;;  %v3400_v55 = vld [vmem:[#allocation8 + $0xf8] sm:$0xf0] }
 0x149   :  { %2150 = vmatpush.bf16.msrb.mxu3 %v4135_v49  ;;  %2113 = vmatpush.bf16.msrb.mxu0 %v3303_v54  ;;  %v3435_v49 = vor.u32 %v4855_v35, %v3432_v36  ;;  %v4847_v54 = vld [vmem:[#allocation8 + $0xdc] sm:$0xf]  ;;  %v5532_v59 = vpop.f32.mrf.mxu0 }
 0x14a   :  { %2126 = vmatpush.bf16.msrb.mxu1 %v3559_v57  ;;  %v4911_v57 = vld [vmem:[#allocation8 + $0x2dc] sm:$0xf]  ;;  %v3403_v1 = vor.u32 %v4847_v54, %v3400_v55 }
 0x14b   :  { %v4200_v3 = vld [vmem:[#allocation8 + $0x738] sm:$0xf0] }
 0x14c   :  { %2138 = vmatpush.bf16.msrb.mxu2 %v3847_v62  ;;  %2114 = vmatmul.bf16.vlgmr.msrb.gmra.mxu0 %v5479_v41  ;;  %v4983_v62 = vld [vmem:[#allocation8 + $0x51c] sm:$0xf]  ;;  %v5534_v0 = vpop.f32.mrf.mxu1 }
 0x14d   :  { %2158 = vmatpush.bf16.msra.mxu0 %v3531_v58  ;;  %2151 = vmatpush.bf16.msrb.mxu3 %v4103_v2  ;;  %v3656_v58 = vld [vmem:[#allocation8 + $0x2f8] sm:$0xf0]  ;;  %v3947_v8 = vor.u32 %v4983_v62, %v3944_v63 }
 0x14e   :  { %2171 = vmatpush.bf16.msra.mxu1 %v3787_v61  ;;  %v4235_v61 = vor.u32 %v5055_v50, %v4232_v51  ;;  %v5047_v2 = vld [vmem:[#allocation8 + $0x71c] sm:$0xf]  ;;  %v3659_v5 = vor.u32 %v4911_v57, %v3656_v58  ;;  %v1883_v12 = vpop.f32.mrf.mxu2  ;;  %v4422_v50 = vld [vmem:[#allocation11 + $0xf0] sm:$0xf] }
 0x14f   :  { %2127 = vmatmul.bf16.vlgmr.msrb.gmra.mxu1 %v5481_v46  ;;  %v4839_v6 = vld [vmem:[#allocation8 + $0x9c] sm:$0xf] }
 0x150   :  { %2139 = vmatpush.bf16.msrb.mxu2 %v3815_v17  ;;  %v3368_v7 = vld [vmem:[#allocation8 + $0xb8] sm:$0xf0] }
 0x151   :  { %2159 = vmatpush.bf16.msra.mxu0 %v3499_v13  ;;  %2152 = vmatpush.bf16.msrb.mxu3 %v4071_v21  ;;  %v4903_v9 = vld [vmem:[#allocation8 + $0x29c] sm:$0xf]  ;;  %v4203_v13 = vor.u32 %v5047_v2, %v4200_v3  ;;  %v3371_v17 = vor.u32 %v4839_v6, %v3368_v7  ;;  %v4350_v2 = vld [vmem:[#allocation11 + $0x60] sm:$0xf]  ;;  %v5089_v6 = vld [vmem:[#allocation11 + $0x64] sm:$0xf0] }
 0x152   :  { %2172 = vmatpush.bf16.msra.mxu1 %v3755_v16  ;;  %v3624_v11 = vld [vmem:[#allocation8 + $0x2b8] sm:$0xf0]  ;;  %v1896_v16 = vpop.f32.mrf.mxu3  ;;  %v4414_v7 = vld [vmem:[#allocation11 + $0xe0] sm:$0xf] }
 0x153   :  { %2140 = vmatmul.bf16.vlgmr.msrb.gmra.mxu2 %v5485_v4  ;;  %v4975_v14 = vld [vmem:[#allocation8 + $0x4dc] sm:$0xf]  ;;  %v3627_v20 = vor.u32 %v4903_v9, %v3624_v11  ;;  %v5123_v16 = vld [vmem:[#allocation11 + $0x174] sm:$0xf0] }
 0x154   :  { %2184 = vmatpush.bf16.msra.mxu2 %v4043_v22  ;;  %2153 = vmatmul.bf16.vlgmr.msrb.gmra.mxu3 %v5487_v10  ;;  %v3912_v15 = vld [vmem:[#allocation8 + $0x4f8] sm:$0xf0]  ;;  %v1922_v31 = vpop.f32.mrf.mxu1 }
 0x155   :  { %2197 = vmatpush.bf16.msra.mxu3 %v4299_v26  ;;  %2160 = vmatpush.bf16.msra.mxu0 %v3467_v30  ;;  %v5039_v18 = vld [vmem:[#allocation8 + $0x6dc] sm:$0xf]  ;;  %v3915_v23 = vor.u32 %v4975_v14, %v3912_v15  ;;  %v1909_v26 = vpop.f32.mrf.mxu0  ;;  %v4486_v15 = vld [vmem:[#allocation11 + $0x170] sm:$0xf] }
 0x156   :  { %2173 = vmatpush.bf16.msra.mxu1 %v3723_v34  ;;  %v4168_v19 = vld [vmem:[#allocation8 + $0x6f8] sm:$0xf0]  ;;  %v4406_v26 = vld [vmem:[#allocation11 + $0xd0] sm:$0xf] }
 0x157   :  { %v4831_v21 = vld [vmem:[#allocation8 + $0x5c] sm:$0xf]  ;;  %v4171_v27 = vor.u32 %v5039_v18, %v4168_v19  ;;  %v4550_v18 = vld [vmem:[#allocation11 + $0x1f0] sm:$0xf]  ;;  %v5139_v19 = vld [vmem:[#allocation11 + $0x1f4] sm:$0xf0] }
 0x158   :  { %2185 = vmatpush.bf16.msra.mxu2 %v4011_v38  ;;  %v3336_v22 = vld [vmem:[#allocation8 + $0x78] sm:$0xf0]  ;;  %v4551_v31 = vor.u32 %v5139_v19, %v4550_v18  ;;  %v5097_v18 = vld [vmem:[#allocation11 + $0xa4] sm:$0xf0] }
 0x159   :  { %2198 = vmatpush.bf16.msra.mxu3 %v4267_v43  ;;  %2161 = vmatpush.bf16.msra.mxu0 %v3435_v49  ;;  %v4895_v24 = vld [vmem:[#allocation8 + $0x25c] sm:$0xf]  ;;  %v3339_v33 = vor.u32 %v4831_v21, %v3336_v22  ;;  %v5091_v49 = vld [vmem:[#allocation11 + $0x74] sm:$0xf0]  ;;  %v4342_v22 = vld [vmem:[#allocation11 + $0x50] sm:$0xf] }
 0x15a   :  { %2174 = vmatpush.bf16.msra.mxu1 %v3691_v52  ;;  %v3592_v25 = vld [vmem:[#allocation8 + $0x278] sm:$0xf0]  ;;  %v5107_v52 = vld [vmem:[#allocation11 + $0xf4] sm:$0xf0]  ;;  %v5538_v57 = vpop.f32.mrf.mxu3 }
 0x15b   :  { %v4967_v29 = vld [vmem:[#allocation8 + $0x49c] sm:$0xf]  ;;  %v3595_v38 = vor.u32 %v4895_v24, %v3592_v25  ;;  %v4423_v3 = vor.u32 %v5107_v52, %v4422_v50  ;;  %v4487_v25 = vor.u32 %v5123_v16, %v4486_v15  ;;  %v4470_v50 = vld [vmem:[#allocation11 + $0x150] sm:$0xf]  ;;  %v5081_v15 = vld [vmem:[#allocation11 + $0x24] sm:$0xf0] }
 0x15c   :  { %2186 = vmatpush.bf16.msra.mxu2 %v3979_v56  ;;  %v3880_v30 = vld [vmem:[#allocation8 + $0x4b8] sm:$0xf0]  ;;  %v5536_v56 = vpop.f32.mrf.mxu2  ;;  %v501_v16 = vperm.slane %v5507_v28, 3 }
 0x15d   :  { %2199 = vmatpush.bf16.msra.mxu3 %v4235_v61  ;;  %2162 = vmatpush.bf16.msra.mxu0 %v3403_v1  ;;  %v5031_v34 = vld [vmem:[#allocation8 + $0x69c] sm:$0xf]  ;;  %v3883_v44 = vor.u32 %v4967_v29, %v3880_v30  ;;  %v4359_v1 = vor.u32 %v5091_v49, %v4358_v45  ;;  %v5101_v45 = vld [vmem:[#allocation11 + $0xc4] sm:$0xf0] }
 0x15e   :  { %2175 = vmatpush.bf16.msra.mxu1 %v3659_v5  ;;  %v4136_v35 = vld [vmem:[#allocation8 + $0x6b8] sm:$0xf0] }
 0x15f   :  { %v4823_v36 = vld [vmem:[#allocation8 + $0x1c] sm:$0xf]  ;;  %v4139_v51 = vor.u32 %v5031_v34, %v4136_v35  ;;  %v5121_v34 = vld [vmem:[#allocation11 + $0x164] sm:$0xf0] }
 0x160   :  { %2187 = vmatpush.bf16.msra.mxu2 %v3947_v8  ;;  %v3304_v39 = vld [vmem:[#allocation8 + $0x38] sm:$0xf0]  ;;  %v5105_v8 = vld [vmem:[#allocation11 + $0xe4] sm:$0xf0] }
 0x161   :  { %2200 = vmatpush.bf16.msra.mxu3 %v4203_v13  ;;  %2163 = vmatpush.bf16.msra.mxu0 %v3371_v17  ;;  %v4887_v40 = vld [vmem:[#allocation8 + $0x21c] sm:$0xf]  ;;  %v3307_v58 = vor.u32 %v4823_v36, %v3304_v39  ;;  %v4351_v17 = vor.u32 %v5089_v6, %v4350_v2  ;;  %v4542_v36 = vld [vmem:[#allocation11 + $0x1e0] sm:$0xf]  ;;  %v5099_v2 = vld [vmem:[#allocation11 + $0xb4] sm:$0xf0] }
 0x162   :  { %2176 = vmatpush.bf16.msra.mxu1 %v3627_v20  ;;  %v3560_v43 = vld [vmem:[#allocation8 + $0x238] sm:$0xf0]  ;;  %v4415_v20 = vor.u32 %v5105_v8, %v4414_v7  ;;  %v1948_v30 = vpop.f32.mrf.mxu3  ;;  %v5117_v7 = vld [vmem:[#allocation11 + $0x144] sm:$0xf0] }
 0x163   :  { %v4959_v54 = vld [vmem:[#allocation8 + $0x45c] sm:$0xf]  ;;  %v3563_v63 = vor.u32 %v4887_v40, %v3560_v43  ;;  %v4334_v40 = vld [vmem:[#allocation11 + $0x40] sm:$0xf] }
 0x164   :  { %2188 = vmatpush.bf16.msra.mxu2 %v3915_v23  ;;  %v3848_v55 = vld [vmem:[#allocation8 + $0x478] sm:$0xf0]  ;;  %v5087_v23 = vld [vmem:[#allocation11 + $0x54] sm:$0xf0]  ;;  %v1935_v29 = vpop.f32.mrf.mxu2 }
 0x165   :  { %2201 = vmatpush.bf16.msra.mxu3 %v4171_v27  ;;  %2164 = vmatpush.bf16.msra.mxu0 %v3339_v33  ;;  %v5023_v61 = vld [vmem:[#allocation8 + $0x65c] sm:$0xf]  ;;  %v3851_v5 = vor.u32 %v4959_v54, %v3848_v55  ;;  %v5103_v27 = vld [vmem:[#allocation11 + $0xd4] sm:$0xf0]  ;;  %v4478_v33 = vld [vmem:[#allocation11 + $0x160] sm:$0xf]  ;;  %v4343_v35 = vor.u32 %v5087_v23, %v4342_v22 }
 0x166   :  { %v4104_v62 = vld [vmem:[#allocation8 + $0x678] sm:$0xf0]  ;;  %2177 = vmatpush.bf16.msra.mxu1 %v3595_v38  ;;  %v5137_v38 = vld [vmem:[#allocation11 + $0x1e4] sm:$0xf0]  ;;  %v4407_v39 = vor.u32 %v5103_v27, %v4406_v26  ;;  %v4479_v43 = vor.u32 %v5121_v34, %v4478_v33  ;;  %v4534_v54 = vld [vmem:[#allocation11 + $0x1d0] sm:$0xf]  ;;  %v1830_v26 = vadd.f32 %v5516_v32, %v5514_v60 }
 0x167   :  { %v4107_v9 = vor.u32 %v5023_v61, %v4104_v62  ;;  %v4951_v11 = vld [vmem:[#allocation8 + $0x41c] sm:$0xf]  ;;  %v4543_v49 = vor.u32 %v5137_v38, %v4542_v36  ;;  %v5135_v55 = vld [vmem:[#allocation11 + $0x1d4] sm:$0xf0]  ;;  %v4326_v61 = vld [vmem:[#allocation11 + $0x30] sm:$0xf] }
 0x168   :  { %2189 = vmatpush.bf16.msra.mxu2 %v3883_v44  ;;  %v3816_v12 = vld [vmem:[#allocation8 + $0x438] sm:$0xf0]  ;;  %v4398_v44 = vld [vmem:[#allocation11 + $0xc0] sm:$0xf]  ;;  %v5083_v62 = vld [vmem:[#allocation11 + $0x34] sm:$0xf0]  ;;  %v4535_v6 = vor.u32 %v5135_v55, %v4534_v54 }
 0x169   :  { %2202 = vmatpush.bf16.msra.mxu3 %v4139_v51  ;;  %v5015_v13 = vld [vmem:[#allocation8 + $0x61c] sm:$0xf]  ;;  %2165 = vmatpush.bf16.msra.mxu0 %v3307_v58  ;;  %v3819_v21 = vor.u32 %v4951_v11, %v3816_v12  ;;  %v5119_v51 = vld [vmem:[#allocation11 + $0x154] sm:$0xf0]  ;;  %v4399_v58 = vor.u32 %v5101_v45, %v4398_v44  ;;  %v4526_v11 = vld [vmem:[#allocation11 + $0x1c0] sm:$0xf]  ;;  %v1843_v44 = vadd.f32 %v5518_v37, %v1830_v26 }
 0x16a   :  { %v4072_v14 = vld [vmem:[#allocation8 + $0x638] sm:$0xf0]  ;;  %2178 = vmatpush.bf16.msra.mxu1 %v3563_v63  ;;  %v4471_v63 = vor.u32 %v5119_v51, %v4470_v50  ;;  %v500_v12 = vperm.slane %v5507_v28, 2  ;;  %v5115_v22 = vld [vmem:[#allocation11 + $0x134] sm:$0xf0] }
 0x16b   :  { %v4075_v24 = vor.u32 %v5015_v13, %v4072_v14  ;;  %v4318_v14 = vld [vmem:[#allocation11 + $0x20] sm:$0xf]  ;;  %v5079_v33 = vld [vmem:[#allocation11 + $0x14] sm:$0xf0]  ;;  %v5077_v50 = vld [vmem:[#allocation11 + $0x4] sm:$0xf0] }
 0x16c   :  { %2190 = vmatpush.bf16.msra.mxu2 %v3851_v5  ;;  %2166 = vmatmul.bf16.vlgmr.msra.gmra.mxu0 %v5479_v41  ;;  %v5085_v41 = vld [vmem:[#allocation11 + $0x44] sm:$0xf0]  ;;  %v1959_v5 = vpop.f32.mrf.mxu0  ;;  %v1972_v8 = vpop.f32.mrf.mxu1  ;;  %v4319_v23 = vor.u32 %v5081_v15, %v4318_v14  ;;  %v1908_v29 = vadd.f32 %v5532_v59, %v500_v12  ;;  %v5095_v36 = vld [vmem:[#allocation11 + $0x94] sm:$0xf0]  ;;  %v4510_v32 = vld [vmem:[#allocation11 + $0x1a0] sm:$0xf] }
 0x16d   :  { %3000 = vmatpush.bf16.msrb.mxu0 %v4359_v1  ;;  %2203 = vmatpush.bf16.msra.mxu3 %v4107_v9  ;;  %v4335_v52 = vor.u32 %v5085_v41, %v4334_v40  ;;  %v4390_v1 = vld [vmem:[#allocation11 + $0xb0] sm:$0xf]  ;;  %v4327_v9 = vor.u32 %v5083_v62, %v4326_v61  ;;  %v4446_v40 = vld [vmem:[#allocation11 + $0x120] sm:$0xf]  ;;  %v5113_v41 = vld [vmem:[#allocation11 + $0x124] sm:$0xf0] }
 0x16e   :  { %3013 = vmatpush.bf16.msrb.mxu1 %v4423_v3  ;;  %v4391_v13 = vor.u32 %v5099_v2, %v4390_v1  ;;  %v4302_v59 = vld [vmem:[#allocation11] sm:$0xf]  ;;  %v4447_v55 = vor.u32 %v5113_v41, %v4446_v40  ;;  %v5155_v61 = vld [vmem:[#allocation11 + $0x274] sm:$0xf0]  ;;  %v4438_v62 = vld [vmem:[#allocation11 + $0x110] sm:$0xf] }
 0x16f   :  { %2179 = vmatmul.bf16.vlgmr.msra.gmra.mxu1 %v5481_v46  ;;  %v499_v46 = vperm.slane %v5507_v28, 1  ;;  %v4366_v51 = vld [vmem:[#allocation11 + $0x80] sm:$0xf]  ;;  %v5111_v2 = vld [vmem:[#allocation11 + $0x114] sm:$0xf0] }
 0x170   :  { %2191 = vmatpush.bf16.msra.mxu2 %v3819_v21  ;;  %v4454_v21 = vld [vmem:[#allocation11 + $0x130] sm:$0xf]  ;;  %v4606_v12 = vld [vmem:[#allocation11 + $0x260] sm:$0xf] }
 0x171   :  { %3001 = vmatpush.bf16.msrb.mxu0 %v4351_v17  ;;  %2204 = vmatpush.bf16.msra.mxu3 %v4075_v24  ;;  %v1856_v3 = vadd.f32 %v5520_v48, %v499_v46  ;;  %v4382_v17 = vld [vmem:[#allocation11 + $0xa0] sm:$0xf]  ;;  %v4518_v24 = vld [vmem:[#allocation11 + $0x1b0] sm:$0xf]  ;;  %v4455_v34 = vor.u32 %v5115_v22, %v4454_v21  ;;  %v1921_v46 = vadd.f32 %v5534_v0, %v1908_v29  ;;  %v5125_v22 = vld [vmem:[#allocation11 + $0x184] sm:$0xf0] }
 0x172   :  { %3014 = vmatpush.bf16.msrb.mxu1 %v4415_v20  ;;  %v4383_v30 = vor.u32 %v5097_v18, %v4382_v17  ;;  %v4430_v15 = vld [vmem:[#allocation11 + $0x100] sm:$0xf]  ;;  %v4598_v29 = vld [vmem:[#allocation11 + $0x250] sm:$0xf] }
 0x173   :  { %2192 = vmatmul.bf16.vlgmr.msra.gmra.mxu2 %v5485_v4  ;;  %v4462_v4 = vld [vmem:[#allocation11 + $0x140] sm:$0xf]  ;;  %v1869_v19 = vadd.f32 %v5522_v53, %v1856_v3  ;;  %v1960_v53 = vadd.f32 %v1959_v5, %v501_v16  ;;  %v5171_v3 = vld [vmem:[#allocation11 + $0x2f4] sm:$0xf0]  ;;  %v5109_v16 = vld [vmem:[#allocation11 + $0x104] sm:$0xf0] }
 0x174   :  { %3026 = vmatpush.bf16.msrb.mxu2 %v4487_v25  ;;  %2205 = vmatmul.bf16.vlgmr.msra.gmra.mxu3 %v5487_v10  ;;  %v5133_v10 = vld [vmem:[#allocation11 + $0x1c4] sm:$0xf0]  ;;  %v4463_v48 = vor.u32 %v5117_v7, %v4462_v4  ;;  %v5131_v25 = vld [vmem:[#allocation11 + $0x1b4] sm:$0xf0]  ;;  %v1961_v38 = vpop.f32.mrf.mxu0  ;;  %v4502_v4 = vld [vmem:[#allocation11 + $0x190] sm:$0xf] }
 0x175   :  { %3039 = vmatpush.bf16.msrb.mxu3 %v4551_v31  ;;  %3002 = vmatpush.bf16.msrb.mxu0 %v4343_v35  ;;  %v4527_v20 = vor.u32 %v5133_v10, %v4526_v11  ;;  %v1882_v27 = vadd.f32 %v5526_v42, %v1869_v19  ;;  %v4310_v31 = vld [vmem:[#allocation11 + $0x10] sm:$0xf]  ;;  %v5129_v42 = vld [vmem:[#allocation11 + $0x1a4] sm:$0xf0]  ;;  %v1973_v54 = vadd.f32 %v1972_v8, %v1960_v53  ;;  %v5127_v7 = vld [vmem:[#allocation11 + $0x194] sm:$0xf0] }
 0x176   :  { %3015 = vmatpush.bf16.msrb.mxu1 %v4407_v39  ;;  %v4374_v35 = vld [vmem:[#allocation11 + $0x90] sm:$0xf]  ;;  %v4519_v39 = vor.u32 %v5131_v25, %v4518_v24  ;;  %v4311_v60 = vor.u32 %v5079_v33, %v4310_v31  ;;  %v1985_v1 = vpop.f32.mrf.mxu2  ;;  %v4511_v37 = vor.u32 %v5129_v42, %v4510_v32  ;;  %v2210_v8 = vmax.f32 %v1843_v44, 0.0  ;;  %v4494_v18 = vld [vmem:[#allocation11 + $0x180] sm:$0xf] }
 0x177   :  { %v1895_v45 = vadd.f32 %v5528_v47, %v1882_v27  ;;  %v4678_v47 = vld [vmem:[#allocation11 + $0x2f0] sm:$0xf]  ;;  %v1986_v0 = vadd.f32 %v1985_v1, %v1973_v54  ;;  %v1998_v5 = vpop.f32.mrf.mxu3  ;;  %v4503_v17 = vor.u32 %v5127_v7, %v4502_v4  ;;  %v4670_v19 = vld [vmem:[#allocation11 + $0x2e0] sm:$0xf]  ;;  %v5187_v24 = vld [vmem:[#allocation11 + $0x374] sm:$0xf0] }
 0x178   :  { %3027 = vmatpush.bf16.msrb.mxu2 %v4479_v43  ;;  %v1974_v43 = vpop.f32.mrf.mxu1  ;;  %v4679_v14 = vor.u32 %v5171_v3, %v4678_v47  ;;  %v5558_v25 = vpack.c.bf16 %v2210_v8, %v2210_v8  ;;  %v4734_v41 = vld [vmem:[#allocation11 + $0x360] sm:$0xf]  ;;  %v5149_v42 = vld [vmem:[#allocation11 + $0x244] sm:$0xf0]  ;;  %v502_v7 = vperm.slane %v5507_v28, 4 }
 0x179   :  { %3040 = vmatpush.bf16.msrb.mxu3 %v4543_v49  ;;  %3003 = vmatpush.bf16.msrb.mxu0 %v4335_v52  ;;  %v4375_v49 = vor.u32 %v5095_v36, %v4374_v35  ;;  %v5093_v52 = vld [vmem:[#allocation11 + $0x84] sm:$0xf0]  ;;  %v1999_v21 = vadd.f32 %v1998_v5, %v1986_v0  ;;  %v4662_v35 = vld [vmem:[#allocation11 + $0x2d0] sm:$0xf]  ;;  %v5167_v36 = vld [vmem:[#allocation11 + $0x2d4] sm:$0xf0] }
 0x17a   :  { %3016 = vmatpush.bf16.msrb.mxu1 %v4399_v58  ;;  %v4614_v58 = vld [vmem:[#allocation11 + $0x270] sm:$0xf]  ;;  %v4367_v11 = vor.u32 %v5093_v52, %v4366_v51  ;;  %v5185_v43 = vld [vmem:[#allocation11 + $0x364] sm:$0xf0]  ;;  %v4590_v32 = vld [vmem:[#allocation11 + $0x240] sm:$0xf] }
 0x17b   :  { %v4615_v10 = vor.u32 %v5155_v61, %v4614_v58  ;;  %v4726_v51 = vld [vmem:[#allocation11 + $0x350] sm:$0xf]  ;;  %v5183_v52 = vld [vmem:[#allocation11 + $0x354] sm:$0xf0]  ;;  %v4591_v54 = vor.u32 %v5149_v42, %v4590_v32  ;;  %v5181_v47 = vld [vmem:[#allocation11 + $0x344] sm:$0xf0] }
 0x17c   :  { %3028 = vmatpush.bf16.msrb.mxu2 %v4471_v63  ;;  %v1934_v63 = vadd.f32 %v5536_v56, %v1921_v46  ;;  %v4439_v56 = vor.u32 %v5111_v2, %v4438_v62  ;;  %v5165_v46 = vld [vmem:[#allocation11 + $0x2c4] sm:$0xf0]  ;;  %v5147_v58 = vld [vmem:[#allocation11 + $0x234] sm:$0xf0]  ;;  %v4646_v62 = vld [vmem:[#allocation11 + $0x2b0] sm:$0xf]  ;;  %v4727_v1 = vor.u32 %v5183_v52, %v4726_v51 }
 0x17d   :  { %3041 = vmatpush.bf16.msrb.mxu3 %v4535_v6  ;;  %3004 = vmatpush.bf16.msrb.mxu0 %v4327_v9  ;;  %v4303_v6 = vor.u32 %v5077_v50, %v4302_v59  ;;  %v2211_v9 = vmax.f32 %v1895_v45, 0.0  ;;  %v4663_v59 = vor.u32 %v5167_v36, %v4662_v35  ;;  %v4654_v45 = vld [vmem:[#allocation11 + $0x2c0] sm:$0xf]  ;;  %v5177_v28 = vld [vmem:[#allocation11 + $0x324] sm:$0xf0] }
 0x17e   :  { %3017 = vmatpush.bf16.msrb.mxu1 %v4391_v13  ;;  %v5153_v13 = vld [vmem:[#allocation11 + $0x264] sm:$0xf0]  ;;  %v1987_v53 = vpop.f32.mrf.mxu2  ;;  %v4655_v61 = vor.u32 %v5165_v46, %v4654_v45  ;;  %v4718_v2 = vld [vmem:[#allocation11 + $0x340] sm:$0xf]  ;;  %v4424_v36 = vld [vmem:[#allocation11 + $0xf8] sm:$0xf0] }
 0x17f   :  { %v4607_v26 = vor.u32 %v5153_v13, %v4606_v12  ;;  %v5560_v27 = vpack.c.bf16 %v2211_v9, %v2211_v9  ;;  %v2000_v40 = vpop.f32.mrf.mxu3  ;;  %v4574_v5 = vld [vmem:[#allocation11 + $0x220] sm:$0xf]  ;;  %v5161_v9 = vld [vmem:[#allocation11 + $0x2a4] sm:$0xf0]  ;;  %v5179_v12 = vld [vmem:[#allocation11 + $0x334] sm:$0xf0] }
 0x180   :  { %3029 = vmatpush.bf16.msrb.mxu2 %v4463_v48  ;;  %v1947_v48 = vadd.f32 %v5538_v57, %v1934_v63  ;;  %v4431_v57 = vor.u32 %v5109_v16, %v4430_v15  ;;  %v5163_v63 = vld [vmem:[#allocation11 + $0x2b4] sm:$0xf0]  ;;  %v4638_v8 = vld [vmem:[#allocation11 + $0x2a0] sm:$0xf]  ;;  %v4566_v13 = vld [vmem:[#allocation11 + $0x210] sm:$0xf] }
 0x181   :  { %3042 = vmatpush.bf16.msrb.mxu3 %v4527_v20  ;;  %3005 = vmatpush.bf16.msrb.mxu0 %v4319_v23  ;;  %v5169_v20 = vld [vmem:[#allocation11 + $0x2e4] sm:$0xf0]  ;;  %v4742_v23 = vld [vmem:[#allocation11 + $0x370] sm:$0xf]  ;;  %v4647_v4 = vor.u32 %v5163_v63, %v4646_v62  ;;  %v4639_v15 = vor.u32 %v5161_v9, %v4638_v8  ;;  %v5106_v53 = vld [vmem:[#allocation11 + $0xf4] sm:$0xf] }
 0x182   :  { %3018 = vmatpush.bf16.msrb.mxu1 %v4383_v30  ;;  %v5151_v30 = vld [vmem:[#allocation11 + $0x254] sm:$0xf0]  ;;  %v4671_v31 = vor.u32 %v5169_v20, %v4670_v19  ;;  %v2212_v33 = vmax.f32 %v1947_v48, 0.0  ;;  %v4743_v38 = vor.u32 %v5187_v24, %v4742_v23  ;;  %v4630_v48 = vld [vmem:[#allocation11 + $0x290] sm:$0xf]  ;;  %v4427_v46 = vor.u32 %v5106_v53, %v4424_v36 }
 0x183   :  { %v4702_v20 = vld [vmem:[#allocation11 + $0x320] sm:$0xf]  ;;  %v5141_v24 = vld [vmem:[#allocation11 + $0x204] sm:$0xf0]  ;;  %v5088_v42 = vld [vmem:[#allocation11 + $0x64] sm:$0xf] }
 0x184   :  { %3030 = vmatpush.bf16.msrb.mxu2 %v4455_v34  ;;  %v4495_v34 = vor.u32 %v5125_v22, %v4494_v18  ;;  %v5564_v44 = vpack.c.bf16 %v2212_v33, %v2212_v33  ;;  %v4558_v23 = vld [vmem:[#allocation11 + $0x200] sm:$0xf]  ;;  %v5157_v33 = vld [vmem:[#allocation11 + $0x284] sm:$0xf0]  ;;  %v4352_v45 = vld [vmem:[#allocation11 + $0x68] sm:$0xf0] }
 0x185   :  { %3043 = vmatpush.bf16.msrb.mxu3 %v4519_v39  ;;  %3006 = vmatpush.bf16.msrb.mxu0 %v4311_v60  ;;  %v2213_v39 = vmax.f32 %v1999_v21, 0.0  ;;  %v4599_v60 = vor.u32 %v5151_v30, %v4598_v29  ;;  %v4360_v29 = vld [vmem:[#allocation11 + $0x78] sm:$0xf0]  ;;  %v4416_v51 = vld [vmem:[#allocation11 + $0xe8] sm:$0xf0]  ;;  %v4355_v62 = vor.u32 %v5088_v42, %v4352_v45 }
 0x186   :  { %3019 = vmatpush.bf16.msrb.mxu1 %v4375_v49  ;;  %v4735_v49 = vor.u32 %v5185_v43, %v4734_v41  ;;  %v4559_v43 = vor.u32 %v5141_v24, %v4558_v23  ;;  %v4408_v8 = vld [vmem:[#allocation11 + $0xd8] sm:$0xf0]  ;;  %v5197_v36 = vld [vmem:[#allocation11 + $0x3c4] sm:$0xf0] }
 0x187   :  { %v5566_v50 = vpack.c.bf16 %v2213_v39, %v2213_v39  ;;  %v5175_v39 = vld [vmem:[#allocation11 + $0x314] sm:$0xf0] }
 0x188   :  { %3031 = vmatpush.bf16.msrb.mxu2 %v4447_v55  ;;  %v4582_v55 = vld [vmem:[#allocation11 + $0x230] sm:$0xf] }
 0x189   :  { %3044 = vmatpush.bf16.msrb.mxu3 %v4511_v37  ;;  %3007 = vmatpush.bf16.msrb.mxu0 %v4303_v6  ;;  %v2011_v37 = vpop.f32.mrf.mxu0  ;;  %v4583_v0 = vor.u32 %v5147_v58, %v4582_v55  ;;  %v5145_v6 = vld [vmem:[#allocation11 + $0x224] sm:$0xf0] }
 0x18a   :  { %3020 = vmatpush.bf16.msrb.mxu1 %v4367_v11  ;;  %v4719_v11 = vor.u32 %v5181_v47, %v4718_v2  ;;  %v2012_v16 = vadd.f32 %v2011_v37, %v502_v7  ;;  %v5173_v55 = vld [vmem:[#allocation11 + $0x304] sm:$0xf0]  ;;  %v5122_v37 = vld [vmem:[#allocation11 + $0x174] sm:$0xf]  ;;  %v4488_v2 = vld [vmem:[#allocation11 + $0x178] sm:$0xf0] }
 0x18b   :  { %v4491_v9 = vor.u32 %v5122_v37, %v4488_v2 }
 0x18c   :  { %3032 = vmatpush.bf16.msrb.mxu2 %v4439_v56  ;;  %3008 = vmatmul.bf16.vlgmr.msrb.gmra.mxu0 %v5558_v25  ;;  %v2024_v3 = vpop.f32.mrf.mxu1  ;;  %v4575_v56 = vor.u32 %v5145_v6, %v4574_v5  ;;  %v5102_v5 = vld [vmem:[#allocation11 + $0xd4] sm:$0xf] }
 0x18d   :  { %3052 = vmatpush.bf16.msra.mxu0 %v4615_v10  ;;  %3045 = vmatpush.bf16.msrb.mxu3 %v4503_v17  ;;  %v4710_v10 = vld [vmem:[#allocation11 + $0x330] sm:$0xf]  ;;  %v5159_v17 = vld [vmem:[#allocation11 + $0x294] sm:$0xf0]  ;;  %v2025_v30 = vadd.f32 %v2024_v3, %v2012_v16  ;;  %v5086_v3 = vld [vmem:[#allocation11 + $0x54] sm:$0xf] }
 0x18e   :  { %3065 = vmatpush.bf16.msra.mxu1 %v4679_v14  ;;  %v5143_v14 = vld [vmem:[#allocation11 + $0x214] sm:$0xf0]  ;;  %v4711_v18 = vor.u32 %v5179_v12, %v4710_v10  ;;  %v5201_v10 = vld [vmem:[#allocation11 + $0x3e4] sm:$0xf0]  ;;  %v5084_v16 = vld [vmem:[#allocation11 + $0x44] sm:$0xf] }
 0x18f   :  { %3021 = vmatmul.bf16.vlgmr.msrb.gmra.mxu1 %v5560_v27  ;;  %v4567_v22 = vor.u32 %v5143_v14, %v4566_v13  ;;  %v5120_v13 = vld [vmem:[#allocation11 + $0x164] sm:$0xf]  ;;  %v4480_v14 = vld [vmem:[#allocation11 + $0x168] sm:$0xf0] }
 0x190   :  { %3033 = vmatpush.bf16.msrb.mxu2 %v4431_v57  ;;  %v5090_v57 = vld [vmem:[#allocation11 + $0x74] sm:$0xf] }
 0x191   :  { %3053 = vmatpush.bf16.msra.mxu0 %v4607_v26  ;;  %3046 = vmatpush.bf16.msrb.mxu3 %v4495_v34  ;;  %v2013_v19 = vpop.f32.mrf.mxu0  ;;  %v4631_v26 = vor.u32 %v5159_v17, %v4630_v48  ;;  %v4703_v34 = vor.u32 %v5177_v28, %v4702_v20  ;;  %v4336_v48 = vld [vmem:[#allocation11 + $0x48] sm:$0xf0]  ;;  %v4411_v17 = vor.u32 %v5102_v5, %v4408_v8  ;;  %v4790_v28 = vld [vmem:[#allocation11 + $0x3d0] sm:$0xf]  ;;  %v5112_v8 = vld [vmem:[#allocation11 + $0x124] sm:$0xf] }
 0x192   :  { %3066 = vmatpush.bf16.msra.mxu1 %v4671_v31  ;;  %v4622_v31 = vld [vmem:[#allocation11 + $0x280] sm:$0xf]  ;;  %v4400_v19 = vld [vmem:[#allocation11 + $0xc8] sm:$0xf0]  ;;  %v4483_v20 = vor.u32 %v5120_v13, %v4480_v14  ;;  %v4339_v23 = vor.u32 %v5084_v16, %v4336_v48  ;;  %v4616_v48 = vld [vmem:[#allocation11 + $0x278] sm:$0xf0] }
 0x193   :  { %3034 = vmatmul.bf16.vlgmr.msrb.gmra.mxu2 %v5564_v44  ;;  %v4623_v32 = vor.u32 %v5157_v33, %v4622_v31  ;;  %v5098_v31 = vld [vmem:[#allocation11 + $0xb4] sm:$0xf]  ;;  %v4392_v33 = vld [vmem:[#allocation11 + $0xb8] sm:$0xf0]  ;;  %v4304_v13 = vld [vmem:[#allocation11 + $0x8] sm:$0xf0] }
 0x194   :  { %3078 = vmatpush.bf16.msra.mxu2 %v4743_v38  ;;  %3047 = vmatmul.bf16.vlgmr.msrb.gmra.mxu3 %v5566_v50  ;;  %v2026_v21 = vpop.f32.mrf.mxu1  ;;  %v4694_v38 = vld [vmem:[#allocation11 + $0x310] sm:$0xf]  ;;  %v4395_v42 = vor.u32 %v5098_v31, %v4392_v33  ;;  %v5152_v33 = vld [vmem:[#allocation11 + $0x264] sm:$0xf] }
 0x195   :  { %3054 = vmatpush.bf16.msra.mxu0 %v4599_v60  ;;  %v4363_v60 = vor.u32 %v5090_v57, %v4360_v29  ;;  %v4695_v52 = vor.u32 %v5175_v39, %v4694_v38  ;;  %v5199_v21 = vld [vmem:[#allocation11 + $0x3d4] sm:$0xf0]  ;;  %v5082_v57 = vld [vmem:[#allocation11 + $0x34] sm:$0xf]  ;;  %v4328_v29 = vld [vmem:[#allocation11 + $0x38] sm:$0xf0] }
 0x196   :  { %3067 = vmatpush.bf16.msra.mxu1 %v4663_v59  ;;  %v2037_v35 = vpop.f32.mrf.mxu2  ;;  %v4791_v24 = vor.u32 %v5199_v21, %v4790_v28  ;;  %v5116_v38 = vld [vmem:[#allocation11 + $0x144] sm:$0xf]  ;;  %v4758_v28 = vld [vmem:[#allocation11 + $0x390] sm:$0xf]  ;;  %v5191_v21 = vld [vmem:[#allocation11 + $0x394] sm:$0xf0] }
 0x197   :  { %v2038_v40 = vadd.f32 %v2037_v35, %v2025_v30  ;;  %v2050_v41 = vpop.f32.mrf.mxu3  ;;  %v4782_v35 = vld [vmem:[#allocation11 + $0x3c0] sm:$0xf] }
 0x198   :  { %3079 = vmatpush.bf16.msra.mxu2 %v4735_v49  ;;  %v5104_v49 = vld [vmem:[#allocation11 + $0xe4] sm:$0xf] }
 0x199   :  { %3055 = vmatpush.bf16.msra.mxu0 %v4591_v54  ;;  %v2051_v59 = vadd.f32 %v2050_v41, %v2038_v40  ;;  %v4686_v54 = vld [vmem:[#allocation11 + $0x300] sm:$0xf]  ;;  %v4419_v63 = vor.u32 %v5104_v49, %v4416_v51  ;;  %v4331_v40 = vor.u32 %v5082_v57, %v4328_v29  ;;  %v4783_v41 = vor.u32 %v5197_v36, %v4782_v35  ;;  %v4384_v49 = vld [vmem:[#allocation11 + $0xa8] sm:$0xf0]  ;;  %v4440_v29 = vld [vmem:[#allocation11 + $0x118] sm:$0xf0] }
 0x19a   :  { %3068 = vmatpush.bf16.msra.mxu1 %v4655_v61  ;;  %v4806_v61 = vld [vmem:[#allocation11 + $0x3f0] sm:$0xf]  ;;  %v4687_v6 = vor.u32 %v5173_v55, %v4686_v54  ;;  %v5195_v54 = vld [vmem:[#allocation11 + $0x3b4] sm:$0xf0]  ;;  %v5114_v55 = vld [vmem:[#allocation11 + $0x134] sm:$0xf]  ;;  %v4759_v57 = vor.u32 %v5191_v21, %v4758_v28 }
 0x19b   :  { %v2214_v58 = vmax.f32 %v2051_v59, 0.0  ;;  %v5574_v59 = vld [vmem:[#allocation10] sm:$0xff]  ;;  %v5170_v35 = vld [vmem:[#allocation11 + $0x2f4] sm:$0xf]  ;;  %v5144_v28 = vld [vmem:[#allocation11 + $0x224] sm:$0xf] }
 0x19c   :  { %3080 = vmatpush.bf16.msra.mxu2 %v4727_v1  ;;  %v5203_v1 = vld [vmem:[#allocation11 + $0x3f4] sm:$0xf0]  ;;  %v503_v45 = vperm.slane %v5574_v59, 5  ;;  %v4680_v36 = vld [vmem:[#allocation11 + $0x2f8] sm:$0xf0] }
 0x19d   :  { %3056 = vmatpush.bf16.msra.mxu0 %v4583_v0  ;;  %v5571_v47 = vpack.c.bf16 %v2214_v58, %v2214_v58  ;;  %v4344_v0 = vld [vmem:[#allocation11 + $0x58] sm:$0xf0] }
 0x19e   :  { %3069 = vmatpush.bf16.msra.mxu1 %v4647_v4  ;;  %v4807_v4 = vor.u32 %v5203_v1, %v4806_v61  ;;  %v2039_v7 = vpop.f32.mrf.mxu2  ;;  %v4312_v1 = vld [vmem:[#allocation11 + $0x18] sm:$0xf0] }
 0x19f   :  { %v2052_v12 = vpop.f32.mrf.mxu3  ;;  %v5193_v7 = vld [vmem:[#allocation11 + $0x3a4] sm:$0xf0] }
 0x1a0   :  { %3081 = vmatpush.bf16.msra.mxu2 %v4719_v11  ;;  %v4798_v11 = vld [vmem:[#allocation11 + $0x3e0] sm:$0xf]  ;;  %3091 = vmatpush.bf16.msra.mxu3 %v4807_v4  ;;  %v4448_v12 = vld [vmem:[#allocation11 + $0x128] sm:$0xf0] }
 0x1a1   :  { %3057 = vmatpush.bf16.msra.mxu0 %v4575_v56  ;;  %v4799_v56 = vor.u32 %v5201_v10, %v4798_v11  ;;  %v4766_v4 = vld [vmem:[#allocation11 + $0x3a0] sm:$0xf] }
 0x1a2   :  { %3070 = vmatpush.bf16.msra.mxu1 %v4639_v15  ;;  %v4347_v15 = vor.u32 %v5086_v3, %v4344_v0  ;;  %v5094_v3 = vld [vmem:[#allocation11 + $0x94] sm:$0xf]  ;;  %v4376_v0 = vld [vmem:[#allocation11 + $0x98] sm:$0xf0]  ;;  %v4767_v10 = vor.u32 %v5193_v7, %v4766_v4  ;;  %v4592_v4 = vld [vmem:[#allocation11 + $0x248] sm:$0xf0] }
 0x1a3   :  { %v4379_v14 = vor.u32 %v5094_v3, %v4376_v0  ;;  %v5166_v7 = vld [vmem:[#allocation11 + $0x2d4] sm:$0xf] }
 0x1a4   :  { %3082 = vmatpush.bf16.msra.mxu2 %v4711_v18  ;;  %v5100_v18 = vld [vmem:[#allocation11 + $0xc4] sm:$0xf]  ;;  %3092 = vmatpush.bf16.msra.mxu3 %v4799_v56 }
 0x1a5   :  { %3058 = vmatpush.bf16.msra.mxu0 %v4567_v22  ;;  %v5118_v22 = vld [vmem:[#allocation11 + $0x154] sm:$0xf]  ;;  %v4403_v30 = vor.u32 %v5100_v18, %v4400_v19  ;;  %v5076_v56 = vld [vmem:[#allocation11 + $0x4] sm:$0xf]  ;;  %v4368_v18 = vld [vmem:[#allocation11 + $0x88] sm:$0xf0]  ;;  %v4451_v19 = vor.u32 %v5112_v8, %v4448_v12 }
 0x1a6   :  { %3071 = vmatpush.bf16.msra.mxu1 %v4631_v26  ;;  %v4472_v26 = vld [vmem:[#allocation11 + $0x158] sm:$0xf0]  ;;  %v5146_v12 = vld [vmem:[#allocation11 + $0x234] sm:$0xf] }
 0x1a7   :  { %v4475_v53 = vor.u32 %v5118_v22, %v4472_v26  ;;  %v5110_v22 = vld [vmem:[#allocation11 + $0x114] sm:$0xf]  ;;  %v4307_v26 = vor.u32 %v5076_v56, %v4304_v13  ;;  %v4664_v8 = vld [vmem:[#allocation11 + $0x2d8] sm:$0xf0] }
 0x1a8   :  { %3083 = vmatpush.bf16.msra.mxu2 %v4703_v34  ;;  %3093 = vmatpush.bf16.msra.mxu3 %v4791_v24  ;;  %v4584_v13 = vld [vmem:[#allocation11 + $0x238] sm:$0xf0] }
 0x1a9   :  { %3059 = vmatpush.bf16.msra.mxu0 %v4559_v43  ;;  %v2063_v34 = vpop.f32.mrf.mxu0  ;;  %v4464_v43 = vld [vmem:[#allocation11 + $0x148] sm:$0xf0] }
 0x1aa   :  { %3072 = vmatpush.bf16.msra.mxu1 %v4623_v32  ;;  %v4320_v32 = vld [vmem:[#allocation11 + $0x28] sm:$0xf0]  ;;  %v4467_v51 = vor.u32 %v5116_v38, %v4464_v43  ;;  %v2064_v2 = vadd.f32 %v2063_v34, %v503_v45  ;;  %v4443_v38 = vor.u32 %v5110_v22, %v4440_v29  ;;  %v4683_v45 = vor.u32 %v5170_v35, %v4680_v36  ;;  %v4520_v29 = vld [vmem:[#allocation11 + $0x1b8] sm:$0xf0]  ;;  %v5160_v35 = vld [vmem:[#allocation11 + $0x2a4] sm:$0xf] }
 0x1ab   :  { %v4608_v34 = vld [vmem:[#allocation11 + $0x268] sm:$0xf0] }
 0x1ac   :  { %3084 = vmatpush.bf16.msra.mxu2 %v4695_v52  ;;  %3060 = vmatmul.bf16.vlgmr.msra.gmra.mxu0 %v5571_v47  ;;  %v2076_v39 = vpop.f32.mrf.mxu1  ;;  %v4774_v52 = vld [vmem:[#allocation11 + $0x3b0] sm:$0xf]  ;;  %v4576_v22 = vld [vmem:[#allocation11 + $0x228] sm:$0xf0] }
 0x1ad   :  { %3104 = vmatpush.bf16.msrb.mxu0 %v4363_v60  ;;  %v5080_v60 = vld [vmem:[#allocation11 + $0x24] sm:$0xf]  ;;  %3094 = vmatpush.bf16.msra.mxu3 %v4783_v41  ;;  %v4775_v61 = vor.u32 %v5195_v54, %v4774_v52  ;;  %v2077_v16 = vadd.f32 %v2076_v39, %v2064_v2  ;;  %v4750_v39 = vld [vmem:[#allocation11 + $0x380] sm:$0xf]  ;;  %v4600_v54 = vld [vmem:[#allocation11 + $0x258] sm:$0xf0] }
 0x1ae   :  { %3117 = vmatpush.bf16.msrb.mxu1 %v4427_v46  ;;  %v5096_v46 = vld [vmem:[#allocation11 + $0xa4] sm:$0xf]  ;;  %v4323_v58 = vor.u32 %v5080_v60, %v4320_v32  ;;  %v4432_v32 = vld [vmem:[#allocation11 + $0x108] sm:$0xf0] }
 0x1af   :  { %v4387_v37 = vor.u32 %v5096_v46, %v4384_v49  ;;  %v5108_v41 = vld [vmem:[#allocation11 + $0x104] sm:$0xf]  ;;  %v5150_v46 = vld [vmem:[#allocation11 + $0x254] sm:$0xf]  ;;  %v4544_v2 = vld [vmem:[#allocation11 + $0x1e8] sm:$0xf0] }
 0x1b0   :  { %3085 = vmatpush.bf16.msra.mxu2 %v4687_v6  ;;  %v5138_v49 = vld [vmem:[#allocation11 + $0x1f4] sm:$0xf]  ;;  %v4603_v3 = vor.u32 %v5150_v46, %v4600_v54  ;;  %v4640_v36 = vld [vmem:[#allocation11 + $0x2a8] sm:$0xf0] }
 0x1b1   :  { %3105 = vmatpush.bf16.msrb.mxu0 %v4355_v62  ;;  %v4456_v62 = vld [vmem:[#allocation11 + $0x138] sm:$0xf0]  ;;  %v2065_v6 = vpop.f32.mrf.mxu0  ;;  %3095 = vmatpush.bf16.msra.mxu3 %v4775_v61  ;;  %v4435_v61 = vor.u32 %v5108_v41, %v4432_v32  ;;  %v4512_v41 = vld [vmem:[#allocation11 + $0x1a8] sm:$0xf0]  ;;  %v4643_v32 = vor.u32 %v5160_v35, %v4640_v36 }
 0x1b2   :  { %3118 = vmatpush.bf16.msrb.mxu1 %v4419_v63  ;;  %v5078_v63 = vld [vmem:[#allocation11 + $0x14] sm:$0xf]  ;;  %v4459_v5 = vor.u32 %v5114_v55, %v4456_v62  ;;  %v5168_v55 = vld [vmem:[#allocation11 + $0x2e4] sm:$0xf] }
 0x1b3   :  { %v4315_v11 = vor.u32 %v5078_v63, %v4312_v1 }
 0x1b4   :  { %3130 = vmatpush.bf16.msrb.mxu2 %v4491_v9  ;;  %v2078_v9 = vpop.f32.mrf.mxu1 }
 0x1b5   :  { %3106 = vmatpush.bf16.msrb.mxu0 %v4347_v15  ;;  %v5154_v15 = vld [vmem:[#allocation11 + $0x274] sm:$0xf]  ;;  %3096 = vmatpush.bf16.msra.mxu3 %v4767_v10  ;;  %v4667_v10 = vor.u32 %v5166_v7, %v4664_v8  ;;  %v4496_v7 = vld [vmem:[#allocation11 + $0x188] sm:$0xf0] }
 0x1b6   :  { %3119 = vmatpush.bf16.msrb.mxu1 %v4411_v17  ;;  %v5092_v17 = vld [vmem:[#allocation11 + $0x84] sm:$0xf]  ;;  %v5134_v9 = vld [vmem:[#allocation11 + $0x1d4] sm:$0xf] }
 0x1b7   :  { %v2102_v24 = vpop.f32.mrf.mxu3  ;;  %v4371_v31 = vor.u32 %v5092_v17, %v4368_v18  ;;  %v4528_v17 = vld [vmem:[#allocation11 + $0x1c8] sm:$0xf0] }
 0x1b8   :  { %3131 = vmatpush.bf16.msrb.mxu2 %v4483_v20  ;;  %v2089_v20 = vpop.f32.mrf.mxu2 }
 0x1b9   :  { %3107 = vmatpush.bf16.msrb.mxu0 %v4339_v23  ;;  %v2090_v23 = vadd.f32 %v2089_v20, %v2077_v16  ;;  %3097 = vmatpush.bf16.msra.mxu3 %v4759_v57  ;;  %v5130_v57 = vld [vmem:[#allocation11 + $0x1b4] sm:$0xf] }
 0x1ba   :  { %3120 = vmatpush.bf16.msrb.mxu1 %v4403_v30  ;;  %v4619_v30 = vor.u32 %v5154_v15, %v4616_v48  ;;  %v4656_v15 = vld [vmem:[#allocation11 + $0x2c8] sm:$0xf0]  ;;  %v5132_v48 = vld [vmem:[#allocation11 + $0x1c4] sm:$0xf] }
 0x1bb   :  { %v4531_v21 = vor.u32 %v5132_v48, %v4528_v17  ;;  %v4728_v48 = vld [vmem:[#allocation11 + $0x358] sm:$0xf0] }
 0x1bc   :  { %3132 = vmatpush.bf16.msrb.mxu2 %v4475_v53  ;;  %v2103_v53 = vadd.f32 %v2102_v24, %v2090_v23  ;;  %v5162_v23 = vld [vmem:[#allocation11 + $0x2b4] sm:$0xf]  ;;  %v4648_v24 = vld [vmem:[#allocation11 + $0x2b8] sm:$0xf0] }
 0x1bd   :  { %3108 = vmatpush.bf16.msrb.mxu0 %v4331_v40  ;;  %v5189_v40 = vld [vmem:[#allocation11 + $0x384] sm:$0xf0] }
 0x1be   :  { %3121 = vmatpush.bf16.msrb.mxu1 %v4395_v42  ;;  %v2215_v43 = vmax.f32 %v2103_v53, 0.0  ;;  %v4751_v60 = vor.u32 %v5189_v40, %v4750_v39  ;;  %v4611_v42 = vor.u32 %v5152_v33, %v4608_v34  ;;  %v5142_v33 = vld [vmem:[#allocation11 + $0x214] sm:$0xf]  ;;  %v4523_v53 = vor.u32 %v5130_v57, %v4520_v29  ;;  %v4568_v34 = vld [vmem:[#allocation11 + $0x218] sm:$0xf0] }
 0x1bf   :  { %v2104_v1 = vpop.f32.mrf.mxu3  ;;  %v5128_v40 = vld [vmem:[#allocation11 + $0x1a4] sm:$0xf]  ;;  %v4704_v57 = vld [vmem:[#allocation11 + $0x328] sm:$0xf0] }
 0x1c0   :  { %3133 = vmatpush.bf16.msrb.mxu2 %v4467_v51  ;;  %v4552_v51 = vld [vmem:[#allocation11 + $0x1f8] sm:$0xf0]  ;;  %v5577_v52 = vpack.c.bf16 %v2215_v43, %v2215_v43  ;;  %v2091_v63 = vpop.f32.mrf.mxu2  ;;  %3098 = vmatpush.bf16.msra.mxu3 %v4751_v60  ;;  %v4571_v60 = vor.u32 %v5142_v33, %v4568_v34  ;;  %v4515_v46 = vor.u32 %v5128_v40, %v4512_v41  ;;  %v5174_v33 = vld [vmem:[#allocation11 + $0x314] sm:$0xf]  ;;  %v4688_v40 = vld [vmem:[#allocation11 + $0x308] sm:$0xf0] }
 0x1c1   :  { %3109 = vmatpush.bf16.msrb.mxu0 %v4323_v58  ;;  %v4672_v58 = vld [vmem:[#allocation11 + $0x2e8] sm:$0xf0]  ;;  %v4555_v62 = vor.u32 %v5138_v49, %v4552_v51  ;;  %v5158_v49 = vld [vmem:[#allocation11 + $0x294] sm:$0xf]  ;;  %v4632_v51 = vld [vmem:[#allocation11 + $0x298] sm:$0xf0] }
 0x1c2   :  { %3122 = vmatpush.bf16.msrb.mxu1 %v4387_v37  ;;  %v5136_v37 = vld [vmem:[#allocation11 + $0x1e4] sm:$0xf]  ;;  %v4675_v0 = vor.u32 %v5168_v55, %v4672_v58  ;;  %v4635_v1 = vor.u32 %v5158_v49, %v4632_v51  ;;  %v4800_v49 = vld [vmem:[#allocation11 + $0x3e8] sm:$0xf0] }
 0x1c3   :  { %3073 = vmatmul.bf16.vlgmr.msra.gmra.mxu1 %v5577_v52  ;;  %v4547_v6 = vor.u32 %v5136_v37, %v4544_v2  ;;  %v5156_v2 = vld [vmem:[#allocation11 + $0x284] sm:$0xf] }
 0x1c4   :  { %3134 = vmatpush.bf16.msrb.mxu2 %v4459_v5  ;;  %3143 = vmatpush.bf16.msrb.mxu3 %v4555_v62  ;;  %v5148_v5 = vld [vmem:[#allocation11 + $0x244] sm:$0xf]  ;;  %v4504_v62 = vld [vmem:[#allocation11 + $0x198] sm:$0xf0] }
 0x1c5   :  { %3110 = vmatpush.bf16.msrb.mxu0 %v4315_v11  ;;  %v4595_v11 = vor.u32 %v5148_v5, %v4592_v4  ;;  %v5186_v5 = vld [vmem:[#allocation11 + $0x374] sm:$0xf]  ;;  %v5124_v4 = vld [vmem:[#allocation11 + $0x184] sm:$0xf] }
 0x1c6   :  { %3123 = vmatpush.bf16.msrb.mxu1 %v4379_v14  ;;  %v5164_v14 = vld [vmem:[#allocation11 + $0x2c4] sm:$0xf] }
 0x1c7   :  { %v4659_v20 = vor.u32 %v5164_v14, %v4656_v15 }
 0x1c8   :  { %3135 = vmatpush.bf16.msrb.mxu2 %v4451_v19  ;;  %3144 = vmatpush.bf16.msrb.mxu3 %v4547_v6  ;;  %v4587_v19 = vor.u32 %v5146_v12, %v4584_v13  ;;  %v4744_v6 = vld [vmem:[#allocation11 + $0x378] sm:$0xf0]  ;;  %v5184_v12 = vld [vmem:[#allocation11 + $0x364] sm:$0xf] }
 0x1c9   :  { %3111 = vmatpush.bf16.msrb.mxu0 %v4307_v26  ;;  %v2115_v16 = vpop.f32.mrf.mxu0  ;;  %v504_v26 = vperm.slane %v5574_v59, 6 }
 0x1ca   :  { %3124 = vmatpush.bf16.msrb.mxu1 %v4371_v31  ;;  %v4651_v31 = vor.u32 %v5162_v23, %v4648_v24  ;;  %v505_v23 = vperm.slane %v5574_v59, 7  ;;  %v5172_v59 = vld [vmem:[#allocation11 + $0x304] sm:$0xf] }
 0x1cc   :  { %3136 = vmatpush.bf16.msrb.mxu2 %v4443_v38  ;;  %3112 = vmatmul.bf16.vlgmr.msrb.gmra.mxu0 %v5558_v25  ;;  %v4536_v25 = vld [vmem:[#allocation11 + $0x1d8] sm:$0xf0]  ;;  %v2128_v18 = vpop.f32.mrf.mxu1  ;;  %v2116_v38 = vadd.f32 %v2115_v16, %v504_v26  ;;  %v5182_v16 = vld [vmem:[#allocation11 + $0x354] sm:$0xf]  ;;  %v5176_v26 = vld [vmem:[#allocation11 + $0x324] sm:$0xf] }
 0x1cd   :  { %3156 = vmatpush.bf16.msra.mxu0 %v4619_v30  ;;  %v4539_v56 = vor.u32 %v5134_v9, %v4536_v25  ;;  %v4579_v30 = vor.u32 %v5144_v28, %v4576_v22  ;;  %v4499_v25 = vor.u32 %v5124_v4, %v4496_v7  ;;  %v4731_v17 = vor.u32 %v5182_v16, %v4728_v48  ;;  %v4712_v22 = vld [vmem:[#allocation11 + $0x338] sm:$0xf0] }
 0x1ce   :  { %3169 = vmatpush.bf16.msra.mxu1 %v4683_v45  ;;  %v4560_v45 = vld [vmem:[#allocation11 + $0x208] sm:$0xf0]  ;;  %v2129_v54 = vadd.f32 %v2128_v18, %v2116_v38  ;;  %v5180_v18 = vld [vmem:[#allocation11 + $0x344] sm:$0xf]  ;;  %v4776_v4 = vld [vmem:[#allocation11 + $0x3b8] sm:$0xf0] }
 0x1cf   :  { %3145 = vmatpush.bf16.msrb.mxu3 %v4539_v56  ;;  %v4736_v56 = vld [vmem:[#allocation11 + $0x368] sm:$0xf0] }
 0x1d0   :  { %3137 = vmatpush.bf16.msrb.mxu2 %v4435_v61  ;;  %v5126_v61 = vld [vmem:[#allocation11 + $0x194] sm:$0xf]  ;;  %v4739_v15 = vor.u32 %v5184_v12, %v4736_v56 }
 0x1d1   :  { %3157 = vmatpush.bf16.msra.mxu0 %v4611_v42  ;;  %v2117_v39 = vpop.f32.mrf.mxu0  ;;  %v5140_v42 = vld [vmem:[#allocation11 + $0x204] sm:$0xf]  ;;  %v4507_v37 = vor.u32 %v5126_v61, %v4504_v62  ;;  %v5198_v61 = vld [vmem:[#allocation11 + $0x3d4] sm:$0xf]  ;;  %v4792_v62 = vld [vmem:[#allocation11 + $0x3d8] sm:$0xf0] }
 0x1d2   :  { %3170 = vmatpush.bf16.msra.mxu1 %v4675_v0  ;;  %v4563_v58 = vor.u32 %v5140_v42, %v4560_v45  ;;  %v4691_v42 = vor.u32 %v5172_v59, %v4688_v40  ;;  %v5190_v56 = vld [vmem:[#allocation11 + $0x394] sm:$0xf] }
 0x1d3   :  { %3146 = vmatpush.bf16.msrb.mxu3 %v4531_v21  ;;  %3125 = vmatmul.bf16.vlgmr.msrb.gmra.mxu1 %v5560_v27 }
 0x1d4   :  { %v2130_v43 = vpop.f32.mrf.mxu1 }
 0x1d5   :  { %3158 = vmatpush.bf16.msra.mxu0 %v4603_v3  ;;  %v4624_v3 = vld [vmem:[#allocation11 + $0x288] sm:$0xf0]  ;;  %v5202_v43 = vld [vmem:[#allocation11 + $0x3f4] sm:$0xf] }
 0x1d6   :  { %3171 = vmatpush.bf16.msra.mxu1 %v4667_v10  ;;  %v2141_v55 = vpop.f32.mrf.mxu2  ;;  %v4627_v9 = vor.u32 %v5156_v2, %v4624_v3 }
 0x1d7   :  { %3147 = vmatpush.bf16.msrb.mxu3 %v4523_v53  ;;  %v2142_v27 = vadd.f32 %v2141_v55, %v2129_v54  ;;  %v2154_v63 = vpop.f32.mrf.mxu3  ;;  %v4696_v53 = vld [vmem:[#allocation11 + $0x318] sm:$0xf0] }
 0x1d8   :  { %v4699_v39 = vor.u32 %v5174_v33, %v4696_v53 }
 0x1d9   :  { %3159 = vmatpush.bf16.msra.mxu0 %v4595_v11  ;;  %v2155_v0 = vadd.f32 %v2154_v63, %v2142_v27  ;;  %v4747_v11 = vor.u32 %v5186_v5, %v4744_v6  ;;  %v4795_v63 = vor.u32 %v5198_v61, %v4792_v62  ;;  %v5194_v6 = vld [vmem:[#allocation11 + $0x3b4] sm:$0xf] }
 0x1da   :  { %3172 = vmatpush.bf16.msra.mxu1 %v4659_v20 }
 0x1db   :  { %3148 = vmatpush.bf16.msrb.mxu3 %v4515_v46  ;;  %v2216_v8 = vmax.f32 %v2155_v0, 0.0  ;;  %v5200_v46 = vld [vmem:[#allocation11 + $0x3e4] sm:$0xf] }
 0x1dc   :  { %v4803_v55 = vor.u32 %v5200_v46, %v4800_v49 }
 0x1dd   :  { %3160 = vmatpush.bf16.msra.mxu0 %v4587_v19  ;;  %v5583_v10 = vpack.c.bf16 %v2216_v8, %v2216_v8  ;;  %v4720_v19 = vld [vmem:[#allocation11 + $0x348] sm:$0xf0]  ;;  %v4779_v8 = vor.u32 %v5194_v6, %v4776_v4 }
 0x1de   :  { %3173 = vmatpush.bf16.msra.mxu1 %v4651_v31  ;;  %v2143_v13 = vpop.f32.mrf.mxu2  ;;  %v4723_v21 = vor.u32 %v5180_v18, %v4720_v19  ;;  %v4707_v31 = vor.u32 %v5176_v26, %v4704_v57  ;;  %v4752_v18 = vld [vmem:[#allocation11 + $0x388] sm:$0xf0] }
 0x1df   :  { %3149 = vmatpush.bf16.msrb.mxu3 %v4507_v37  ;;  %v2156_v14 = vpop.f32.mrf.mxu3  ;;  %3086 = vmatmul.bf16.vlgmr.msra.gmra.mxu2 %v5583_v10  ;;  %v4784_v37 = vld [vmem:[#allocation11 + $0x3c8] sm:$0xf0]  ;;  %v4760_v13 = vld [vmem:[#allocation11 + $0x398] sm:$0xf0] }
 0x1e0   :  { %3182 = vmatpush.bf16.msra.mxu2 %v4747_v11  ;;  %v4763_v48 = vor.u32 %v5190_v56, %v4760_v13 }
 0x1e1   :  { %3161 = vmatpush.bf16.msra.mxu0 %v4579_v30 }
 0x1e2   :  { %3174 = vmatpush.bf16.msra.mxu1 %v4643_v32 }
 0x1e3   :  { %3150 = vmatpush.bf16.msrb.mxu3 %v4499_v25  ;;  %v4768_v25 = vld [vmem:[#allocation11 + $0x3a8] sm:$0xf0] }
 0x1e4   :  { %3183 = vmatpush.bf16.msra.mxu2 %v4739_v15 }
 0x1e5   :  { %3162 = vmatpush.bf16.msra.mxu0 %v4571_v60  ;;  %v4808_v60 = vld [vmem:[#allocation11 + $0x3f8] sm:$0xf0] }
 0x1e6   :  { %3175 = vmatpush.bf16.msra.mxu1 %v4635_v1  ;;  %v5196_v1 = vld [vmem:[#allocation11 + $0x3c4] sm:$0xf] }
 0x1e7   :  { %v4787_v5 = vor.u32 %v5196_v1, %v4784_v37 }
 0x1e8   :  { %3184 = vmatpush.bf16.msra.mxu2 %v4731_v17  ;;  %v5188_v17 = vld [vmem:[#allocation11 + $0x384] sm:$0xf] }
 0x1e9   :  { %3163 = vmatpush.bf16.msra.mxu0 %v4563_v58  ;;  %v2167_v20 = vpop.f32.mrf.mxu0  ;;  %v2354_v58 = vld [vmem:[%s5604_s6] sm:$0x3]  ;;  %s5416_s6 = smov [#allocation13]  }
 0x1ea   :  { %3176 = vmatpush.bf16.msra.mxu1 %v4627_v9  ;;  %v2168_v29 = vadd.f32 %v2167_v20, %v505_v23  ;;  %v2356_v27 = vperm.slane %v2354_v58, 0  ;;  %v5192_v9 = vld [vmem:[#allocation11 + $0x3a4] sm:$0xf]  ;;  %v4755_v20 = vor.u32 %v5188_v17, %v4752_v18  ;;  %s3225_s10 = sshll.u32 %s5416_s6, 4  ;;  %s3226_s10 = int_to_ptr.vmem [resolvable:$true] %s3225_s10 }
 0x1eb   :  { %v4771_v12 = vor.u32 %v5192_v9, %v4768_v25 }
 0x1ec   :  { %3164 = vmatmul.bf16.vlgmr.msra.gmra.mxu0 %v5571_v47  ;;  %v2180_v28 = vpop.f32.mrf.mxu1  ;;  %v5178_v47 = vld [vmem:[#allocation11 + $0x334] sm:$0xf]  ;;  %3185 = vmatpush.bf16.msra.mxu2 %v4723_v21 }
 0x1ed   :  { %3177 = vmatmul.bf16.vlgmr.msra.gmra.mxu1 %v5577_v52  ;;  %v4715_v24 = vor.u32 %v5178_v47, %v4712_v22  ;;  %v2181_v34 = vadd.f32 %v2180_v28, %v2168_v29  ;;  %v2357_v29 = vperm.slane %v2354_v58, 1 }
 0x1ef   :  { %3138 = vmatmul.bf16.vlgmr.msrb.gmra.mxu2 %v5564_v44  ;;  %v4811_v44 = vor.u32 %v5202_v43, %v4808_v60 }
 0x1f0   :  { %3186 = vmatpush.bf16.msra.mxu2 %v4715_v24 }
 0x1f1   :  { %v2169_v30 = vpop.f32.mrf.mxu0 }
 0x1f4   :  { %v2182_v52 = vpop.f32.mrf.mxu1  ;;  %3187 = vmatpush.bf16.msra.mxu2 %v4707_v31 }
 0x1f6   :  { %v2193_v35 = vpop.f32.mrf.mxu2 }
 0x1f7   :  { %v2194_v36 = vadd.f32 %v2193_v35, %v2181_v34  ;;  %v2206_v38 = vpop.f32.mrf.mxu3 }
 0x1f8   :  { %3188 = vmatpush.bf16.msra.mxu2 %v4699_v39 }
 0x1f9   :  { %v2207_v41 = vadd.f32 %v2206_v38, %v2194_v36 }
 0x1fb   :  { %v2217_v32 = vmax.f32 %v2207_v41, 0.0 }
 0x1fc   :  { %3189 = vmatpush.bf16.msra.mxu2 %v4691_v42 }
 0x1fd   :  { %v2225_v45 = vpack.c.bf16 %v2217_v32, %v2217_v32 }
 0x1fe   :  { %v2195_v51 = vpop.f32.mrf.mxu2 }
 0x1ff   :  { %v2208_v54 = vpop.f32.mrf.mxu3  ;;  %3099 = vmatmul.bf16.vlgmr.msra.gmra.mxu3 %v2225_v45  ;;  %3190 = vmatmul.bf16.vlgmr.msra.gmra.mxu2 %v5583_v10 }
 0x200   :  { %3195 = vmatpush.bf16.msra.mxu3 %v4811_v44 }
 0x204   :  { %3196 = vmatpush.bf16.msra.mxu3 %v4803_v55 }
 0x208   :  { %3197 = vmatpush.bf16.msra.mxu3 %v4795_v63 }
 0x209   :  { %v3009_v2 = vpop.f32.mrf.mxu0 }
 0x20a   :  { %v3010_v3 = vadd.f32 %v3009_v2, %v2356_v27 }
 0x20c   :  { %v3022_v0 = vpop.f32.mrf.mxu1  ;;  %3198 = vmatpush.bf16.msra.mxu3 %v4787_v5 }
 0x20d   :  { %v3023_v7 = vadd.f32 %v3022_v0, %v3010_v3 }
 0x20f   :  { %3151 = vmatmul.bf16.vlgmr.msrb.gmra.mxu3 %v5566_v50 }
 0x210   :  { %3199 = vmatpush.bf16.msra.mxu3 %v4779_v8 }
 0x211   :  { %v3011_v11 = vpop.f32.mrf.mxu0 }
 0x214   :  { %v3024_v10 = vpop.f32.mrf.mxu1  ;;  %3200 = vmatpush.bf16.msra.mxu3 %v4771_v12 }
 0x216   :  { %v3035_v14 = vpop.f32.mrf.mxu2 }
 0x217   :  { %v3036_v15 = vadd.f32 %v3035_v14, %v3023_v7  ;;  %v3048_v16 = vpop.f32.mrf.mxu3 }
 0x218   :  { %3201 = vmatpush.bf16.msra.mxu3 %v4763_v48 }
 0x219   :  { %v3049_v19 = vadd.f32 %v3048_v16, %v3036_v15 }
 0x21c   :  { %3202 = vmatpush.bf16.msra.mxu3 %v4755_v20 }
 0x21e   :  { %v3037_v28 = vpop.f32.mrf.mxu2 }
 0x21f   :  { %v3050_v21 = vpop.f32.mrf.mxu3  ;;  %3203 = vmatmul.bf16.vlgmr.msra.gmra.mxu3 %v2225_v45 }
 0x229   :  { %v3061_v50 = vpop.f32.mrf.mxu0 }
 0x22a   :  { %v3062_v47 = vadd.f32 %v3061_v50, %v3049_v19 }
 0x231   :  { %v3063_v22 = vpop.f32.mrf.mxu0 }
 0x240   :  { %v3074_v24 = vpop.f32.mrf.mxu1 }
 0x241   :  { %v3075_v41 = vadd.f32 %v3074_v24, %v3062_v47 }
 0x248   :  { %v3076_v57 = vpop.f32.mrf.mxu1 }
 0x249   :  { %v3113_v23 = vpop.f32.mrf.mxu0 }
 0x24a   :  { %v3114_v30 = vadd.f32 %v3113_v23, %v2357_v29 }
 0x250   :  { %v3126_v52 = vpop.f32.mrf.mxu1 }
 0x251   :  { %v3115_v26 = vpop.f32.mrf.mxu0  ;;  %v3127_v31 = vadd.f32 %v3126_v52, %v3114_v30 }
 0x258   :  { %v3128_v33 = vpop.f32.mrf.mxu1 }
 0x262   :  { %v3087_v35 = vpop.f32.mrf.mxu2 }
 0x263   :  { %v3088_v43 = vadd.f32 %v3087_v35, %v3075_v41 }
 0x269   :  { %v3165_v53 = vpop.f32.mrf.mxu0 }
 0x26a   :  { %v3178_v34 = vpop.f32.mrf.mxu1  ;;  %v3089_v39 = vpop.f32.mrf.mxu2 }
 0x271   :  { %v3167_v36 = vpop.f32.mrf.mxu0 }
 0x272   :  { %v3180_v38 = vpop.f32.mrf.mxu1  ;;  %v3139_v59 = vpop.f32.mrf.mxu2 }
 0x273   :  { %v3140_v58 = vadd.f32 %v3139_v59, %v3127_v31 }
 0x27a   :  { %v3141_v40 = vpop.f32.mrf.mxu2 }
 0x282   :  { %v3100_v60 = vpop.f32.mrf.mxu3  ;;  %v3191_v44 = vpop.f32.mrf.mxu2 }
 0x283   :  { %v3101_v32 = vadd.f32 %v3100_v60, %v3088_v43 }
 0x285   :  { %v3208_v42 = vsub.f32 0.0, %v3101_v32 }
 0x287   :  { %v3210_v45 = vmul.f32 1.442695, %v3208_v42 }
 0x289   :  { %5217 = vpow2.f32 %v3210_v45 }
 0x28a   :  { %v3102_v46 = vpop.f32.mrf.mxu3  ;;  %v3193_v49 = vpop.f32.mrf.mxu2 }
 0x28f   :  { %v5218_v51 = vpop.eup %5217 }
 0x290   :  { %v3214_v54 = vadd.f32 1.0, %v5218_v51 }
 0x292   :  { %5219 = vrcp.f32 %v3214_v54  ;;  %v3152_v55 = vpop.f32.mrf.mxu3 }
 0x293   :  { %v3153_v61 = vadd.f32 %v3152_v55, %v3140_v58 }
 0x295   :  { %v3166_v27 = vadd.f32 %v3165_v53, %v3153_v61 }
 0x297   :  { %v3179_v1 = vadd.f32 %v3178_v34, %v3166_v27 }
 0x298   :  { %v5220_v62 = vpop.eup %5219 }
 0x299   :  { %3218 = vst [vmem:[#allocation13] sm:$0xff] %v5220_v62  ;;  %v3192_v37 = vadd.f32 %v3191_v44, %v3179_v1 }
 0x29a   :  { %v3154_v63 = vpop.f32.mrf.mxu3 }
 0x2a2   :  { %v3204_v2 = vpop.f32.mrf.mxu3 }
 0x2a3   :  { %v3205_v3 = vadd.f32 %v3204_v2, %v3192_v37 }
 0x2a5   :  { %v3209_v0 = vsub.f32 0.0, %v3205_v3 }
 0x2a7   :  { %v3212_v5 = vmul.f32 1.442695, %v3209_v0 }
 0x2a9   :  { %5221 = vpow2.f32 %v3212_v5 }
 0x2aa   :  { %v3206_v6 = vpop.f32.mrf.mxu3 }
 0x2af   :  { %v5222_v4 = vpop.eup %5221 }
 0x2b0   :  { %v3215_v7 = vadd.f32 1.0, %v5222_v4 }
 0x2b2   :  { %5223 = vrcp.f32 %v3215_v7 }
 0x2b8   :  { %v5224_v8 = vpop.eup %5223 }
 0x2b9   :  { %3219 = vst [vmem:[#allocation13 + $0x8] sm:$0xff] %v5224_v8 }
 0x2ba   :  { %3230 = dma.vmem_to_hbm [thread:$0]  %s3226_s10, 256, %s3228_s13, [#allocation4]  }
 0x2bb   :  { %5402 = dma.done.wait [#allocation4], 256  }
 0x2bc   :  { %5403 = vsyncadd [#allocation4], 4294967040 }
 0x2bd   :  { %3235 = vsyncpa [#allocation3], 1 }
 0x2be   :  { %3236 = vsyncpa [#allocation6], 1 }
 0x2bf   :  { %3237 = vsyncpa [#allocation9], 1 }
 0x2c0   :  { %3238 = vsyncpa [#allocation12], 1 }
 0x2c1   :  { %3239 = vsyncpa [#allocation4], 1 }

</bundles_post_ra>
